<compile_context>
chip_gen: v7x
topology: tpu7x:2x2x1
jax: 0.10.0
libtpu: 0.0.40
codegen_flags: <defaults>
</compile_context>

<pallas_src>
import jax
import jax.numpy as jnp
from jax.experimental import pallas as pl
from jax.experimental.pallas import tpu as pltpu


# ---------------------------------------------------------------------------
# Pallas kernels
# ---------------------------------------------------------------------------
def _conv_relu_pool_kernel(p_ref, w_ref, b_ref, o_ref):
    """Fused conv-as-matmul + 2x2 maxpool + bias + ReLU.

    p_ref: (4*Q, K) im2col patches, corner-major (4 pool-window corners stacked
           along rows), Q = N*(H/2)*(W/2), K = Cin*9
    w_ref: (K, Cout)     b_ref: (1, Cout)     o_ref: (Q, Cout) pooled output
    """
    q = o_ref.shape[0]
    # One big MXU matmul covering all 4 corners (same weights).
    y = jnp.dot(p_ref[...], w_ref[...], preferred_element_type=jnp.float32)  # (4Q, Cout)
    # Max over the 4 corner slabs (static slices at multiples of Q, Q % 8 == 0).
    m = jnp.maximum(jnp.maximum(y[0 * q:1 * q], y[1 * q:2 * q]),
                    jnp.maximum(y[2 * q:3 * q], y[3 * q:4 * q]))
    # Bias + ReLU after the window max (bias uniform per window, ReLU monotone).
    o_ref[...] = jnp.maximum(m + b_ref[...], 0.0).astype(o_ref.dtype)


def _mlp_kernel(x_ref, w1_ref, b1_ref, w2_ref, b2_ref, o_ref):
    """Fused fc1 + ReLU + fc2; the (M, 128) hidden stays in VMEM/registers."""
    h = jnp.dot(x_ref[...], w1_ref[...], preferred_element_type=jnp.float32)
    h = jnp.maximum(h + b1_ref[...], 0.0)
    y = jnp.dot(h, w2_ref[...], preferred_element_type=jnp.float32) + b2_ref[...]
    o_ref[...] = y.astype(o_ref.dtype)


# ---------------------------------------------------------------------------
# Wrappers
# ---------------------------------------------------------------------------
def _corner_patches(x_nhwc):
    """3x3/pad=1 im2col patches, grouped by 2x2 pool-window corner and stacked
    along rows.

    Returns (4*Q, Cin*9) with Q = N*(H/2)*(W/2); within each corner slab, rows
    follow (n, ho, wo) raster order and features follow ci*9 + kh*3 + kw
    (PyTorch conv weight order).
    """
    N, H, W, C = x_nhwc.shape
    xp = jnp.pad(x_nhwc, ((0, 0), (1, 1), (1, 1), (0, 0)))
    Hh, Wh = H // 2, W // 2
    corners = []
    for ph in (0, 1):
        for pw in (0, 1):
            taps = [xp[:, ph + kh:ph + kh + H:2, pw + kw:pw + kw + W:2, :]
                    for kh in range(3) for kw in range(3)]
            p = jnp.stack(taps, axis=-1)                       # (N, Hh, Wh, C, 9)
            corners.append(p.reshape(N * Hh * Wh, C * 9))
    return jnp.concatenate(corners, axis=0)                    # (4*Q, C*9)


def conv3x3_relu_pool(x_nhwc, w_mat, b_row):
    """One pallas_call: pooled = maxpool2x2(relu(conv3x3(x) + b)), NHWC in/out."""
    N, H, W, C = x_nhwc.shape
    assert H % 2 == 0 and W % 2 == 0
    K, Cout = w_mat.shape
    assert K == C * 9
    Hh, Wh = H // 2, W // 2
    Q = N * Hh * Wh
    patches = _corner_patches(x_nhwc)                          # (4*Q, K)
    out = pl.pallas_call(
        _conv_relu_pool_kernel,
        out_shape=jax.ShapeDtypeStruct((Q, Cout), x_nhwc.dtype),
        grid=(1,),
        in_specs=[
            pl.BlockSpec((4 * Q, K), lambda i: (0, 0)),
            pl.BlockSpec((K, Cout), lambda i: (0, 0)),
            pl.BlockSpec((1, Cout), lambda i: (0, 0)),
        ],
        out_specs=pl.BlockSpec((Q, Cout), lambda i: (0, 0)),
        compiler_params=pltpu.CompilerParams(dimension_semantics=("arbitrary",)),
    )(patches, w_mat, b_row)
    return out.reshape(N, Hh, Wh, Cout)


def mlp(x, w1, b1, w2, b2):
    """One pallas_call: fc2(relu(fc1(x)))."""
    M, K1 = x.shape
    K1b, Hd = w1.shape
    Hd2, Nout = w2.shape
    assert K1 == K1b and Hd == Hd2
    return pl.pallas_call(
        _mlp_kernel,
        out_shape=jax.ShapeDtypeStruct((M, Nout), x.dtype),
        grid=(1,),
        in_specs=[
            pl.BlockSpec((M, K1), lambda i: (0, 0)),
            pl.BlockSpec((K1, Hd), lambda i: (0, 0)),
            pl.BlockSpec((1, Hd), lambda i: (0, 0)),
            pl.BlockSpec((Hd, Nout), lambda i: (0, 0)),
            pl.BlockSpec((1, Nout), lambda i: (0, 0)),
        ],
        out_specs=pl.BlockSpec((M, Nout), lambda i: (0, 0)),
        compiler_params=pltpu.CompilerParams(dimension_semantics=("arbitrary",)),
    )(x, w1, b1, w2, b2)


# ---------------------------------------------------------------------------
# Model
# ---------------------------------------------------------------------------
def simple_cnn_forward(x_nchw, kp):
    x = jnp.transpose(x_nchw, (0, 2, 3, 1))                   # NCHW -> NHWC (once)
    x = conv3x3_relu_pool(x, kp["conv1_wm"], kp["conv1_b"])   # (N, 16, 16, 16)
    x = conv3x3_relu_pool(x, kp["conv2_wm"], kp["conv2_b"])   # (N, 8, 8, 32)
    x = x.reshape(x.shape[0], -1)     # NHWC flatten; NCHW order folded into fc1_wm rows
    return mlp(x, kp["fc1_wm"], kp["fc1_b"], kp["fc2_wm"], kp["fc2_b"])


def init_params(key):
    """PyTorch-layout parameters with nn.Module-style uniform init."""
    ks = jax.random.split(key, 8)

    def u(k, shape, fan_in):
        bound = 1.0 / jnp.sqrt(float(fan_in))
        return jax.random.uniform(k, shape, jnp.float32, -bound, bound)

    return {
        "conv1_w": u(ks[0], (16, 3, 3, 3), 3 * 9),
        "conv1_b": u(ks[1], (16,), 3 * 9),
        "conv2_w": u(ks[2], (32, 16, 3, 3), 16 * 9),
        "conv2_b": u(ks[3], (32,), 16 * 9),
        "fc1_w": u(ks[4], (128, 32 * 8 * 8), 32 * 8 * 8),
        "fc1_b": u(ks[5], (128,), 32 * 8 * 8),
        "fc2_w": u(ks[6], (10, 128), 128),
        "fc2_b": u(ks[7], (10,), 128),
    }


def prepare_params(p):
    """One-time conversion PyTorch layout -> kernel layout (outside the jitted forward)."""
    # fc1: (128, 2048) with column order (c, h, w)  ->  (2048, 128) with row order (h, w, c)
    fc1_wm = (p["fc1_w"].reshape(128, 32, 8, 8)
              .transpose(2, 3, 1, 0)
              .reshape(8 * 8 * 32, 128))
    return {
        "conv1_wm": p["conv1_w"].reshape(16, 3 * 9).T,     # (27, 16)
        "conv1_b": p["conv1_b"].reshape(1, 16),
        "conv2_wm": p["conv2_w"].reshape(32, 16 * 9).T,    # (144, 32)
        "conv2_b": p["conv2_b"].reshape(1, 32),
        "fc1_wm": fc1_wm,                                  # (2048, 128), NHWC row order
        "fc1_b": p["fc1_b"].reshape(1, 128),
        "fc2_wm": p["fc2_w"].T,                            # (128, 10)
        "fc2_b": p["fc2_b"].reshape(1, 10),
    }


if __name__ == "__main__":
    key = jax.random.PRNGKey(0)
    pkey, xkey = jax.random.split(key)
    kernel_params = prepare_params(init_params(pkey))
    # fc1 expects 32*8*8 features -> input spatial must be 32x32 (two 2x2 pools).
    x = jax.random.normal(xkey, (2, 3, 32, 32), dtype=jnp.float32)
    out = jax.jit(simple_cnn_forward)(x, kernel_params)
    out = jax.block_until_ready(out)
    assert out.shape == (2, 10) and out.dtype == jnp.float32
    print("KERNEL_OK")
</pallas_src>

<mosaic_0001>
module attributes {stable_mosaic.version = 11 : i64} {
  func.func @_conv_relu_pool_kernel(%arg0: i32, %arg1: memref<2048x27xf32, #tpu.memory_space<vmem>>, %arg2: memref<27x16xf32, #tpu.memory_space<vmem>>, %arg3: memref<1x16xf32, #tpu.memory_space<vmem>>, %arg4: memref<512x16xf32, #tpu.memory_space<vmem>>) attributes {dimension_semantics = [#tpu.dimension_semantics<arbitrary>], iteration_bounds = array<i64: 1>, scalar_prefetch = 0 : i64, scratch_operands = 0 : i64, tpu.core_type = #tpu.core_type<tc>, window_params = [{pipeline_mode = #tpu.pipeline_mode<synchronous>, transform_indices = @transform_0, window_bounds = array<i64: 2048, 27>}, {pipeline_mode = #tpu.pipeline_mode<synchronous>, transform_indices = @transform_1, window_bounds = array<i64: 27, 16>}, {pipeline_mode = #tpu.pipeline_mode<synchronous>, transform_indices = @transform_2, window_bounds = array<i64: 1, 16>}, {pipeline_mode = #tpu.pipeline_mode<synchronous>, transform_indices = @transform_3, window_bounds = array<i64: 512, 16>}]} {
    %c0 = arith.constant 0 : index
    %c0_0 = arith.constant 0 : index
    %0 = vector.load %arg1[%c0, %c0_0] : memref<2048x27xf32, #tpu.memory_space<vmem>>, vector<2048x27xf32>
    %c0_1 = arith.constant 0 : index
    %c0_2 = arith.constant 0 : index
    %1 = vector.load %arg2[%c0_1, %c0_2] : memref<27x16xf32, #tpu.memory_space<vmem>>, vector<27x16xf32>
    %cst = arith.constant dense<0.000000e+00> : vector<2048x16xf32>
    %2 = tpu.matmul %0, %1, %cst {dimension_numbers = #tpu.dot_dimension_numbers<[1], [0], [0], [1], [0, 0, 1, 1], [], []>} : vector<2048x27xf32>, vector<27x16xf32>, vector<2048x16xf32> -> vector<2048x16xf32>
    %3 = vector.extract_strided_slice %2 {offsets = [0, 0], sizes = [512, 16], strides = [1, 1]} : vector<2048x16xf32> to vector<512x16xf32>
    %4 = vector.extract_strided_slice %2 {offsets = [512, 0], sizes = [512, 16], strides = [1, 1]} : vector<2048x16xf32> to vector<512x16xf32>
    %5 = arith.maximumf %3, %4 : vector<512x16xf32>
    %6 = vector.extract_strided_slice %2 {offsets = [1024, 0], sizes = [512, 16], strides = [1, 1]} : vector<2048x16xf32> to vector<512x16xf32>
    %7 = vector.extract_strided_slice %2 {offsets = [1536, 0], sizes = [512, 16], strides = [1, 1]} : vector<2048x16xf32> to vector<512x16xf32>
    %8 = arith.maximumf %6, %7 : vector<512x16xf32>
    %9 = arith.maximumf %5, %8 : vector<512x16xf32>
    %c0_3 = arith.constant 0 : index
    %c0_4 = arith.constant 0 : index
    %10 = vector.load %arg3[%c0_3, %c0_4] : memref<1x16xf32, #tpu.memory_space<vmem>>, vector<1x16xf32>
    %11 = vector.broadcast %10 : vector<1x16xf32> to vector<512x16xf32>
    %12 = arith.addf %9, %11 : vector<512x16xf32>
    %cst_5 = arith.constant 0.000000e+00 : f32
    %13 = vector.broadcast %cst_5 : f32 to vector<512x16xf32>
    %14 = arith.maximumf %12, %13 : vector<512x16xf32>
    %c0_6 = arith.constant 0 : index
    %c0_7 = arith.constant 0 : index
    %15 = vector.load %arg4[%c0_6, %c0_7] : memref<512x16xf32, #tpu.memory_space<vmem>>, vector<512x16xf32>
    tpu.vector_store %arg4[%c0_6, %c0_7], %14 {strides = array<i32>} : memref<512x16xf32, #tpu.memory_space<vmem>>, vector<512x16xf32>,
    return
  }
  func.func @transform_0(%arg0: i32) -> (i32, i32) {
    %c0_i32 = arith.constant 0 : i32
    %c0_i32_0 = arith.constant 0 : i32
    %c0_i32_1 = arith.constant 0 : i32
    return %c0_i32, %c0_i32_0 : i32, i32
  }
  func.func @transform_1(%arg0: i32) -> (i32, i32) {
    %c0_i32 = arith.constant 0 : i32
    %c0_i32_0 = arith.constant 0 : i32
    %c0_i32_1 = arith.constant 0 : i32
    return %c0_i32, %c0_i32_0 : i32, i32
  }
  func.func @transform_2(%arg0: i32) -> (i32, i32) {
    %c0_i32 = arith.constant 0 : i32
    %c0_i32_0 = arith.constant 0 : i32
    %c0_i32_1 = arith.constant 0 : i32
    return %c0_i32, %c0_i32_0 : i32, i32
  }
  func.func @transform_3(%arg0: i32) -> (i32, i32) {
    %c0_i32 = arith.constant 0 : i32
    %c0_i32_0 = arith.constant 0 : i32
    %c0_i32_1 = arith.constant 0 : i32
    return %c0_i32, %c0_i32_0 : i32, i32
  }
}

module attributes {stable_mosaic.version = 11 : i64} {
  func.func @_conv_relu_pool_kernel(%arg0: i32, %arg1: memref<512x144xf32, #tpu.memory_space<vmem>>, %arg2: memref<144x32xf32, #tpu.memory_space<vmem>>, %arg3: memref<1x32xf32, #tpu.memory_space<vmem>>, %arg4: memref<128x32xf32, #tpu.memory_space<vmem>>) attributes {dimension_semantics = [#tpu.dimension_semantics<arbitrary>], iteration_bounds = array<i64: 1>, scalar_prefetch = 0 : i64, scratch_operands = 0 : i64, tpu.core_type = #tpu.core_type<tc>, window_params = [{pipeline_mode = #tpu.pipeline_mode<synchronous>, transform_indices = @transform_0, window_bounds = array<i64: 512, 144>}, {pipeline_mode = #tpu.pipeline_mode<synchronous>, transform_indices = @transform_1, window_bounds = array<i64: 144, 32>}, {pipeline_mode = #tpu.pipeline_mode<synchronous>, transform_indices = @transform_2, window_bounds = array<i64: 1, 32>}, {pipeline_mode = #tpu.pipeline_mode<synchronous>, transform_indices = @transform_3, window_bounds = array<i64: 128, 32>}]} {
    %c0 = arith.constant 0 : index
    %c0_0 = arith.constant 0 : index
    %0 = vector.load %arg1[%c0, %c0_0] : memref<512x144xf32, #tpu.memory_space<vmem>>, vector<512x144xf32>
    %c0_1 = arith.constant 0 : index
    %c0_2 = arith.constant 0 : index
    %1 = vector.load %arg2[%c0_1, %c0_2] : memref<144x32xf32, #tpu.memory_space<vmem>>, vector<144x32xf32>
    %cst = arith.constant dense<0.000000e+00> : vector<512x32xf32>
    %2 = tpu.matmul %0, %1, %cst {dimension_numbers = #tpu.dot_dimension_numbers<[1], [0], [0], [1], [0, 0, 1, 1], [], []>} : vector<512x144xf32>, vector<144x32xf32>, vector<512x32xf32> -> vector<512x32xf32>
    %3 = vector.extract_strided_slice %2 {offsets = [0, 0], sizes = [128, 32], strides = [1, 1]} : vector<512x32xf32> to vector<128x32xf32>
    %4 = vector.extract_strided_slice %2 {offsets = [128, 0], sizes = [128, 32], strides = [1, 1]} : vector<512x32xf32> to vector<128x32xf32>
    %5 = arith.maximumf %3, %4 : vector<128x32xf32>
    %6 = vector.extract_strided_slice %2 {offsets = [256, 0], sizes = [128, 32], strides = [1, 1]} : vector<512x32xf32> to vector<128x32xf32>
    %7 = vector.extract_strided_slice %2 {offsets = [384, 0], sizes = [128, 32], strides = [1, 1]} : vector<512x32xf32> to vector<128x32xf32>
    %8 = arith.maximumf %6, %7 : vector<128x32xf32>
    %9 = arith.maximumf %5, %8 : vector<128x32xf32>
    %c0_3 = arith.constant 0 : index
    %c0_4 = arith.constant 0 : index
    %10 = vector.load %arg3[%c0_3, %c0_4] : memref<1x32xf32, #tpu.memory_space<vmem>>, vector<1x32xf32>
    %11 = vector.broadcast %10 : vector<1x32xf32> to vector<128x32xf32>
    %12 = arith.addf %9, %11 : vector<128x32xf32>
    %cst_5 = arith.constant 0.000000e+00 : f32
    %13 = vector.broadcast %cst_5 : f32 to vector<128x32xf32>
    %14 = arith.maximumf %12, %13 : vector<128x32xf32>
    %c0_6 = arith.constant 0 : index
    %c0_7 = arith.constant 0 : index
    %15 = vector.load %arg4[%c0_6, %c0_7] : memref<128x32xf32, #tpu.memory_space<vmem>>, vector<128x32xf32>
    tpu.vector_store %arg4[%c0_6, %c0_7], %14 {strides = array<i32>} : memref<128x32xf32, #tpu.memory_space<vmem>>, vector<128x32xf32>,
    return
  }
  func.func @transform_0(%arg0: i32) -> (i32, i32) {
    %c0_i32 = arith.constant 0 : i32
    %c0_i32_0 = arith.constant 0 : i32
    %c0_i32_1 = arith.constant 0 : i32
    return %c0_i32, %c0_i32_0 : i32, i32
  }
  func.func @transform_1(%arg0: i32) -> (i32, i32) {
    %c0_i32 = arith.constant 0 : i32
    %c0_i32_0 = arith.constant 0 : i32
    %c0_i32_1 = arith.constant 0 : i32
    return %c0_i32, %c0_i32_0 : i32, i32
  }
  func.func @transform_2(%arg0: i32) -> (i32, i32) {
    %c0_i32 = arith.constant 0 : i32
    %c0_i32_0 = arith.constant 0 : i32
    %c0_i32_1 = arith.constant 0 : i32
    return %c0_i32, %c0_i32_0 : i32, i32
  }
  func.func @transform_3(%arg0: i32) -> (i32, i32) {
    %c0_i32 = arith.constant 0 : i32
    %c0_i32_0 = arith.constant 0 : i32
    %c0_i32_1 = arith.constant 0 : i32
    return %c0_i32, %c0_i32_0 : i32, i32
  }
}

module attributes {stable_mosaic.version = 11 : i64} {
  func.func @_mlp_kernel(%arg0: i32, %arg1: memref<2x2048xf32, #tpu.memory_space<vmem>>, %arg2: memref<2048x128xf32, #tpu.memory_space<vmem>>, %arg3: memref<1x128xf32, #tpu.memory_space<vmem>>, %arg4: memref<128x10xf32, #tpu.memory_space<vmem>>, %arg5: memref<1x10xf32, #tpu.memory_space<vmem>>, %arg6: memref<2x10xf32, #tpu.memory_space<vmem>>) attributes {dimension_semantics = [#tpu.dimension_semantics<arbitrary>], iteration_bounds = array<i64: 1>, scalar_prefetch = 0 : i64, scratch_operands = 0 : i64, tpu.core_type = #tpu.core_type<tc>, window_params = [{pipeline_mode = #tpu.pipeline_mode<synchronous>, transform_indices = @transform_0, window_bounds = array<i64: 2, 2048>}, {pipeline_mode = #tpu.pipeline_mode<synchronous>, transform_indices = @transform_1, window_bounds = array<i64: 2048, 128>}, {pipeline_mode = #tpu.pipeline_mode<synchronous>, transform_indices = @transform_2, window_bounds = array<i64: 1, 128>}, {pipeline_mode = #tpu.pipeline_mode<synchronous>, transform_indices = @transform_3, window_bounds = array<i64: 128, 10>}, {pipeline_mode = #tpu.pipeline_mode<synchronous>, transform_indices = @transform_4, window_bounds = array<i64: 1, 10>}, {pipeline_mode = #tpu.pipeline_mode<synchronous>, transform_indices = @transform_5, window_bounds = array<i64: 2, 10>}]} {
    %c0 = arith.constant 0 : index
    %c0_0 = arith.constant 0 : index
    %0 = vector.load %arg1[%c0, %c0_0] : memref<2x2048xf32, #tpu.memory_space<vmem>>, vector<2x2048xf32>
    %c0_1 = arith.constant 0 : index
    %c0_2 = arith.constant 0 : index
    %1 = vector.load %arg2[%c0_1, %c0_2] : memref<2048x128xf32, #tpu.memory_space<vmem>>, vector<2048x128xf32>
    %cst = arith.constant dense<0.000000e+00> : vector<2x128xf32>
    %2 = tpu.matmul %0, %1, %cst {dimension_numbers = #tpu.dot_dimension_numbers<[1], [0], [0], [1], [0, 0, 1, 1], [], []>} : vector<2x2048xf32>, vector<2048x128xf32>, vector<2x128xf32> -> vector<2x128xf32>
    %c0_3 = arith.constant 0 : index
    %c0_4 = arith.constant 0 : index
    %3 = vector.load %arg3[%c0_3, %c0_4] : memref<1x128xf32, #tpu.memory_space<vmem>>, vector<1x128xf32>
    %4 = vector.broadcast %3 : vector<1x128xf32> to vector<2x128xf32>
    %5 = arith.addf %2, %4 : vector<2x128xf32>
    %cst_5 = arith.constant 0.000000e+00 : f32
    %6 = vector.broadcast %cst_5 : f32 to vector<2x128xf32>
    %7 = arith.maximumf %5, %6 : vector<2x128xf32>
    %c0_6 = arith.constant 0 : index
    %c0_7 = arith.constant 0 : index
    %8 = vector.load %arg4[%c0_6, %c0_7] : memref<128x10xf32, #tpu.memory_space<vmem>>, vector<128x10xf32>
    %cst_8 = arith.constant dense<0.000000e+00> : vector<2x10xf32>
    %9 = tpu.matmul %7, %8, %cst_8 {dimension_numbers = #tpu.dot_dimension_numbers<[1], [0], [0], [1], [0, 0, 1, 1], [], []>} : vector<2x128xf32>, vector<128x10xf32>, vector<2x10xf32> -> vector<2x10xf32>
    %c0_9 = arith.constant 0 : index
    %c0_10 = arith.constant 0 : index
    %10 = vector.load %arg5[%c0_9, %c0_10] : memref<1x10xf32, #tpu.memory_space<vmem>>, vector<1x10xf32>
    %11 = vector.broadcast %10 : vector<1x10xf32> to vector<2x10xf32>
    %12 = arith.addf %9, %11 : vector<2x10xf32>
    %c0_11 = arith.constant 0 : index
    %c0_12 = arith.constant 0 : index
    %13 = vector.load %arg6[%c0_11, %c0_12] : memref<2x10xf32, #tpu.memory_space<vmem>>, vector<2x10xf32>
    tpu.vector_store %arg6[%c0_11, %c0_12], %12 {strides = array<i32>} : memref<2x10xf32, #tpu.memory_space<vmem>>, vector<2x10xf32>,
    return
  }
  func.func @transform_0(%arg0: i32) -> (i32, i32) {
    %c0_i32 = arith.constant 0 : i32
    %c0_i32_0 = arith.constant 0 : i32
    %c0_i32_1 = arith.constant 0 : i32
    return %c0_i32, %c0_i32_0 : i32, i32
  }
  func.func @transform_1(%arg0: i32) -> (i32, i32) {
    %c0_i32 = arith.constant 0 : i32
    %c0_i32_0 = arith.constant 0 : i32
    %c0_i32_1 = arith.constant 0 : i32
    return %c0_i32, %c0_i32_0 : i32, i32
  }
  func.func @transform_2(%arg0: i32) -> (i32, i32) {
    %c0_i32 = arith.constant 0 : i32
    %c0_i32_0 = arith.constant 0 : i32
    %c0_i32_1 = arith.constant 0 : i32
    return %c0_i32, %c0_i32_0 : i32, i32
  }
  func.func @transform_3(%arg0: i32) -> (i32, i32) {
    %c0_i32 = arith.constant 0 : i32
    %c0_i32_0 = arith.constant 0 : i32
    %c0_i32_1 = arith.constant 0 : i32
    return %c0_i32, %c0_i32_0 : i32, i32
  }
  func.func @transform_4(%arg0: i32) -> (i32, i32) {
    %c0_i32 = arith.constant 0 : i32
    %c0_i32_0 = arith.constant 0 : i32
    %c0_i32_1 = arith.constant 0 : i32
    return %c0_i32, %c0_i32_0 : i32, i32
  }
  func.func @transform_5(%arg0: i32) -> (i32, i32) {
    %c0_i32 = arith.constant 0 : i32
    %c0_i32_0 = arith.constant 0 : i32
    %c0_i32_1 = arith.constant 0 : i32
    return %c0_i32, %c0_i32_0 : i32, i32
  }
}

</mosaic_0001>

<bundles_post_ra>
// kernel: simple_cnn_forward.3
= control target key start
LH: loop header
LB: loop body
LE: loop exit
PB: predicated region body
PF: predicated region fallthrough
CT: control target
= control target key end

     0   :  { %vm1043_vm0 = vcmask 1042432   ;;  %vm274_vm1 = vcmask 220160   ;;  %vm3713_vm2 = vmmov 1   ;;  %vm2719_vm4 = vcmask 130048   ;;  %s5479_s1 = inlined_call_operand.vmem [shape: f32[27,16], index: 1, kind: input, shape index: {}]   ;;  %s5480_s0 = inlined_call_operand.vmem [shape: f32[2048,27], index: 0, kind: input, shape index: {}]   ;;  %s5481_s2 = inlined_call_operand.vmem [shape: f32[1,16], index: 2, kind: input, shape index: {}]   ;;  %s5482_s3 = inlined_call_operand.vmem [shape: f32[512,16], index: 3, kind: output, shape index: {}]  }
   0x1   :  { %v270_v0 = vld [vmem:[%s5479_s1] sm:$0xff]  ;;  %v271_v1 = vld [vmem:[%s5479_s1 + $0x8] sm:$0xff]  ;;  %v272_v2 = vld [vmem:[%s5479_s1 + $0x10] sm:$0xff] }
   0x2   :  { %v3698_v3 = vpack.c.bf16 %v271_v1, %v270_v0  ;;  %v273_v4 = vld [vmem:[%s5479_s1 + $0x18] sm:$0x7]  ;;  %v14_v5 = vld [vmem:[%s5480_s0] sm:$0xff]  ;;  %vm3703_vm3 = vmpackc.low %vm1043_vm0, %vm3713_vm2 }
   0x3   :  { %v3702_v6 = vpack.c.bf16 %v273_v4, %v272_v2  ;;  %3314 = vmatprep.mubr.msk.f32.mxu0 %vm274_vm1, %v14_v5  ;;  %v142_v7 = vld [vmem:[%s5480_s0 + $0x400] sm:$0xff]  ;;  %v15_v8 = vld [vmem:[%s5480_s0 + $0x8] sm:$0xff]  ;;  %v16_v10 = vld [vmem:[%s5480_s0 + $0x10] sm:$0xff] }
   0x4   :  { %3699 = vmatprep.subr.bf16.mxu0 %v3698_v3  ;;  %3708 = vmatprep.subr.bf16.mxu1 %v3698_v3  ;;  %v143_v9 = vld [vmem:[%s5480_s0 + $0x408] sm:$0xff]  ;;  %v144_v11 = vld [vmem:[%s5480_s0 + $0x410] sm:$0xff]  ;;  %v17_v12 = vld [vmem:[%s5480_s0 + $0x18] sm:$0xff] }
   0x5   :  { %3701 = vmatpush3.bf16.msra.mxu0 %v3698_v3  ;;  %3710 = vmatpush3.bf16.msra.mxu1 %v3698_v3  ;;  %v145_v13 = vld [vmem:[%s5480_s0 + $0x418] sm:$0xff]  ;;  %v18_v14 = vld [vmem:[%s5480_s0 + $0x20] sm:$0xff]  ;;  %v19_v16 = vld [vmem:[%s5480_s0 + $0x28] sm:$0xff] }
   0x6   :  { %3704 = vmatprep.subr.msk.bf16.mxu0 %vm3703_vm3, %v3702_v6  ;;  %3709 = vmatprep.subr.msk.bf16.mxu1 %vm3703_vm3, %v3702_v6  ;;  %v146_v15 = vld [vmem:[%s5480_s0 + $0x420] sm:$0xff]  ;;  %v147_v17 = vld [vmem:[%s5480_s0 + $0x428] sm:$0xff]  ;;  %v20_v18 = vld [vmem:[%s5480_s0 + $0x30] sm:$0xff] }
   0x7   :  { %3506 = vmatprep.mubr.msk.f32.mxu1 %vm274_vm1, %v142_v7  ;;  %v148_v19 = vld [vmem:[%s5480_s0 + $0x430] sm:$0xff]  ;;  %v21_v20 = vld [vmem:[%s5480_s0 + $0x38] sm:$0xff]  ;;  %v22_v22 = vld [vmem:[%s5480_s0 + $0x40] sm:$0xff] }
   0x8   :  { %v149_v21 = vld [vmem:[%s5480_s0 + $0x438] sm:$0xff]  ;;  %v150_v23 = vld [vmem:[%s5480_s0 + $0x440] sm:$0xff]  ;;  %v23_v24 = vld [vmem:[%s5480_s0 + $0x48] sm:$0xff] }
   0x9   :  { %3707 = vmatpush3.bf16.msk.msra.mxu0 %vm3703_vm3, %v3702_v6  ;;  %3711 = vmatpush3.bf16.msk.msra.mxu1 %vm3703_vm3, %v3702_v6  ;;  %v151_v25 = vld [vmem:[%s5480_s0 + $0x448] sm:$0xff]  ;;  %v24_v26 = vld [vmem:[%s5480_s0 + $0x50] sm:$0xff]  ;;  %v25_v28 = vld [vmem:[%s5480_s0 + $0x58] sm:$0xff] }
   0xa   :  { %v152_v27 = vld [vmem:[%s5480_s0 + $0x450] sm:$0xff]  ;;  %v153_v29 = vld [vmem:[%s5480_s0 + $0x458] sm:$0xff]  ;;  %v26_v30 = vld [vmem:[%s5480_s0 + $0x60] sm:$0xff] }
   0xb   :  { %v154_v31 = vld [vmem:[%s5480_s0 + $0x460] sm:$0xff]  ;;  %v27_v32 = vld [vmem:[%s5480_s0 + $0x68] sm:$0xff]  ;;  %v28_v34 = vld [vmem:[%s5480_s0 + $0x70] sm:$0xff] }
   0xc   :  { %3315 = vmatmul.mubr.msk.f32.vlgmr.msra.gmra.mrb[0].mxu0 %vm274_vm1, %v15_v8  ;;  %3507 = vmatmul.mubr.msk.f32.vlgmr.msra.gmra.mrb[0].mxu1 %vm274_vm1, %v143_v9  ;;  %v155_v33 = vld [vmem:[%s5480_s0 + $0x468] sm:$0xff]  ;;  %v156_v35 = vld [vmem:[%s5480_s0 + $0x470] sm:$0xff]  ;;  %v29_v36 = vld [vmem:[%s5480_s0 + $0x78] sm:$0xff] }
   0xd   :  { %3317 = vmatprep.mubr.msk.f32.mxu0 %vm274_vm1, %v16_v10  ;;  %3509 = vmatprep.mubr.msk.f32.mxu1 %vm274_vm1, %v144_v11  ;;  %v157_v37 = vld [vmem:[%s5480_s0 + $0x478] sm:$0xff]  ;;  %v30_v38 = vld [vmem:[%s5480_s0 + $0x80] sm:$0xff]  ;;  %v31_v40 = vld [vmem:[%s5480_s0 + $0x88] sm:$0xff] }
   0xe   :  { %v158_v39 = vld [vmem:[%s5480_s0 + $0x480] sm:$0xff]  ;;  %v159_v41 = vld [vmem:[%s5480_s0 + $0x488] sm:$0xff]  ;;  %v32_v42 = vld [vmem:[%s5480_s0 + $0x90] sm:$0xff] }
   0xf   :  { %v160_v43 = vld [vmem:[%s5480_s0 + $0x490] sm:$0xff]  ;;  %v33_v44 = vld [vmem:[%s5480_s0 + $0x98] sm:$0xff]  ;;  %v34_v46 = vld [vmem:[%s5480_s0 + $0xa0] sm:$0xff] }
  0x10   :  { %3318 = vmatmul.mubr.msk.f32.gmra.mrb[2].mxu0 %vm274_vm1, %v17_v12  ;;  %3510 = vmatmul.mubr.msk.f32.gmra.mrb[2].mxu1 %vm274_vm1, %v145_v13  ;;  %v161_v45 = vld [vmem:[%s5480_s0 + $0x498] sm:$0xff]  ;;  %v162_v47 = vld [vmem:[%s5480_s0 + $0x4a0] sm:$0xff]  ;;  %v35_v48 = vld [vmem:[%s5480_s0 + $0xa8] sm:$0xff] }
  0x11   :  { %3320 = vmatprep.mubr.msk.f32.mxu0 %vm274_vm1, %v18_v14  ;;  %3512 = vmatprep.mubr.msk.f32.mxu1 %vm274_vm1, %v146_v15  ;;  %v163_v49 = vld [vmem:[%s5480_s0 + $0x4a8] sm:$0xff]  ;;  %v36_v50 = vld [vmem:[%s5480_s0 + $0xb0] sm:$0xff]  ;;  %v37_v52 = vld [vmem:[%s5480_s0 + $0xb8] sm:$0xff] }
  0x12   :  { %v164_v51 = vld [vmem:[%s5480_s0 + $0x4b0] sm:$0xff]  ;;  %v165_v53 = vld [vmem:[%s5480_s0 + $0x4b8] sm:$0xff]  ;;  %v38_v54 = vld [vmem:[%s5480_s0 + $0xc0] sm:$0xff] }
  0x13   :  { %v166_v55 = vld [vmem:[%s5480_s0 + $0x4c0] sm:$0xff]  ;;  %v39_v56 = vld [vmem:[%s5480_s0 + $0xc8] sm:$0xff]  ;;  %v40_v58 = vld [vmem:[%s5480_s0 + $0xd0] sm:$0xff] }
  0x14   :  { %3321 = vmatmul.mubr.msk.f32.gmra.mrb[4].mxu0 %vm274_vm1, %v19_v16  ;;  %3513 = vmatmul.mubr.msk.f32.gmra.mrb[4].mxu1 %vm274_vm1, %v147_v17  ;;  %v167_v57 = vld [vmem:[%s5480_s0 + $0x4c8] sm:$0xff]  ;;  %v168_v59 = vld [vmem:[%s5480_s0 + $0x4d0] sm:$0xff]  ;;  %v41_v60 = vld [vmem:[%s5480_s0 + $0xd8] sm:$0xff] }
  0x15   :  { %3323 = vmatprep.mubr.msk.f32.mxu0 %vm274_vm1, %v20_v18  ;;  %3515 = vmatprep.mubr.msk.f32.mxu1 %vm274_vm1, %v148_v19  ;;  %v169_v61 = vld [vmem:[%s5480_s0 + $0x4d8] sm:$0xff]  ;;  %v42_v62 = vld [vmem:[%s5480_s0 + $0xe0] sm:$0xff]  ;;  %v43_v0 = vld [vmem:[%s5480_s0 + $0xe8] sm:$0xff] }
  0x16   :  { %v170_v63 = vld [vmem:[%s5480_s0 + $0x4e0] sm:$0xff]  ;;  %v171_v1 = vld [vmem:[%s5480_s0 + $0x4e8] sm:$0xff]  ;;  %v44_v2 = vld [vmem:[%s5480_s0 + $0xf0] sm:$0xff] }
  0x17   :  { %v172_v3 = vld [vmem:[%s5480_s0 + $0x4f0] sm:$0xff]  ;;  %v45_v4 = vld [vmem:[%s5480_s0 + $0xf8] sm:$0xff]  ;;  %v46_v6 = vld [vmem:[%s5480_s0 + $0x100] sm:$0xff] }
  0x18   :  { %3324 = vmatmul.mubr.msk.f32.gmra.mrb[6].mxu0 %vm274_vm1, %v21_v20  ;;  %3516 = vmatmul.mubr.msk.f32.gmra.mrb[6].mxu1 %vm274_vm1, %v149_v21  ;;  %v173_v5 = vld [vmem:[%s5480_s0 + $0x4f8] sm:$0xff]  ;;  %v174_v7 = vld [vmem:[%s5480_s0 + $0x500] sm:$0xff]  ;;  %v47_v8 = vld [vmem:[%s5480_s0 + $0x108] sm:$0xff] }
  0x19   :  { %3326 = vmatprep.mubr.msk.f32.mxu0 %vm274_vm1, %v22_v22  ;;  %3518 = vmatprep.mubr.msk.f32.mxu1 %vm274_vm1, %v150_v23  ;;  %v175_v9 = vld [vmem:[%s5480_s0 + $0x508] sm:$0xff]  ;;  %v48_v10 = vld [vmem:[%s5480_s0 + $0x110] sm:$0xff]  ;;  %v49_v12 = vld [vmem:[%s5480_s0 + $0x118] sm:$0xff] }
  0x1a   :  { %v176_v11 = vld [vmem:[%s5480_s0 + $0x510] sm:$0xff]  ;;  %v177_v13 = vld [vmem:[%s5480_s0 + $0x518] sm:$0xff]  ;;  %v50_v14 = vld [vmem:[%s5480_s0 + $0x120] sm:$0xff] }
  0x1b   :  { %v178_v15 = vld [vmem:[%s5480_s0 + $0x520] sm:$0xff]  ;;  %v51_v16 = vld [vmem:[%s5480_s0 + $0x128] sm:$0xff]  ;;  %v52_v18 = vld [vmem:[%s5480_s0 + $0x130] sm:$0xff] }
  0x1c   :  { %3327 = vmatmul.mubr.msk.f32.gmra.mrb[8].mxu0 %vm274_vm1, %v23_v24  ;;  %3519 = vmatmul.mubr.msk.f32.gmra.mrb[8].mxu1 %vm274_vm1, %v151_v25  ;;  %v179_v17 = vld [vmem:[%s5480_s0 + $0x528] sm:$0xff]  ;;  %v180_v19 = vld [vmem:[%s5480_s0 + $0x530] sm:$0xff]  ;;  %v53_v20 = vld [vmem:[%s5480_s0 + $0x138] sm:$0xff] }
  0x1d   :  { %3329 = vmatprep.mubr.msk.f32.mxu0 %vm274_vm1, %v24_v26  ;;  %3521 = vmatprep.mubr.msk.f32.mxu1 %vm274_vm1, %v152_v27  ;;  %v181_v21 = vld [vmem:[%s5480_s0 + $0x538] sm:$0xff]  ;;  %v54_v22 = vld [vmem:[%s5480_s0 + $0x140] sm:$0xff]  ;;  %v55_v24 = vld [vmem:[%s5480_s0 + $0x148] sm:$0xff] }
  0x1e   :  { %v182_v23 = vld [vmem:[%s5480_s0 + $0x540] sm:$0xff]  ;;  %v183_v25 = vld [vmem:[%s5480_s0 + $0x548] sm:$0xff]  ;;  %v56_v26 = vld [vmem:[%s5480_s0 + $0x150] sm:$0xff] }
  0x1f   :  { %v184_v27 = vld [vmem:[%s5480_s0 + $0x550] sm:$0xff] }
  0x20   :  { %3330 = vmatmul.mubr.msk.f32.gmra.mrb[10].mxu0 %vm274_vm1, %v25_v28  ;;  %3522 = vmatmul.mubr.msk.f32.gmra.mrb[10].mxu1 %vm274_vm1, %v153_v29  ;;  %v57_v28 = vld [vmem:[%s5480_s0 + $0x158] sm:$0xff] }
  0x21   :  { %3332 = vmatprep.mubr.msk.f32.mxu0 %vm274_vm1, %v26_v30  ;;  %3524 = vmatprep.mubr.msk.f32.mxu1 %vm274_vm1, %v154_v31  ;;  %v185_v29 = vld [vmem:[%s5480_s0 + $0x558] sm:$0xff]  ;;  %v58_v30 = vld [vmem:[%s5480_s0 + $0x160] sm:$0xff] }
  0x22   :  { %v186_v31 = vld [vmem:[%s5480_s0 + $0x560] sm:$0xff] }
  0x24   :  { %3333 = vmatmul.mubr.msk.f32.gmra.mrb[12].mxu0 %vm274_vm1, %v27_v32  ;;  %3525 = vmatmul.mubr.msk.f32.gmra.mrb[12].mxu1 %vm274_vm1, %v155_v33  ;;  %v59_v32 = vld [vmem:[%s5480_s0 + $0x168] sm:$0xff] }
  0x25   :  { %3335 = vmatprep.mubr.msk.f32.mxu0 %vm274_vm1, %v28_v34  ;;  %3527 = vmatprep.mubr.msk.f32.mxu1 %vm274_vm1, %v156_v35  ;;  %v187_v33 = vld [vmem:[%s5480_s0 + $0x568] sm:$0xff]  ;;  %v60_v34 = vld [vmem:[%s5480_s0 + $0x170] sm:$0xff] }
  0x26   :  { %v188_v35 = vld [vmem:[%s5480_s0 + $0x570] sm:$0xff] }
  0x28   :  { %3336 = vmatmul.mubr.msk.f32.gmra.mrb[14].mxu0 %vm274_vm1, %v29_v36  ;;  %3528 = vmatmul.mubr.msk.f32.gmra.mrb[14].mxu1 %vm274_vm1, %v157_v37  ;;  %v61_v36 = vld [vmem:[%s5480_s0 + $0x178] sm:$0xff] }
  0x29   :  { %3338 = vmatprep.mubr.msk.f32.mxu0 %vm274_vm1, %v30_v38  ;;  %3530 = vmatprep.mubr.msk.f32.mxu1 %vm274_vm1, %v158_v39  ;;  %v189_v37 = vld [vmem:[%s5480_s0 + $0x578] sm:$0xff]  ;;  %v62_v38 = vld [vmem:[%s5480_s0 + $0x180] sm:$0xff] }
  0x2a   :  { %v190_v39 = vld [vmem:[%s5480_s0 + $0x580] sm:$0xff] }
  0x2c   :  { %3339 = vmatmul.mubr.msk.f32.gmra.mrb[16].mxu0 %vm274_vm1, %v31_v40  ;;  %3531 = vmatmul.mubr.msk.f32.gmra.mrb[16].mxu1 %vm274_vm1, %v159_v41  ;;  %v63_v40 = vld [vmem:[%s5480_s0 + $0x188] sm:$0xff] }
  0x2d   :  { %3341 = vmatprep.mubr.msk.f32.mxu0 %vm274_vm1, %v32_v42  ;;  %3533 = vmatprep.mubr.msk.f32.mxu1 %vm274_vm1, %v160_v43  ;;  %v191_v41 = vld [vmem:[%s5480_s0 + $0x588] sm:$0xff]  ;;  %v64_v42 = vld [vmem:[%s5480_s0 + $0x190] sm:$0xff] }
  0x2e   :  { %v192_v43 = vld [vmem:[%s5480_s0 + $0x590] sm:$0xff] }
  0x30   :  { %3342 = vmatmul.mubr.msk.f32.gmra.mrb[18].mxu0 %vm274_vm1, %v33_v44  ;;  %3534 = vmatmul.mubr.msk.f32.gmra.mrb[18].mxu1 %vm274_vm1, %v161_v45  ;;  %v65_v44 = vld [vmem:[%s5480_s0 + $0x198] sm:$0xff] }
  0x31   :  { %3344 = vmatprep.mubr.msk.f32.mxu0 %vm274_vm1, %v34_v46  ;;  %3536 = vmatprep.mubr.msk.f32.mxu1 %vm274_vm1, %v162_v47  ;;  %v193_v45 = vld [vmem:[%s5480_s0 + $0x598] sm:$0xff]  ;;  %v66_v46 = vld [vmem:[%s5480_s0 + $0x1a0] sm:$0xff] }
  0x32   :  { %v194_v47 = vld [vmem:[%s5480_s0 + $0x5a0] sm:$0xff] }
  0x34   :  { %3345 = vmatmul.mubr.msk.f32.gmra.mrb[20].mxu0 %vm274_vm1, %v35_v48  ;;  %3537 = vmatmul.mubr.msk.f32.gmra.mrb[20].mxu1 %vm274_vm1, %v163_v49  ;;  %v67_v48 = vld [vmem:[%s5480_s0 + $0x1a8] sm:$0xff] }
  0x35   :  { %3347 = vmatprep.mubr.msk.f32.mxu0 %vm274_vm1, %v36_v50  ;;  %3539 = vmatprep.mubr.msk.f32.mxu1 %vm274_vm1, %v164_v51  ;;  %v195_v49 = vld [vmem:[%s5480_s0 + $0x5a8] sm:$0xff]  ;;  %v68_v50 = vld [vmem:[%s5480_s0 + $0x1b0] sm:$0xff] }
  0x36   :  { %v196_v51 = vld [vmem:[%s5480_s0 + $0x5b0] sm:$0xff] }
  0x38   :  { %3348 = vmatmul.mubr.msk.f32.gmra.mrb[22].mxu0 %vm274_vm1, %v37_v52  ;;  %3540 = vmatmul.mubr.msk.f32.gmra.mrb[22].mxu1 %vm274_vm1, %v165_v53  ;;  %v69_v52 = vld [vmem:[%s5480_s0 + $0x1b8] sm:$0xff] }
  0x39   :  { %3350 = vmatprep.mubr.msk.f32.mxu0 %vm274_vm1, %v38_v54  ;;  %3542 = vmatprep.mubr.msk.f32.mxu1 %vm274_vm1, %v166_v55  ;;  %v197_v53 = vld [vmem:[%s5480_s0 + $0x5b8] sm:$0xff]  ;;  %v70_v54 = vld [vmem:[%s5480_s0 + $0x1c0] sm:$0xff] }
  0x3a   :  { %v198_v55 = vld [vmem:[%s5480_s0 + $0x5c0] sm:$0xff] }
  0x3c   :  { %3351 = vmatmul.mubr.msk.f32.gmra.mrb[24].mxu0 %vm274_vm1, %v39_v56  ;;  %3543 = vmatmul.mubr.msk.f32.gmra.mrb[24].mxu1 %vm274_vm1, %v167_v57  ;;  %v71_v56 = vld [vmem:[%s5480_s0 + $0x1c8] sm:$0xff] }
  0x3d   :  { %3353 = vmatprep.mubr.msk.f32.mxu0 %vm274_vm1, %v40_v58  ;;  %3545 = vmatprep.mubr.msk.f32.mxu1 %vm274_vm1, %v168_v59  ;;  %v199_v57 = vld [vmem:[%s5480_s0 + $0x5c8] sm:$0xff]  ;;  %v72_v58 = vld [vmem:[%s5480_s0 + $0x1d0] sm:$0xff] }
  0x3e   :  { %v200_v59 = vld [vmem:[%s5480_s0 + $0x5d0] sm:$0xff] }
  0x40   :  { %3354 = vmatmul.mubr.msk.f32.gmra.mrb[26].mxu0 %vm274_vm1, %v41_v60  ;;  %3546 = vmatmul.mubr.msk.f32.gmra.mrb[26].mxu1 %vm274_vm1, %v169_v61  ;;  %v73_v60 = vld [vmem:[%s5480_s0 + $0x1d8] sm:$0xff] }
  0x41   :  { %3356 = vmatprep.mubr.msk.f32.mxu0 %vm274_vm1, %v42_v62  ;;  %3548 = vmatprep.mubr.msk.f32.mxu1 %vm274_vm1, %v170_v63  ;;  %v201_v61 = vld [vmem:[%s5480_s0 + $0x5d8] sm:$0xff]  ;;  %v74_v62 = vld [vmem:[%s5480_s0 + $0x1e0] sm:$0xff] }
  0x42   :  { %v202_v63 = vld [vmem:[%s5480_s0 + $0x5e0] sm:$0xff] }
  0x44   :  { %3357 = vmatmul.mubr.msk.f32.gmra.mrb[28].mxu0 %vm274_vm1, %v43_v0  ;;  %3549 = vmatmul.mubr.msk.f32.gmra.mrb[28].mxu1 %vm274_vm1, %v171_v1  ;;  %v75_v0 = vld [vmem:[%s5480_s0 + $0x1e8] sm:$0xff] }
  0x45   :  { %3359 = vmatprep.mubr.msk.f32.mxu0 %vm274_vm1, %v44_v2  ;;  %3551 = vmatprep.mubr.msk.f32.mxu1 %vm274_vm1, %v172_v3  ;;  %v203_v1 = vld [vmem:[%s5480_s0 + $0x5e8] sm:$0xff]  ;;  %v76_v2 = vld [vmem:[%s5480_s0 + $0x1f0] sm:$0xff] }
  0x46   :  { %v204_v3 = vld [vmem:[%s5480_s0 + $0x5f0] sm:$0xff] }
  0x48   :  { %3360 = vmatmul.mubr.msk.f32.gmra.mrb[30].mxu0 %vm274_vm1, %v45_v4  ;;  %3552 = vmatmul.mubr.msk.f32.gmra.mrb[30].mxu1 %vm274_vm1, %v173_v5  ;;  %v77_v4 = vld [vmem:[%s5480_s0 + $0x1f8] sm:$0xff] }
  0x49   :  { %3362 = vmatprep.mubr.msk.f32.mxu0 %vm274_vm1, %v46_v6  ;;  %3554 = vmatprep.mubr.msk.f32.mxu1 %vm274_vm1, %v174_v7  ;;  %v205_v5 = vld [vmem:[%s5480_s0 + $0x5f8] sm:$0xff]  ;;  %v78_v6 = vld [vmem:[%s5480_s0 + $0x200] sm:$0xff] }
  0x4a   :  { %v206_v7 = vld [vmem:[%s5480_s0 + $0x600] sm:$0xff] }
  0x4c   :  { %3363 = vmatmul.mubr.msk.f32.gmra.mrb[32].mxu0 %vm274_vm1, %v47_v8  ;;  %3555 = vmatmul.mubr.msk.f32.gmra.mrb[32].mxu1 %vm274_vm1, %v175_v9  ;;  %v79_v8 = vld [vmem:[%s5480_s0 + $0x208] sm:$0xff] }
  0x4d   :  { %3365 = vmatprep.mubr.msk.f32.mxu0 %vm274_vm1, %v48_v10  ;;  %3557 = vmatprep.mubr.msk.f32.mxu1 %vm274_vm1, %v176_v11  ;;  %v207_v9 = vld [vmem:[%s5480_s0 + $0x608] sm:$0xff]  ;;  %v80_v10 = vld [vmem:[%s5480_s0 + $0x210] sm:$0xff] }
  0x4e   :  { %v208_v11 = vld [vmem:[%s5480_s0 + $0x610] sm:$0xff] }
  0x50   :  { %3366 = vmatmul.mubr.msk.f32.gmra.mrb[34].mxu0 %vm274_vm1, %v49_v12  ;;  %3558 = vmatmul.mubr.msk.f32.gmra.mrb[34].mxu1 %vm274_vm1, %v177_v13  ;;  %v81_v12 = vld [vmem:[%s5480_s0 + $0x218] sm:$0xff] }
  0x51   :  { %3368 = vmatprep.mubr.msk.f32.mxu0 %vm274_vm1, %v50_v14  ;;  %3560 = vmatprep.mubr.msk.f32.mxu1 %vm274_vm1, %v178_v15  ;;  %v209_v13 = vld [vmem:[%s5480_s0 + $0x618] sm:$0xff]  ;;  %v82_v14 = vld [vmem:[%s5480_s0 + $0x220] sm:$0xff] }
  0x52   :  { %v210_v15 = vld [vmem:[%s5480_s0 + $0x620] sm:$0xff] }
  0x54   :  { %3369 = vmatmul.mubr.msk.f32.gmra.mrb[36].mxu0 %vm274_vm1, %v51_v16  ;;  %3561 = vmatmul.mubr.msk.f32.gmra.mrb[36].mxu1 %vm274_vm1, %v179_v17  ;;  %v83_v16 = vld [vmem:[%s5480_s0 + $0x228] sm:$0xff] }
  0x55   :  { %3371 = vmatprep.mubr.msk.f32.mxu0 %vm274_vm1, %v52_v18  ;;  %3563 = vmatprep.mubr.msk.f32.mxu1 %vm274_vm1, %v180_v19  ;;  %v211_v17 = vld [vmem:[%s5480_s0 + $0x628] sm:$0xff]  ;;  %v84_v18 = vld [vmem:[%s5480_s0 + $0x230] sm:$0xff] }
  0x56   :  { %v212_v19 = vld [vmem:[%s5480_s0 + $0x630] sm:$0xff] }
  0x58   :  { %3372 = vmatmul.mubr.msk.f32.gmra.mrb[38].mxu0 %vm274_vm1, %v53_v20  ;;  %3564 = vmatmul.mubr.msk.f32.gmra.mrb[38].mxu1 %vm274_vm1, %v181_v21  ;;  %v85_v20 = vld [vmem:[%s5480_s0 + $0x238] sm:$0xff] }
  0x59   :  { %3374 = vmatprep.mubr.msk.f32.mxu0 %vm274_vm1, %v54_v22  ;;  %3566 = vmatprep.mubr.msk.f32.mxu1 %vm274_vm1, %v182_v23  ;;  %v213_v21 = vld [vmem:[%s5480_s0 + $0x638] sm:$0xff]  ;;  %v86_v22 = vld [vmem:[%s5480_s0 + $0x240] sm:$0xff] }
  0x5a   :  { %v214_v23 = vld [vmem:[%s5480_s0 + $0x640] sm:$0xff] }
  0x5c   :  { %3375 = vmatmul.mubr.msk.f32.gmra.mrb[40].mxu0 %vm274_vm1, %v55_v24  ;;  %3567 = vmatmul.mubr.msk.f32.gmra.mrb[40].mxu1 %vm274_vm1, %v183_v25  ;;  %v87_v24 = vld [vmem:[%s5480_s0 + $0x248] sm:$0xff] }
  0x5d   :  { %3377 = vmatprep.mubr.msk.f32.mxu0 %vm274_vm1, %v56_v26  ;;  %3569 = vmatprep.mubr.msk.f32.mxu1 %vm274_vm1, %v184_v27  ;;  %v215_v25 = vld [vmem:[%s5480_s0 + $0x648] sm:$0xff]  ;;  %v88_v26 = vld [vmem:[%s5480_s0 + $0x250] sm:$0xff] }
  0x5e   :  { %v216_v27 = vld [vmem:[%s5480_s0 + $0x650] sm:$0xff] }
  0x60   :  { %3378 = vmatmul.mubr.msk.f32.gmra.mrb[42].mxu0 %vm274_vm1, %v57_v28  ;;  %3570 = vmatmul.mubr.msk.f32.gmra.mrb[42].mxu1 %vm274_vm1, %v185_v29  ;;  %v89_v28 = vld [vmem:[%s5480_s0 + $0x258] sm:$0xff] }
  0x61   :  { %3380 = vmatprep.mubr.msk.f32.mxu0 %vm274_vm1, %v58_v30  ;;  %3572 = vmatprep.mubr.msk.f32.mxu1 %vm274_vm1, %v186_v31  ;;  %v217_v29 = vld [vmem:[%s5480_s0 + $0x658] sm:$0xff]  ;;  %v90_v30 = vld [vmem:[%s5480_s0 + $0x260] sm:$0xff] }
  0x62   :  { %v218_v31 = vld [vmem:[%s5480_s0 + $0x660] sm:$0xff] }
  0x64   :  { %3381 = vmatmul.mubr.msk.f32.gmra.mrb[44].mxu0 %vm274_vm1, %v59_v32  ;;  %3573 = vmatmul.mubr.msk.f32.gmra.mrb[44].mxu1 %vm274_vm1, %v187_v33  ;;  %v91_v32 = vld [vmem:[%s5480_s0 + $0x268] sm:$0xff] }
  0x65   :  { %3383 = vmatprep.mubr.msk.f32.mxu0 %vm274_vm1, %v60_v34  ;;  %3575 = vmatprep.mubr.msk.f32.mxu1 %vm274_vm1, %v188_v35  ;;  %v219_v33 = vld [vmem:[%s5480_s0 + $0x668] sm:$0xff]  ;;  %v92_v34 = vld [vmem:[%s5480_s0 + $0x270] sm:$0xff] }
  0x66   :  { %v220_v35 = vld [vmem:[%s5480_s0 + $0x670] sm:$0xff] }
  0x68   :  { %3384 = vmatmul.mubr.msk.f32.gmra.mrb[46].mxu0 %vm274_vm1, %v61_v36  ;;  %3576 = vmatmul.mubr.msk.f32.gmra.mrb[46].mxu1 %vm274_vm1, %v189_v37  ;;  %v93_v36 = vld [vmem:[%s5480_s0 + $0x278] sm:$0xff] }
  0x69   :  { %3386 = vmatprep.mubr.msk.f32.mxu0 %vm274_vm1, %v62_v38  ;;  %3578 = vmatprep.mubr.msk.f32.mxu1 %vm274_vm1, %v190_v39  ;;  %v221_v37 = vld [vmem:[%s5480_s0 + $0x678] sm:$0xff]  ;;  %v94_v38 = vld [vmem:[%s5480_s0 + $0x280] sm:$0xff] }
  0x6a   :  { %v222_v39 = vld [vmem:[%s5480_s0 + $0x680] sm:$0xff] }
  0x6c   :  { %3387 = vmatmul.mubr.msk.f32.gmra.mrb[48].mxu0 %vm274_vm1, %v63_v40  ;;  %3579 = vmatmul.mubr.msk.f32.gmra.mrb[48].mxu1 %vm274_vm1, %v191_v41  ;;  %v95_v40 = vld [vmem:[%s5480_s0 + $0x288] sm:$0xff] }
  0x6d   :  { %3389 = vmatprep.mubr.msk.f32.mxu0 %vm274_vm1, %v64_v42  ;;  %3581 = vmatprep.mubr.msk.f32.mxu1 %vm274_vm1, %v192_v43  ;;  %v223_v41 = vld [vmem:[%s5480_s0 + $0x688] sm:$0xff]  ;;  %v96_v42 = vld [vmem:[%s5480_s0 + $0x290] sm:$0xff] }
  0x6e   :  { %v224_v43 = vld [vmem:[%s5480_s0 + $0x690] sm:$0xff] }
  0x70   :  { %3390 = vmatmul.mubr.msk.f32.gmra.mrb[50].mxu0 %vm274_vm1, %v65_v44  ;;  %3582 = vmatmul.mubr.msk.f32.gmra.mrb[50].mxu1 %vm274_vm1, %v193_v45  ;;  %v97_v44 = vld [vmem:[%s5480_s0 + $0x298] sm:$0xff] }
  0x71   :  { %3392 = vmatprep.mubr.msk.f32.mxu0 %vm274_vm1, %v66_v46  ;;  %3584 = vmatprep.mubr.msk.f32.mxu1 %vm274_vm1, %v194_v47  ;;  %v225_v45 = vld [vmem:[%s5480_s0 + $0x698] sm:$0xff]  ;;  %v98_v46 = vld [vmem:[%s5480_s0 + $0x2a0] sm:$0xff] }
  0x72   :  { %v226_v47 = vld [vmem:[%s5480_s0 + $0x6a0] sm:$0xff] }
  0x74   :  { %3393 = vmatmul.mubr.msk.f32.gmra.mrb[52].mxu0 %vm274_vm1, %v67_v48  ;;  %3585 = vmatmul.mubr.msk.f32.gmra.mrb[52].mxu1 %vm274_vm1, %v195_v49  ;;  %v99_v48 = vld [vmem:[%s5480_s0 + $0x2a8] sm:$0xff] }
  0x75   :  { %3395 = vmatprep.mubr.msk.f32.mxu0 %vm274_vm1, %v68_v50  ;;  %3587 = vmatprep.mubr.msk.f32.mxu1 %vm274_vm1, %v196_v51  ;;  %v227_v49 = vld [vmem:[%s5480_s0 + $0x6a8] sm:$0xff]  ;;  %v100_v50 = vld [vmem:[%s5480_s0 + $0x2b0] sm:$0xff] }
  0x76   :  { %v228_v51 = vld [vmem:[%s5480_s0 + $0x6b0] sm:$0xff] }
  0x78   :  { %3396 = vmatmul.mubr.msk.f32.gmra.mrb[54].mxu0 %vm274_vm1, %v69_v52  ;;  %3588 = vmatmul.mubr.msk.f32.gmra.mrb[54].mxu1 %vm274_vm1, %v197_v53  ;;  %v101_v52 = vld [vmem:[%s5480_s0 + $0x2b8] sm:$0xff] }
  0x79   :  { %3398 = vmatprep.mubr.msk.f32.mxu0 %vm274_vm1, %v70_v54  ;;  %3590 = vmatprep.mubr.msk.f32.mxu1 %vm274_vm1, %v198_v55  ;;  %v229_v53 = vld [vmem:[%s5480_s0 + $0x6b8] sm:$0xff]  ;;  %v102_v54 = vld [vmem:[%s5480_s0 + $0x2c0] sm:$0xff] }
  0x7a   :  { %v230_v55 = vld [vmem:[%s5480_s0 + $0x6c0] sm:$0xff] }
  0x7c   :  { %3399 = vmatmul.mubr.msk.f32.gmra.mrb[56].mxu0 %vm274_vm1, %v71_v56  ;;  %3591 = vmatmul.mubr.msk.f32.gmra.mrb[56].mxu1 %vm274_vm1, %v199_v57  ;;  %v103_v56 = vld [vmem:[%s5480_s0 + $0x2c8] sm:$0xff] }
  0x7d   :  { %3401 = vmatprep.mubr.msk.f32.mxu0 %vm274_vm1, %v72_v58  ;;  %3593 = vmatprep.mubr.msk.f32.mxu1 %vm274_vm1, %v200_v59  ;;  %v231_v57 = vld [vmem:[%s5480_s0 + $0x6c8] sm:$0xff]  ;;  %v104_v58 = vld [vmem:[%s5480_s0 + $0x2d0] sm:$0xff] }
  0x7e   :  { %v232_v59 = vld [vmem:[%s5480_s0 + $0x6d0] sm:$0xff] }
  0x80   :  { %3402 = vmatmul.mubr.msk.f32.gmra.mrb[58].mxu0 %vm274_vm1, %v73_v60  ;;  %3594 = vmatmul.mubr.msk.f32.gmra.mrb[58].mxu1 %vm274_vm1, %v201_v61  ;;  %v105_v60 = vld [vmem:[%s5480_s0 + $0x2d8] sm:$0xff] }
  0x81   :  { %3404 = vmatprep.mubr.msk.f32.mxu0 %vm274_vm1, %v74_v62  ;;  %3596 = vmatprep.mubr.msk.f32.mxu1 %vm274_vm1, %v202_v63  ;;  %v233_v61 = vld [vmem:[%s5480_s0 + $0x6d8] sm:$0xff]  ;;  %v106_v62 = vld [vmem:[%s5480_s0 + $0x2e0] sm:$0xff] }
  0x82   :  { %v234_v63 = vld [vmem:[%s5480_s0 + $0x6e0] sm:$0xff] }
  0x84   :  { %3405 = vmatmul.mubr.msk.f32.gmra.mrb[60].mxu0 %vm274_vm1, %v75_v0  ;;  %3597 = vmatmul.mubr.msk.f32.gmra.mrb[60].mxu1 %vm274_vm1, %v203_v1  ;;  %v107_v0 = vld [vmem:[%s5480_s0 + $0x2e8] sm:$0xff] }
  0x85   :  { %3407 = vmatprep.mubr.msk.f32.mxu0 %vm274_vm1, %v76_v2  ;;  %3599 = vmatprep.mubr.msk.f32.mxu1 %vm274_vm1, %v204_v3  ;;  %v235_v1 = vld [vmem:[%s5480_s0 + $0x6e8] sm:$0xff]  ;;  %v108_v2 = vld [vmem:[%s5480_s0 + $0x2f0] sm:$0xff] }
  0x86   :  { %v236_v3 = vld [vmem:[%s5480_s0 + $0x6f0] sm:$0xff] }
  0x88   :  { %3408 = vmatmul.mubr.msk.f32.gmra.mrb[62].mxu0 %vm274_vm1, %v77_v4  ;;  %3600 = vmatmul.mubr.msk.f32.gmra.mrb[62].mxu1 %vm274_vm1, %v205_v5  ;;  %v109_v4 = vld [vmem:[%s5480_s0 + $0x2f8] sm:$0xff] }
  0x89   :  { %3410 = vmatprep.mubr.msk.f32.mxu0 %vm274_vm1, %v78_v6  ;;  %3602 = vmatprep.mubr.msk.f32.mxu1 %vm274_vm1, %v206_v7  ;;  %v237_v5 = vld [vmem:[%s5480_s0 + $0x6f8] sm:$0xff]  ;;  %v110_v6 = vld [vmem:[%s5480_s0 + $0x300] sm:$0xff] }
  0x8a   :  { %v238_v7 = vld [vmem:[%s5480_s0 + $0x700] sm:$0xff] }
  0x8c   :  { %3411 = vmatmul.mubr.msk.f32.gmra.mrb[64].mxu0 %vm274_vm1, %v79_v8  ;;  %3603 = vmatmul.mubr.msk.f32.gmra.mrb[64].mxu1 %vm274_vm1, %v207_v9  ;;  %v111_v8 = vld [vmem:[%s5480_s0 + $0x308] sm:$0xff] }
  0x8d   :  { %3413 = vmatprep.mubr.msk.f32.mxu0 %vm274_vm1, %v80_v10  ;;  %3605 = vmatprep.mubr.msk.f32.mxu1 %vm274_vm1, %v208_v11  ;;  %v239_v9 = vld [vmem:[%s5480_s0 + $0x708] sm:$0xff]  ;;  %v112_v10 = vld [vmem:[%s5480_s0 + $0x310] sm:$0xff] }
  0x8e   :  { %v240_v11 = vld [vmem:[%s5480_s0 + $0x710] sm:$0xff] }
  0x90   :  { %3414 = vmatmul.mubr.msk.f32.gmra.mrb[66].mxu0 %vm274_vm1, %v81_v12  ;;  %3606 = vmatmul.mubr.msk.f32.gmra.mrb[66].mxu1 %vm274_vm1, %v209_v13  ;;  %v113_v12 = vld [vmem:[%s5480_s0 + $0x318] sm:$0xff] }
  0x91   :  { %3416 = vmatprep.mubr.msk.f32.mxu0 %vm274_vm1, %v82_v14  ;;  %3608 = vmatprep.mubr.msk.f32.mxu1 %vm274_vm1, %v210_v15  ;;  %v241_v13 = vld [vmem:[%s5480_s0 + $0x718] sm:$0xff]  ;;  %v114_v14 = vld [vmem:[%s5480_s0 + $0x320] sm:$0xff] }
  0x92   :  { %v242_v15 = vld [vmem:[%s5480_s0 + $0x720] sm:$0xff] }
  0x94   :  { %3417 = vmatmul.mubr.msk.f32.gmra.mrb[68].mxu0 %vm274_vm1, %v83_v16  ;;  %3609 = vmatmul.mubr.msk.f32.gmra.mrb[68].mxu1 %vm274_vm1, %v211_v17  ;;  %v115_v16 = vld [vmem:[%s5480_s0 + $0x328] sm:$0xff] }
  0x95   :  { %3419 = vmatprep.mubr.msk.f32.mxu0 %vm274_vm1, %v84_v18  ;;  %3611 = vmatprep.mubr.msk.f32.mxu1 %vm274_vm1, %v212_v19  ;;  %v243_v17 = vld [vmem:[%s5480_s0 + $0x728] sm:$0xff]  ;;  %v116_v18 = vld [vmem:[%s5480_s0 + $0x330] sm:$0xff] }
  0x96   :  { %v244_v19 = vld [vmem:[%s5480_s0 + $0x730] sm:$0xff] }
  0x98   :  { %3420 = vmatmul.mubr.msk.f32.gmra.mrb[70].mxu0 %vm274_vm1, %v85_v20  ;;  %3612 = vmatmul.mubr.msk.f32.gmra.mrb[70].mxu1 %vm274_vm1, %v213_v21  ;;  %v117_v20 = vld [vmem:[%s5480_s0 + $0x338] sm:$0xff] }
  0x99   :  { %3422 = vmatprep.mubr.msk.f32.mxu0 %vm274_vm1, %v86_v22  ;;  %3614 = vmatprep.mubr.msk.f32.mxu1 %vm274_vm1, %v214_v23  ;;  %v245_v21 = vld [vmem:[%s5480_s0 + $0x738] sm:$0xff]  ;;  %v118_v22 = vld [vmem:[%s5480_s0 + $0x340] sm:$0xff] }
  0x9a   :  { %v246_v23 = vld [vmem:[%s5480_s0 + $0x740] sm:$0xff] }
  0x9c   :  { %3423 = vmatmul.mubr.msk.f32.gmra.mrb[72].mxu0 %vm274_vm1, %v87_v24  ;;  %3615 = vmatmul.mubr.msk.f32.gmra.mrb[72].mxu1 %vm274_vm1, %v215_v25  ;;  %v119_v24 = vld [vmem:[%s5480_s0 + $0x348] sm:$0xff] }
  0x9d   :  { %3425 = vmatprep.mubr.msk.f32.mxu0 %vm274_vm1, %v88_v26  ;;  %3617 = vmatprep.mubr.msk.f32.mxu1 %vm274_vm1, %v216_v27  ;;  %v247_v25 = vld [vmem:[%s5480_s0 + $0x748] sm:$0xff]  ;;  %v120_v26 = vld [vmem:[%s5480_s0 + $0x350] sm:$0xff] }
  0x9e   :  { %v248_v27 = vld [vmem:[%s5480_s0 + $0x750] sm:$0xff] }
  0xa0   :  { %3426 = vmatmul.mubr.msk.f32.gmra.mrb[74].mxu0 %vm274_vm1, %v89_v28  ;;  %3618 = vmatmul.mubr.msk.f32.gmra.mrb[74].mxu1 %vm274_vm1, %v217_v29  ;;  %v121_v28 = vld [vmem:[%s5480_s0 + $0x358] sm:$0xff] }
  0xa1   :  { %3428 = vmatprep.mubr.msk.f32.mxu0 %vm274_vm1, %v90_v30  ;;  %3620 = vmatprep.mubr.msk.f32.mxu1 %vm274_vm1, %v218_v31  ;;  %v249_v29 = vld [vmem:[%s5480_s0 + $0x758] sm:$0xff]  ;;  %v122_v30 = vld [vmem:[%s5480_s0 + $0x360] sm:$0xff] }
  0xa2   :  { %v250_v31 = vld [vmem:[%s5480_s0 + $0x760] sm:$0xff] }
  0xa4   :  { %3429 = vmatmul.mubr.msk.f32.gmra.mrb[76].mxu0 %vm274_vm1, %v91_v32  ;;  %3621 = vmatmul.mubr.msk.f32.gmra.mrb[76].mxu1 %vm274_vm1, %v219_v33 }
  0xa5   :  { %3431 = vmatprep.mubr.msk.f32.mxu0 %vm274_vm1, %v92_v34  ;;  %3623 = vmatprep.mubr.msk.f32.mxu1 %vm274_vm1, %v220_v35 }
  0xa8   :  { %3432 = vmatmul.mubr.msk.f32.gmra.mrb[78].mxu0 %vm274_vm1, %v93_v36  ;;  %3624 = vmatmul.mubr.msk.f32.gmra.mrb[78].mxu1 %vm274_vm1, %v221_v37  ;;  %v123_v36 = vld [vmem:[%s5480_s0 + $0x368] sm:$0xff] }
  0xa9   :  { %3434 = vmatprep.mubr.msk.f32.mxu0 %vm274_vm1, %v94_v38  ;;  %3626 = vmatprep.mubr.msk.f32.mxu1 %vm274_vm1, %v222_v39  ;;  %v251_v37 = vld [vmem:[%s5480_s0 + $0x768] sm:$0xff]  ;;  %v124_v38 = vld [vmem:[%s5480_s0 + $0x370] sm:$0xff] }
  0xaa   :  { %v252_v39 = vld [vmem:[%s5480_s0 + $0x770] sm:$0xff] }
  0xac   :  { %3435 = vmatmul.mubr.msk.f32.gmra.mrb[80].mxu0 %vm274_vm1, %v95_v40  ;;  %3627 = vmatmul.mubr.msk.f32.gmra.mrb[80].mxu1 %vm274_vm1, %v223_v41 }
  0xad   :  { %3437 = vmatprep.mubr.msk.f32.mxu0 %vm274_vm1, %v96_v42  ;;  %3629 = vmatprep.mubr.msk.f32.mxu1 %vm274_vm1, %v224_v43 }
  0xb0   :  { %3438 = vmatmul.mubr.msk.f32.gmra.mrb[82].mxu0 %vm274_vm1, %v97_v44  ;;  %3630 = vmatmul.mubr.msk.f32.gmra.mrb[82].mxu1 %vm274_vm1, %v225_v45  ;;  %v125_v44 = vld [vmem:[%s5480_s0 + $0x378] sm:$0xff] }
  0xb1   :  { %3440 = vmatprep.mubr.msk.f32.mxu0 %vm274_vm1, %v98_v46  ;;  %3632 = vmatprep.mubr.msk.f32.mxu1 %vm274_vm1, %v226_v47  ;;  %v253_v45 = vld [vmem:[%s5480_s0 + $0x778] sm:$0xff]  ;;  %v126_v46 = vld [vmem:[%s5480_s0 + $0x380] sm:$0xff] }
  0xb2   :  { %v254_v47 = vld [vmem:[%s5480_s0 + $0x780] sm:$0xff] }
  0xb4   :  { %3441 = vmatmul.mubr.msk.f32.gmra.mrb[84].mxu0 %vm274_vm1, %v99_v48  ;;  %3633 = vmatmul.mubr.msk.f32.gmra.mrb[84].mxu1 %vm274_vm1, %v227_v49 }
  0xb5   :  { %3443 = vmatprep.mubr.msk.f32.mxu0 %vm274_vm1, %v100_v50  ;;  %3635 = vmatprep.mubr.msk.f32.mxu1 %vm274_vm1, %v228_v51 }
  0xb8   :  { %3444 = vmatmul.mubr.msk.f32.gmra.mrb[86].mxu0 %vm274_vm1, %v101_v52  ;;  %3636 = vmatmul.mubr.msk.f32.gmra.mrb[86].mxu1 %vm274_vm1, %v229_v53  ;;  %v127_v52 = vld [vmem:[%s5480_s0 + $0x388] sm:$0xff] }
  0xb9   :  { %3446 = vmatprep.mubr.msk.f32.mxu0 %vm274_vm1, %v102_v54  ;;  %3638 = vmatprep.mubr.msk.f32.mxu1 %vm274_vm1, %v230_v55  ;;  %v255_v53 = vld [vmem:[%s5480_s0 + $0x788] sm:$0xff]  ;;  %v128_v54 = vld [vmem:[%s5480_s0 + $0x390] sm:$0xff] }
  0xba   :  { %v256_v55 = vld [vmem:[%s5480_s0 + $0x790] sm:$0xff] }
  0xbc   :  { %3447 = vmatmul.mubr.msk.f32.gmra.mrb[88].mxu0 %vm274_vm1, %v103_v56  ;;  %3639 = vmatmul.mubr.msk.f32.gmra.mrb[88].mxu1 %vm274_vm1, %v231_v57 }
  0xbd   :  { %3449 = vmatprep.mubr.msk.f32.mxu0 %vm274_vm1, %v104_v58  ;;  %3641 = vmatprep.mubr.msk.f32.mxu1 %vm274_vm1, %v232_v59 }
  0xc0   :  { %3450 = vmatmul.mubr.msk.f32.gmra.mrb[90].mxu0 %vm274_vm1, %v105_v60  ;;  %3642 = vmatmul.mubr.msk.f32.gmra.mrb[90].mxu1 %vm274_vm1, %v233_v61  ;;  %v129_v60 = vld [vmem:[%s5480_s0 + $0x398] sm:$0xff] }
  0xc1   :  { %3452 = vmatprep.mubr.msk.f32.mxu0 %vm274_vm1, %v106_v62  ;;  %3644 = vmatprep.mubr.msk.f32.mxu1 %vm274_vm1, %v234_v63  ;;  %v257_v61 = vld [vmem:[%s5480_s0 + $0x798] sm:$0xff]  ;;  %v130_v62 = vld [vmem:[%s5480_s0 + $0x3a0] sm:$0xff] }
  0xc2   :  { %v258_v63 = vld [vmem:[%s5480_s0 + $0x7a0] sm:$0xff] }
  0xc4   :  { %3453 = vmatmul.mubr.msk.f32.gmra.mrb[92].mxu0 %vm274_vm1, %v107_v0  ;;  %3645 = vmatmul.mubr.msk.f32.gmra.mrb[92].mxu1 %vm274_vm1, %v235_v1 }
  0xc5   :  { %3455 = vmatprep.mubr.msk.f32.mxu0 %vm274_vm1, %v108_v2  ;;  %3647 = vmatprep.mubr.msk.f32.mxu1 %vm274_vm1, %v236_v3 }
  0xc8   :  { %3456 = vmatmul.mubr.msk.f32.gmra.mrb[94].mxu0 %vm274_vm1, %v109_v4  ;;  %3648 = vmatmul.mubr.msk.f32.gmra.mrb[94].mxu1 %vm274_vm1, %v237_v5  ;;  %v131_v4 = vld [vmem:[%s5480_s0 + $0x3a8] sm:$0xff] }
  0xc9   :  { %3458 = vmatprep.mubr.msk.f32.mxu0 %vm274_vm1, %v110_v6  ;;  %3650 = vmatprep.mubr.msk.f32.mxu1 %vm274_vm1, %v238_v7  ;;  %v259_v5 = vld [vmem:[%s5480_s0 + $0x7a8] sm:$0xff]  ;;  %v132_v6 = vld [vmem:[%s5480_s0 + $0x3b0] sm:$0xff] }
  0xca   :  { %v260_v7 = vld [vmem:[%s5480_s0 + $0x7b0] sm:$0xff] }
  0xcc   :  { %3459 = vmatmul.mubr.msk.f32.gmra.mrb[96].mxu0 %vm274_vm1, %v111_v8  ;;  %3651 = vmatmul.mubr.msk.f32.gmra.mrb[96].mxu1 %vm274_vm1, %v239_v9 }
  0xcd   :  { %3461 = vmatprep.mubr.msk.f32.mxu0 %vm274_vm1, %v112_v10  ;;  %3653 = vmatprep.mubr.msk.f32.mxu1 %vm274_vm1, %v240_v11 }
  0xd0   :  { %3462 = vmatmul.mubr.msk.f32.gmra.mrb[98].mxu0 %vm274_vm1, %v113_v12  ;;  %3654 = vmatmul.mubr.msk.f32.gmra.mrb[98].mxu1 %vm274_vm1, %v241_v13  ;;  %v133_v12 = vld [vmem:[%s5480_s0 + $0x3b8] sm:$0xff] }
  0xd1   :  { %3464 = vmatprep.mubr.msk.f32.mxu0 %vm274_vm1, %v114_v14  ;;  %3656 = vmatprep.mubr.msk.f32.mxu1 %vm274_vm1, %v242_v15  ;;  %v261_v13 = vld [vmem:[%s5480_s0 + $0x7b8] sm:$0xff]  ;;  %v134_v14 = vld [vmem:[%s5480_s0 + $0x3c0] sm:$0xff] }
  0xd2   :  { %v262_v15 = vld [vmem:[%s5480_s0 + $0x7c0] sm:$0xff] }
  0xd4   :  { %3465 = vmatmul.mubr.msk.f32.gmra.mrb[100].mxu0 %vm274_vm1, %v115_v16  ;;  %3657 = vmatmul.mubr.msk.f32.gmra.mrb[100].mxu1 %vm274_vm1, %v243_v17 }
  0xd5   :  { %3467 = vmatprep.mubr.msk.f32.mxu0 %vm274_vm1, %v116_v18  ;;  %3659 = vmatprep.mubr.msk.f32.mxu1 %vm274_vm1, %v244_v19 }
  0xd8   :  { %3468 = vmatmul.mubr.msk.f32.gmra.mrb[102].mxu0 %vm274_vm1, %v117_v20  ;;  %3660 = vmatmul.mubr.msk.f32.gmra.mrb[102].mxu1 %vm274_vm1, %v245_v21  ;;  %v135_v20 = vld [vmem:[%s5480_s0 + $0x3c8] sm:$0xff] }
  0xd9   :  { %3470 = vmatprep.mubr.msk.f32.mxu0 %vm274_vm1, %v118_v22  ;;  %3662 = vmatprep.mubr.msk.f32.mxu1 %vm274_vm1, %v246_v23  ;;  %v263_v21 = vld [vmem:[%s5480_s0 + $0x7c8] sm:$0xff]  ;;  %v136_v22 = vld [vmem:[%s5480_s0 + $0x3d0] sm:$0xff] }
  0xda   :  { %v264_v23 = vld [vmem:[%s5480_s0 + $0x7d0] sm:$0xff] }
  0xdc   :  { %3471 = vmatmul.mubr.msk.f32.gmra.mrb[104].mxu0 %vm274_vm1, %v119_v24  ;;  %3663 = vmatmul.mubr.msk.f32.gmra.mrb[104].mxu1 %vm274_vm1, %v247_v25 }
  0xdd   :  { %3473 = vmatprep.mubr.msk.f32.mxu0 %vm274_vm1, %v120_v26  ;;  %3665 = vmatprep.mubr.msk.f32.mxu1 %vm274_vm1, %v248_v27 }
  0xdf   :  { %v4614_v32 = vpop.f32.mrb[0].mxu0  ;;  %v4616_v33 = vpop.f32.mrb[0].mxu1 }
  0xe0   :  { %v4618_v34 = vpop.f32.mrb[1].mxu0  ;;  %3474 = vmatmul.mubr.msk.f32.gmra.mrb[106].mxu0 %vm274_vm1, %v121_v28  ;;  %v4621_v35 = vpop.f32.mrb[1].mxu1  ;;  %3666 = vmatmul.mubr.msk.f32.gmra.mrb[106].mxu1 %vm274_vm1, %v249_v29  ;;  %v137_v28 = vld [vmem:[%s5480_s0 + $0x3d8] sm:$0xff] }
  0xe1   :  { %3476 = vmatprep.mubr.msk.f32.mxu0 %vm274_vm1, %v122_v30  ;;  %3668 = vmatprep.mubr.msk.f32.mxu1 %vm274_vm1, %v250_v31  ;;  %v265_v29 = vld [vmem:[%s5480_s0 + $0x7d8] sm:$0xff]  ;;  %v138_v30 = vld [vmem:[%s5480_s0 + $0x3e0] sm:$0xff] }
  0xe2   :  { %v266_v31 = vld [vmem:[%s5480_s0 + $0x7e0] sm:$0xff] }
  0xe3   :  { %v4638_v40 = vpop.f32.mrb[2].mxu0  ;;  %v4640_v41 = vpop.f32.mrb[2].mxu1 }
  0xe4   :  { %v4642_v42 = vpop.f32.mrb[3].mxu0  ;;  %3477 = vmatmul.mubr.msk.f32.gmra.mrb[108].mxu0 %vm274_vm1, %v123_v36  ;;  %v4645_v43 = vpop.f32.mrb[3].mxu1  ;;  %3669 = vmatmul.mubr.msk.f32.gmra.mrb[108].mxu1 %vm274_vm1, %v251_v37 }
  0xe5   :  { %3479 = vmatprep.mubr.msk.f32.mxu0 %vm274_vm1, %v124_v38  ;;  %3671 = vmatprep.mubr.msk.f32.mxu1 %vm274_vm1, %v252_v39 }
  0xe7   :  { %v4662_v48 = vpop.f32.mrb[4].mxu0  ;;  %v4664_v49 = vpop.f32.mrb[4].mxu1 }
  0xe8   :  { %v4666_v50 = vpop.f32.mrb[5].mxu0  ;;  %3480 = vmatmul.mubr.msk.f32.gmra.mrb[110].mxu0 %vm274_vm1, %v125_v44  ;;  %v4669_v51 = vpop.f32.mrb[5].mxu1  ;;  %3672 = vmatmul.mubr.msk.f32.gmra.mrb[110].mxu1 %vm274_vm1, %v253_v45  ;;  %v139_v44 = vld [vmem:[%s5480_s0 + $0x3e8] sm:$0xff] }
  0xe9   :  { %3482 = vmatprep.mubr.msk.f32.mxu0 %vm274_vm1, %v126_v46  ;;  %3674 = vmatprep.mubr.msk.f32.mxu1 %vm274_vm1, %v254_v47  ;;  %v267_v45 = vld [vmem:[%s5480_s0 + $0x7e8] sm:$0xff]  ;;  %v140_v46 = vld [vmem:[%s5480_s0 + $0x3f0] sm:$0xff] }
  0xea   :  { %v268_v47 = vld [vmem:[%s5480_s0 + $0x7f0] sm:$0xff] }
  0xeb   :  { %v4686_v56 = vpop.f32.mrb[6].mxu0  ;;  %v4688_v57 = vpop.f32.mrb[6].mxu1 }
  0xec   :  { %v4690_v58 = vpop.f32.mrb[7].mxu0  ;;  %3483 = vmatmul.mubr.msk.f32.gmra.mrb[112].mxu0 %vm274_vm1, %v127_v52  ;;  %v4693_v59 = vpop.f32.mrb[7].mxu1  ;;  %3675 = vmatmul.mubr.msk.f32.gmra.mrb[112].mxu1 %vm274_vm1, %v255_v53 }
  0xed   :  { %3485 = vmatprep.mubr.msk.f32.mxu0 %vm274_vm1, %v128_v54  ;;  %3677 = vmatprep.mubr.msk.f32.mxu1 %vm274_vm1, %v256_v55 }
  0xef   :  { %v4710_v0 = vpop.f32.mrb[8].mxu0  ;;  %v4712_v1 = vpop.f32.mrb[8].mxu1 }
  0xf0   :  { %v4714_v2 = vpop.f32.mrb[9].mxu0  ;;  %3486 = vmatmul.mubr.msk.f32.gmra.mrb[114].mxu0 %vm274_vm1, %v129_v60  ;;  %v4717_v3 = vpop.f32.mrb[9].mxu1  ;;  %3678 = vmatmul.mubr.msk.f32.gmra.mrb[114].mxu1 %vm274_vm1, %v257_v61  ;;  %v141_v60 = vld [vmem:[%s5480_s0 + $0x3f8] sm:$0xff] }
  0xf1   :  { %3488 = vmatprep.mubr.msk.f32.mxu0 %vm274_vm1, %v130_v62  ;;  %3680 = vmatprep.mubr.msk.f32.mxu1 %vm274_vm1, %v258_v63  ;;  %v269_v61 = vld [vmem:[%s5480_s0 + $0x7f8] sm:$0xff] }
  0xf3   :  { %v4734_v8 = vpop.f32.mrb[10].mxu0  ;;  %v4736_v9 = vpop.f32.mrb[10].mxu1 }
  0xf4   :  { %v4738_v10 = vpop.f32.mrb[11].mxu0  ;;  %3489 = vmatmul.mubr.msk.f32.gmra.mrb[116].mxu0 %vm274_vm1, %v131_v4  ;;  %v4741_v11 = vpop.f32.mrb[11].mxu1  ;;  %3681 = vmatmul.mubr.msk.f32.gmra.mrb[116].mxu1 %vm274_vm1, %v259_v5 }
  0xf5   :  { %3491 = vmatprep.mubr.msk.f32.mxu0 %vm274_vm1, %v132_v6  ;;  %3683 = vmatprep.mubr.msk.f32.mxu1 %vm274_vm1, %v260_v7 }
  0xf7   :  { %v4758_v16 = vpop.f32.mrb[12].mxu0  ;;  %v4760_v17 = vpop.f32.mrb[12].mxu1 }
  0xf8   :  { %v4762_v18 = vpop.f32.mrb[13].mxu0  ;;  %3492 = vmatmul.mubr.msk.f32.gmra.mrb[118].mxu0 %vm274_vm1, %v133_v12  ;;  %v4765_v19 = vpop.f32.mrb[13].mxu1  ;;  %3684 = vmatmul.mubr.msk.f32.gmra.mrb[118].mxu1 %vm274_vm1, %v261_v13 }
  0xf9   :  { %3494 = vmatprep.mubr.msk.f32.mxu0 %vm274_vm1, %v134_v14  ;;  %3686 = vmatprep.mubr.msk.f32.mxu1 %vm274_vm1, %v262_v15 }
  0xfb   :  { %v4782_v24 = vpop.f32.mrb[14].mxu0  ;;  %v4784_v25 = vpop.f32.mrb[14].mxu1 }
  0xfc   :  { %v4786_v26 = vpop.f32.mrb[15].mxu0  ;;  %3495 = vmatmul.mubr.msk.f32.gmra.mrb[120].mxu0 %vm274_vm1, %v135_v20  ;;  %v4789_v27 = vpop.f32.mrb[15].mxu1  ;;  %3687 = vmatmul.mubr.msk.f32.gmra.mrb[120].mxu1 %vm274_vm1, %v263_v21 }
  0xfd   :  { %3497 = vmatprep.mubr.msk.f32.mxu0 %vm274_vm1, %v136_v22  ;;  %3689 = vmatprep.mubr.msk.f32.mxu1 %vm274_vm1, %v264_v23 }
  0xff   :  { %v4806_v36 = vpop.f32.mrb[16].mxu0  ;;  %v4808_v37 = vpop.f32.mrb[16].mxu1 }
 0x100   :  { %v4810_v38 = vpop.f32.mrb[17].mxu0  ;;  %3498 = vmatmul.mubr.msk.f32.gmra.mrb[122].mxu0 %vm274_vm1, %v137_v28  ;;  %v4813_v39 = vpop.f32.mrb[17].mxu1  ;;  %3690 = vmatmul.mubr.msk.f32.gmra.mrb[122].mxu1 %vm274_vm1, %v265_v29 }
 0x101   :  { %3500 = vmatprep.mubr.msk.f32.mxu0 %vm274_vm1, %v138_v30  ;;  %3692 = vmatprep.mubr.msk.f32.mxu1 %vm274_vm1, %v266_v31 }
 0x103   :  { %v4830_v52 = vpop.f32.mrb[18].mxu0  ;;  %v4832_v53 = vpop.f32.mrb[18].mxu1 }
 0x104   :  { %v4834_v54 = vpop.f32.mrb[19].mxu0  ;;  %3501 = vmatmul.mubr.msk.f32.gmra.mrb[124].mxu0 %vm274_vm1, %v139_v44  ;;  %v4837_v55 = vpop.f32.mrb[19].mxu1  ;;  %3693 = vmatmul.mubr.msk.f32.gmra.mrb[124].mxu1 %vm274_vm1, %v267_v45 }
 0x105   :  { %3503 = vmatprep.mubr.msk.f32.mxu0 %vm274_vm1, %v140_v46  ;;  %3695 = vmatprep.mubr.msk.f32.mxu1 %vm274_vm1, %v268_v47 }
 0x107   :  { %v4848_v62 = vpop.f32.mrb[20].mxu0  ;;  %v4850_v63 = vpop.f32.mrb[20].mxu1 }
 0x108   :  { %v4852_v4 = vpop.f32.mrb[21].mxu0  ;;  %3504 = vmatmul.mubr.msk.f32.gmra.mrb[126].mxu0 %vm274_vm1, %v141_v60  ;;  %v4855_v5 = vpop.f32.mrb[21].mxu1  ;;  %3696 = vmatmul.mubr.msk.f32.gmra.mrb[126].mxu1 %vm274_vm1, %v269_v61 }
 0x10b   :  { %v4858_v6 = vpop.f32.mrb[22].mxu0  ;;  %v4860_v7 = vpop.f32.mrb[22].mxu1 }
 0x10c   :  { %v4862_v12 = vpop.f32.mrb[23].mxu0  ;;  %v4864_v13 = vpop.f32.mrb[23].mxu1 }
 0x10f   :  { %v4866_v14 = vpop.f32.mrb[24].mxu0  ;;  %v4868_v15 = vpop.f32.mrb[24].mxu1 }
 0x110   :  { %5483 = vst [vmem:[#allocation2_spill] sm:$0xff] %v4866_v14  ;;  %5484 = vst [vmem:[#allocation3_spill] sm:$0xff] %v4868_v15  ;;  %v4870_v20 = vpop.f32.mrb[25].mxu0  ;;  %v4872_v21 = vpop.f32.mrb[25].mxu1 }
 0x111   :  { %5485 = vst [vmem:[#allocation4_spill] sm:$0xff] %v4870_v20  ;;  %5486 = vst [vmem:[#allocation5_spill] sm:$0xff] %v4872_v21 }
 0x113   :  { %v4874_v22 = vpop.f32.mrb[26].mxu0  ;;  %v4876_v23 = vpop.f32.mrb[26].mxu1 }
 0x114   :  { %5487 = vst [vmem:[#allocation6_spill] sm:$0xff] %v4874_v22  ;;  %5488 = vst [vmem:[#allocation7_spill] sm:$0xff] %v4876_v23  ;;  %v4878_v28 = vpop.f32.mrb[27].mxu0  ;;  %v4880_v29 = vpop.f32.mrb[27].mxu1 }
 0x115   :  { %5489 = vst [vmem:[#allocation8_spill] sm:$0xff] %v4878_v28  ;;  %5490 = vst [vmem:[#allocation9_spill] sm:$0xff] %v4880_v29 }
 0x117   :  { %v4882_v30 = vpop.f32.mrb[28].mxu0  ;;  %v4884_v31 = vpop.f32.mrb[28].mxu1 }
 0x118   :  { %5491 = vst [vmem:[#allocation10_spill] sm:$0xff] %v4882_v30  ;;  %5492 = vst [vmem:[#allocation11_spill] sm:$0xff] %v4884_v31  ;;  %v4886_v44 = vpop.f32.mrb[29].mxu0  ;;  %v4888_v45 = vpop.f32.mrb[29].mxu1 }
 0x119   :  { %5493 = vst [vmem:[#allocation12_spill] sm:$0xff] %v4886_v44  ;;  %5494 = vst [vmem:[#allocation13_spill] sm:$0xff] %v4888_v45 }
 0x11b   :  { %v4890_v46 = vpop.f32.mrb[30].mxu0  ;;  %v4892_v47 = vpop.f32.mrb[30].mxu1 }
 0x11c   :  { %5495 = vst [vmem:[#allocation14_spill] sm:$0xff] %v4890_v46  ;;  %5496 = vst [vmem:[#allocation15_spill] sm:$0xff] %v4892_v47  ;;  %v4894_v60 = vpop.f32.mrb[31].mxu0  ;;  %v4896_v61 = vpop.f32.mrb[31].mxu1 }
 0x11d   :  { %5497 = vst [vmem:[#allocation16_spill] sm:$0xff] %v4894_v60  ;;  %5498 = vst [vmem:[#allocation17_spill] sm:$0xff] %v4896_v61 }
 0x11f   :  { %v4898_v23 = vpop.f32.mrb[32].mxu0  ;;  %v4900_v28 = vpop.f32.mrb[32].mxu1 }
 0x120   :  { %5499 = vst [vmem:[#allocation18_spill] sm:$0xff] %v4898_v23  ;;  %5500 = vst [vmem:[#allocation19_spill] sm:$0xff] %v4900_v28  ;;  %v4902_v29 = vpop.f32.mrb[33].mxu0  ;;  %v4904_v30 = vpop.f32.mrb[33].mxu1 }
 0x121   :  { %5501 = vst [vmem:[#allocation20_spill] sm:$0xff] %v4902_v29  ;;  %5502 = vst [vmem:[#allocation21_spill] sm:$0xff] %v4904_v30 }
 0x123   :  { %v4906_v31 = vpop.f32.mrb[34].mxu0  ;;  %v4908_v44 = vpop.f32.mrb[34].mxu1 }
 0x124   :  { %5503 = vst [vmem:[#allocation22_spill] sm:$0xff] %v4906_v31  ;;  %5504 = vst [vmem:[#allocation23_spill] sm:$0xff] %v4908_v44  ;;  %v4910_v45 = vpop.f32.mrb[35].mxu0  ;;  %v4912_v46 = vpop.f32.mrb[35].mxu1 }
 0x125   :  { %5505 = vst [vmem:[#allocation24_spill] sm:$0xff] %v4910_v45  ;;  %5506 = vst [vmem:[#allocation25_spill] sm:$0xff] %v4912_v46 }
 0x127   :  { %v4914_v47 = vpop.f32.mrb[36].mxu0  ;;  %v4916_v60 = vpop.f32.mrb[36].mxu1 }
 0x128   :  { %5507 = vst [vmem:[#allocation26_spill] sm:$0xff] %v4914_v47  ;;  %5508 = vst [vmem:[#allocation27_spill] sm:$0xff] %v4916_v60  ;;  %v4918_v61 = vpop.f32.mrb[37].mxu0  ;;  %v4920_v23 = vpop.f32.mrb[37].mxu1 }
 0x129   :  { %5509 = vst [vmem:[#allocation28_spill] sm:$0xff] %v4918_v61  ;;  %5510 = vst [vmem:[#allocation29_spill] sm:$0xff] %v4920_v23 }
 0x12b   :  { %v4922_v28 = vpop.f32.mrb[38].mxu0  ;;  %v4924_v29 = vpop.f32.mrb[38].mxu1 }
 0x12c   :  { %5511 = vst [vmem:[#allocation30_spill] sm:$0xff] %v4922_v28  ;;  %5512 = vst [vmem:[#allocation31_spill] sm:$0xff] %v4924_v29  ;;  %v4926_v30 = vpop.f32.mrb[39].mxu0  ;;  %v4928_v31 = vpop.f32.mrb[39].mxu1 }
 0x12d   :  { %5513 = vst [vmem:[#allocation32_spill] sm:$0xff] %v4926_v30  ;;  %5514 = vst [vmem:[#allocation33_spill] sm:$0xff] %v4928_v31 }
 0x12f   :  { %v4930_v44 = vpop.f32.mrb[40].mxu0  ;;  %v4932_v45 = vpop.f32.mrb[40].mxu1 }
 0x130   :  { %5515 = vst [vmem:[#allocation34_spill] sm:$0xff] %v4930_v44  ;;  %5516 = vst [vmem:[#allocation35_spill] sm:$0xff] %v4932_v45  ;;  %v4934_v46 = vpop.f32.mrb[41].mxu0  ;;  %v4936_v47 = vpop.f32.mrb[41].mxu1 }
 0x131   :  { %5517 = vst [vmem:[#allocation36_spill] sm:$0xff] %v4934_v46  ;;  %5518 = vst [vmem:[#allocation37_spill] sm:$0xff] %v4936_v47 }
 0x133   :  { %v4938_v60 = vpop.f32.mrb[42].mxu0  ;;  %v4940_v61 = vpop.f32.mrb[42].mxu1 }
 0x134   :  { %5519 = vst [vmem:[#allocation38_spill] sm:$0xff] %v4938_v60  ;;  %5520 = vst [vmem:[#allocation39_spill] sm:$0xff] %v4940_v61  ;;  %v4942_v23 = vpop.f32.mrb[43].mxu0  ;;  %v4944_v28 = vpop.f32.mrb[43].mxu1 }
 0x135   :  { %5521 = vst [vmem:[#allocation40_spill] sm:$0xff] %v4942_v23  ;;  %5522 = vst [vmem:[#allocation41_spill] sm:$0xff] %v4944_v28 }
 0x137   :  { %v4946_v29 = vpop.f32.mrb[44].mxu0  ;;  %v4948_v30 = vpop.f32.mrb[44].mxu1 }
 0x138   :  { %5523 = vst [vmem:[#allocation42_spill] sm:$0xff] %v4946_v29  ;;  %5524 = vst [vmem:[#allocation43_spill] sm:$0xff] %v4948_v30  ;;  %v4950_v31 = vpop.f32.mrb[45].mxu0  ;;  %v4952_v44 = vpop.f32.mrb[45].mxu1 }
 0x139   :  { %5525 = vst [vmem:[#allocation44_spill] sm:$0xff] %v4950_v31  ;;  %5526 = vst [vmem:[#allocation45_spill] sm:$0xff] %v4952_v44 }
 0x13b   :  { %v4954_v45 = vpop.f32.mrb[46].mxu0  ;;  %v4956_v46 = vpop.f32.mrb[46].mxu1 }
 0x13c   :  { %5527 = vst [vmem:[#allocation46_spill] sm:$0xff] %v4954_v45  ;;  %5528 = vst [vmem:[#allocation47_spill] sm:$0xff] %v4956_v46  ;;  %v4958_v47 = vpop.f32.mrb[47].mxu0  ;;  %v4960_v60 = vpop.f32.mrb[47].mxu1 }
 0x13d   :  { %5529 = vst [vmem:[#allocation48_spill] sm:$0xff] %v4958_v47  ;;  %5530 = vst [vmem:[#allocation49_spill] sm:$0xff] %v4960_v60 }
 0x13f   :  { %v4962_v61 = vpop.f32.mrb[48].mxu0  ;;  %v4964_v23 = vpop.f32.mrb[48].mxu1 }
 0x140   :  { %5531 = vst [vmem:[#allocation50_spill] sm:$0xff] %v4962_v61  ;;  %5532 = vst [vmem:[#allocation51_spill] sm:$0xff] %v4964_v23  ;;  %v4966_v28 = vpop.f32.mrb[49].mxu0  ;;  %v4968_v29 = vpop.f32.mrb[49].mxu1 }
 0x141   :  { %5533 = vst [vmem:[#allocation52_spill] sm:$0xff] %v4966_v28  ;;  %5534 = vst [vmem:[#allocation53_spill] sm:$0xff] %v4968_v29 }
 0x143   :  { %v4970_v30 = vpop.f32.mrb[50].mxu0  ;;  %v4972_v31 = vpop.f32.mrb[50].mxu1 }
 0x144   :  { %5535 = vst [vmem:[#allocation54_spill] sm:$0xff] %v4970_v30  ;;  %5536 = vst [vmem:[#allocation55_spill] sm:$0xff] %v4972_v31  ;;  %v4974_v44 = vpop.f32.mrb[51].mxu0  ;;  %v4976_v45 = vpop.f32.mrb[51].mxu1 }
 0x145   :  { %5537 = vst [vmem:[#allocation56_spill] sm:$0xff] %v4974_v44  ;;  %5538 = vst [vmem:[#allocation57_spill] sm:$0xff] %v4976_v45 }
 0x147   :  { %v4978_v46 = vpop.f32.mrb[52].mxu0  ;;  %v4980_v47 = vpop.f32.mrb[52].mxu1 }
 0x148   :  { %5539 = vst [vmem:[#allocation58_spill] sm:$0xff] %v4978_v46  ;;  %5540 = vst [vmem:[#allocation59_spill] sm:$0xff] %v4980_v47  ;;  %v4982_v60 = vpop.f32.mrb[53].mxu0  ;;  %v4984_v61 = vpop.f32.mrb[53].mxu1 }
 0x149   :  { %5541 = vst [vmem:[#allocation60_spill] sm:$0xff] %v4982_v60  ;;  %5542 = vst [vmem:[#allocation61_spill] sm:$0xff] %v4984_v61 }
 0x14b   :  { %v4986_v23 = vpop.f32.mrb[54].mxu0  ;;  %v4988_v28 = vpop.f32.mrb[54].mxu1 }
 0x14c   :  { %5543 = vst [vmem:[#allocation62_spill] sm:$0xff] %v4986_v23  ;;  %5544 = vst [vmem:[#allocation63_spill] sm:$0xff] %v4988_v28  ;;  %v4990_v29 = vpop.f32.mrb[55].mxu0  ;;  %v4992_v30 = vpop.f32.mrb[55].mxu1 }
 0x14d   :  { %5545 = vst [vmem:[#allocation64_spill] sm:$0xff] %v4990_v29  ;;  %5546 = vst [vmem:[#allocation65_spill] sm:$0xff] %v4992_v30 }
 0x14f   :  { %v4994_v31 = vpop.f32.mrb[56].mxu0  ;;  %v4996_v44 = vpop.f32.mrb[56].mxu1 }
 0x150   :  { %5547 = vst [vmem:[#allocation66_spill] sm:$0xff] %v4994_v31  ;;  %5548 = vst [vmem:[#allocation67_spill] sm:$0xff] %v4996_v44  ;;  %v4998_v45 = vpop.f32.mrb[57].mxu0  ;;  %v5000_v46 = vpop.f32.mrb[57].mxu1 }
 0x151   :  { %5549 = vst [vmem:[#allocation68_spill] sm:$0xff] %v4998_v45  ;;  %5550 = vst [vmem:[#allocation69_spill] sm:$0xff] %v5000_v46 }
 0x153   :  { %v5002_v47 = vpop.f32.mrb[58].mxu0  ;;  %v5004_v60 = vpop.f32.mrb[58].mxu1 }
 0x154   :  { %5551 = vst [vmem:[#allocation70_spill] sm:$0xff] %v5002_v47  ;;  %5552 = vst [vmem:[#allocation71_spill] sm:$0xff] %v5004_v60  ;;  %v5006_v61 = vpop.f32.mrb[59].mxu0  ;;  %v5008_v23 = vpop.f32.mrb[59].mxu1 }
 0x155   :  { %5553 = vst [vmem:[#allocation72_spill] sm:$0xff] %v5006_v61  ;;  %5554 = vst [vmem:[#allocation73_spill] sm:$0xff] %v5008_v23 }
 0x157   :  { %v5010_v28 = vpop.f32.mrb[60].mxu0  ;;  %v5012_v29 = vpop.f32.mrb[60].mxu1 }
 0x158   :  { %5555 = vst [vmem:[#allocation74_spill] sm:$0xff] %v5010_v28  ;;  %5556 = vst [vmem:[#allocation75_spill] sm:$0xff] %v5012_v29  ;;  %v5014_v30 = vpop.f32.mrb[61].mxu0  ;;  %v5016_v31 = vpop.f32.mrb[61].mxu1 }
 0x159   :  { %5557 = vst [vmem:[#allocation76_spill] sm:$0xff] %v5014_v30  ;;  %5558 = vst [vmem:[#allocation77_spill] sm:$0xff] %v5016_v31  ;;  %v5031_v31 = vld [vmem:[%s5481_s2] ss:$0 sm:$0xff] }
 0x15b   :  { %v5018_v44 = vpop.f32.mrb[62].mxu0  ;;  %v5020_v45 = vpop.f32.mrb[62].mxu1 }
 0x15c   :  { %5559 = vst [vmem:[#allocation78_spill] sm:$0xff] %v5018_v44  ;;  %5560 = vst [vmem:[#allocation79_spill] sm:$0xff] %v5020_v45  ;;  %v5022_v46 = vpop.f32.mrb[63].mxu0  ;;  %v5024_v47 = vpop.f32.mrb[63].mxu1 }
 0x15d   :  { %5561 = vst [vmem:[#allocation80_spill] sm:$0xff] %v5022_v46  ;;  %5562 = vst [vmem:[#allocation81_spill] sm:$0xff] %v5024_v47 }
 0x15f   :  { %v3412_v60 = vpop.f32.mrb[64].mxu0  ;;  %v3604_v61 = vpop.f32.mrb[64].mxu1 }
 0x160   :  { %v2393_v23 = vmax.f32 %v4614_v32, %v3412_v60  ;;  %v2457_v28 = vmax.f32 %v4616_v33, %v3604_v61  ;;  %v1433_v22 = vpop.f32.mrb[65].mxu0  ;;  %v2073_v29 = vpop.f32.mrb[65].mxu1 }
 0x161   :  { %v2392_v44 = vmax.f32 %v4618_v34, %v1433_v22  ;;  %v2456_v45 = vmax.f32 %v4621_v35, %v2073_v29 }
 0x162   :  { %v2521_v46 = vmax.f32 %v2393_v23, %v2457_v28 }
 0x163   :  { %v2520_v30 = vmax.f32 %v2392_v44, %v2456_v45  ;;  %v3415_v47 = vpop.f32.mrb[66].mxu0  ;;  %v3607_v21 = vpop.f32.mrb[66].mxu1 }
 0x164   :  { %v2592_v20 = vadd.f32 %v5031_v31, %v2521_v46  ;;  %v2395_v32 = vmax.f32 %v4638_v40, %v3415_v47  ;;  %v2459_v33 = vmax.f32 %v4640_v41, %v3607_v21  ;;  %v1443_v60 = vpop.f32.mrb[67].mxu0  ;;  %v2083_v61 = vpop.f32.mrb[67].mxu1 }
 0x165   :  { %v2591_v15 = vadd.f32 %v5031_v31, %v2520_v30  ;;  %v2394_v14 = vmax.f32 %v4642_v42, %v1443_v60  ;;  %v2458_v34 = vmax.f32 %v4645_v43, %v2083_v61 }
 0x166   :  { %v2656_v35 = vmax.f32 %v2592_v20, 0.0  ;;  %v2523_v22 = vmax.f32 %v2395_v32, %v2459_v33 }
 0x167   :  { %v2655_v23 = vmax.f32 %v2591_v15, 0.0  ;;  %v2522_v28 = vmax.f32 %v2394_v14, %v2458_v34  ;;  %v3418_v29 = vpop.f32.mrb[68].mxu0  ;;  %v3610_v44 = vpop.f32.mrb[68].mxu1 }
 0x168   :  { %2721 = vst.msk [vmem:[%s5482_s3 + $0x8] sm:$0xff] %vm2719_vm4, %v2656_v35  ;;  %v2594_v40 = vadd.f32 %v5031_v31, %v2523_v22  ;;  %v2397_v41 = vmax.f32 %v4662_v48, %v3418_v29  ;;  %v2461_v21 = vmax.f32 %v4664_v49, %v3610_v44  ;;  %v1453_v42 = vpop.f32.mrb[69].mxu0  ;;  %v2093_v30 = vpop.f32.mrb[69].mxu1 }
 0x169   :  { %2720 = vst.msk [vmem:[%s5482_s3] sm:$0xff] %vm2719_vm4, %v2655_v23  ;;  %v2593_v43 = vadd.f32 %v5031_v31, %v2522_v28  ;;  %v2396_v14 = vmax.f32 %v4666_v50, %v1453_v42  ;;  %v2460_v15 = vmax.f32 %v4669_v51, %v2093_v30 }
 0x16a   :  { %v2658_v20 = vmax.f32 %v2594_v40, 0.0  ;;  %v2525_v45 = vmax.f32 %v2397_v41, %v2461_v21 }
 0x16b   :  { %v2657_v46 = vmax.f32 %v2593_v43, 0.0  ;;  %v2524_v47 = vmax.f32 %v2396_v14, %v2460_v15  ;;  %v3421_v48 = vpop.f32.mrb[70].mxu0  ;;  %v3613_v32 = vpop.f32.mrb[70].mxu1 }
 0x16c   :  { %2723 = vst.msk [vmem:[%s5482_s3 + $0x18] sm:$0xff] %vm2719_vm4, %v2658_v20  ;;  %v2596_v49 = vadd.f32 %v5031_v31, %v2525_v45  ;;  %v2399_v33 = vmax.f32 %v4686_v56, %v3421_v48  ;;  %v2463_v60 = vmax.f32 %v4688_v57, %v3613_v32  ;;  %v1463_v50 = vpop.f32.mrb[71].mxu0  ;;  %v2103_v61 = vpop.f32.mrb[71].mxu1 }
 0x16d   :  { %2722 = vst.msk [vmem:[%s5482_s3 + $0x10] sm:$0xff] %vm2719_vm4, %v2657_v46  ;;  %v2595_v51 = vadd.f32 %v5031_v31, %v2524_v47  ;;  %v2398_v34 = vmax.f32 %v4690_v58, %v1463_v50  ;;  %v2462_v35 = vmax.f32 %v4693_v59, %v2103_v61 }
 0x16e   :  { %v2660_v22 = vmax.f32 %v2596_v49, 0.0  ;;  %v2527_v23 = vmax.f32 %v2399_v33, %v2463_v60 }
 0x16f   :  { %v2659_v28 = vmax.f32 %v2595_v51, 0.0  ;;  %v2526_v29 = vmax.f32 %v2398_v34, %v2462_v35  ;;  %v3424_v56 = vpop.f32.mrb[72].mxu0  ;;  %v3616_v44 = vpop.f32.mrb[72].mxu1 }
 0x170   :  { %2725 = vst.msk [vmem:[%s5482_s3 + $0x28] sm:$0xff] %vm2719_vm4, %v2660_v22  ;;  %v2598_v57 = vadd.f32 %v5031_v31, %v2527_v23  ;;  %v2401_v40 = vmax.f32 %v4710_v0, %v3424_v56  ;;  %v2465_v41 = vmax.f32 %v4712_v1, %v3616_v44  ;;  %v1473_v58 = vpop.f32.mrb[73].mxu0  ;;  %v2113_v21 = vpop.f32.mrb[73].mxu1 }
 0x171   :  { %2724 = vst.msk [vmem:[%s5482_s3 + $0x20] sm:$0xff] %vm2719_vm4, %v2659_v28  ;;  %v2597_v59 = vadd.f32 %v5031_v31, %v2526_v29  ;;  %v2400_v42 = vmax.f32 %v4714_v2, %v1473_v58  ;;  %v2464_v30 = vmax.f32 %v4717_v3, %v2113_v21 }
 0x172   :  { %v2662_v43 = vmax.f32 %v2598_v57, 0.0  ;;  %v2529_v14 = vmax.f32 %v2401_v40, %v2465_v41 }
 0x173   :  { %v2661_v15 = vmax.f32 %v2597_v59, 0.0  ;;  %v2528_v20 = vmax.f32 %v2400_v42, %v2464_v30  ;;  %v3427_v0 = vpop.f32.mrb[74].mxu0  ;;  %v3619_v45 = vpop.f32.mrb[74].mxu1 }
 0x174   :  { %2727 = vst.msk [vmem:[%s5482_s3 + $0x38] sm:$0xff] %vm2719_vm4, %v2662_v43  ;;  %v2600_v1 = vadd.f32 %v5031_v31, %v2529_v14  ;;  %v2403_v46 = vmax.f32 %v4734_v8, %v3427_v0  ;;  %v2467_v47 = vmax.f32 %v4736_v9, %v3619_v45  ;;  %v1483_v2 = vpop.f32.mrb[75].mxu0  ;;  %v2123_v48 = vpop.f32.mrb[75].mxu1 }
 0x175   :  { %2726 = vst.msk [vmem:[%s5482_s3 + $0x30] sm:$0xff] %vm2719_vm4, %v2661_v15  ;;  %v2599_v3 = vadd.f32 %v5031_v31, %v2528_v20  ;;  %v2402_v32 = vmax.f32 %v4738_v10, %v1483_v2  ;;  %v2466_v49 = vmax.f32 %v4741_v11, %v2123_v48 }
 0x176   :  { %v2664_v33 = vmax.f32 %v2600_v1, 0.0  ;;  %v2531_v60 = vmax.f32 %v2403_v46, %v2467_v47 }
 0x177   :  { %v2663_v50 = vmax.f32 %v2599_v3, 0.0  ;;  %v2530_v61 = vmax.f32 %v2402_v32, %v2466_v49  ;;  %v3430_v8 = vpop.f32.mrb[76].mxu0  ;;  %v3622_v51 = vpop.f32.mrb[76].mxu1 }
 0x178   :  { %2729 = vst.msk [vmem:[%s5482_s3 + $0x48] sm:$0xff] %vm2719_vm4, %v2664_v33  ;;  %v2602_v9 = vadd.f32 %v5031_v31, %v2531_v60  ;;  %v2405_v34 = vmax.f32 %v4758_v16, %v3430_v8  ;;  %v2469_v35 = vmax.f32 %v4760_v17, %v3622_v51  ;;  %v1493_v10 = vpop.f32.mrb[77].mxu0  ;;  %v2133_v22 = vpop.f32.mrb[77].mxu1 }
 0x179   :  { %2728 = vst.msk [vmem:[%s5482_s3 + $0x40] sm:$0xff] %vm2719_vm4, %v2663_v50  ;;  %v2601_v11 = vadd.f32 %v5031_v31, %v2530_v61  ;;  %v2404_v23 = vmax.f32 %v4762_v18, %v1493_v10  ;;  %v2468_v28 = vmax.f32 %v4765_v19, %v2133_v22 }
 0x17a   :  { %v2666_v29 = vmax.f32 %v2602_v9, 0.0  ;;  %v2533_v56 = vmax.f32 %v2405_v34, %v2469_v35 }
 0x17b   :  { %v2665_v44 = vmax.f32 %v2601_v11, 0.0  ;;  %v2532_v57 = vmax.f32 %v2404_v23, %v2468_v28  ;;  %v3433_v16 = vpop.f32.mrb[78].mxu0  ;;  %v3625_v40 = vpop.f32.mrb[78].mxu1 }
 0x17c   :  { %2731 = vst.msk [vmem:[%s5482_s3 + $0x58] sm:$0xff] %vm2719_vm4, %v2666_v29  ;;  %v2604_v17 = vadd.f32 %v5031_v31, %v2533_v56  ;;  %v2407_v41 = vmax.f32 %v4782_v24, %v3433_v16  ;;  %v2471_v58 = vmax.f32 %v4784_v25, %v3625_v40  ;;  %v1503_v18 = vpop.f32.mrb[79].mxu0  ;;  %v2143_v21 = vpop.f32.mrb[79].mxu1 }
 0x17d   :  { %2730 = vst.msk [vmem:[%s5482_s3 + $0x50] sm:$0xff] %vm2719_vm4, %v2665_v44  ;;  %v2603_v19 = vadd.f32 %v5031_v31, %v2532_v57  ;;  %v2406_v59 = vmax.f32 %v4786_v26, %v1503_v18  ;;  %v2470_v42 = vmax.f32 %v4789_v27, %v2143_v21 }
 0x17e   :  { %v2668_v30 = vmax.f32 %v2604_v17, 0.0  ;;  %v2535_v43 = vmax.f32 %v2407_v41, %v2471_v58 }
 0x17f   :  { %v2667_v14 = vmax.f32 %v2603_v19, 0.0  ;;  %v2534_v15 = vmax.f32 %v2406_v59, %v2470_v42  ;;  %v3436_v24 = vpop.f32.mrb[80].mxu0  ;;  %v3628_v20 = vpop.f32.mrb[80].mxu1 }
 0x180   :  { %2733 = vst.msk [vmem:[%s5482_s3 + $0x68] sm:$0xff] %vm2719_vm4, %v2668_v30  ;;  %v2606_v25 = vadd.f32 %v5031_v31, %v2535_v43  ;;  %v2409_v0 = vmax.f32 %v4806_v36, %v3436_v24  ;;  %v2473_v45 = vmax.f32 %v4808_v37, %v3628_v20  ;;  %v1513_v26 = vpop.f32.mrb[81].mxu0  ;;  %v2153_v1 = vpop.f32.mrb[81].mxu1  ;;  %v5564_v24 = vld [vmem:[#allocation3_spill] sm:$0xff] }
 0x181   :  { %2732 = vst.msk [vmem:[%s5482_s3 + $0x60] sm:$0xff] %vm2719_vm4, %v2667_v14  ;;  %v2605_v27 = vadd.f32 %v5031_v31, %v2534_v15  ;;  %v2408_v46 = vmax.f32 %v4810_v38, %v1513_v26  ;;  %v2472_v47 = vmax.f32 %v4813_v39, %v2153_v1  ;;  %v5563_v14 = vld [vmem:[#allocation2_spill] sm:$0xff]  ;;  %v5566_v26 = vld [vmem:[#allocation5_spill] sm:$0xff] }
 0x182   :  { %v2670_v2 = vmax.f32 %v2606_v25, 0.0  ;;  %v2537_v48 = vmax.f32 %v2409_v0, %v2473_v45  ;;  %v5565_v0 = vld [vmem:[#allocation4_spill] sm:$0xff] }
 0x183   :  { %v2669_v3 = vmax.f32 %v2605_v27, 0.0  ;;  %v2536_v32 = vmax.f32 %v2408_v46, %v2472_v47  ;;  %v3439_v36 = vpop.f32.mrb[82].mxu0  ;;  %v3631_v49 = vpop.f32.mrb[82].mxu1 }
 0x184   :  { %2735 = vst.msk [vmem:[%s5482_s3 + $0x78] sm:$0xff] %vm2719_vm4, %v2670_v2  ;;  %v2608_v37 = vadd.f32 %v5031_v31, %v2537_v48  ;;  %v2411_v33 = vmax.f32 %v4830_v52, %v3439_v36  ;;  %v2475_v60 = vmax.f32 %v4832_v53, %v3631_v49  ;;  %v1523_v38 = vpop.f32.mrb[83].mxu0  ;;  %v2163_v50 = vpop.f32.mrb[83].mxu1  ;;  %v5567_v36 = vld [vmem:[#allocation6_spill] sm:$0xff] }
 0x185   :  { %2734 = vst.msk [vmem:[%s5482_s3 + $0x70] sm:$0xff] %vm2719_vm4, %v2669_v3  ;;  %v2607_v39 = vadd.f32 %v5031_v31, %v2536_v32  ;;  %v2410_v61 = vmax.f32 %v4834_v54, %v1523_v38  ;;  %v2474_v8 = vmax.f32 %v4837_v55, %v2163_v50 }
 0x186   :  { %v2672_v51 = vmax.f32 %v2608_v37, 0.0  ;;  %v2539_v9 = vmax.f32 %v2411_v33, %v2475_v60  ;;  %v5568_v37 = vld [vmem:[#allocation7_spill] sm:$0xff] }
 0x187   :  { %v2671_v34 = vmax.f32 %v2607_v39, 0.0  ;;  %v2538_v35 = vmax.f32 %v2410_v61, %v2474_v8  ;;  %v3442_v52 = vpop.f32.mrb[84].mxu0  ;;  %v3634_v10 = vpop.f32.mrb[84].mxu1  ;;  %v5569_v39 = vld [vmem:[#allocation8_spill] sm:$0xff]  ;;  %v5570_v8 = vld [vmem:[#allocation9_spill] sm:$0xff] }
 0x188   :  { %2737 = vst.msk [vmem:[%s5482_s3 + $0x88] sm:$0xff] %vm2719_vm4, %v2672_v51  ;;  %v2610_v53 = vadd.f32 %v5031_v31, %v2539_v9  ;;  %v2413_v22 = vmax.f32 %v4848_v62, %v3442_v52  ;;  %v2477_v11 = vmax.f32 %v4850_v63, %v3634_v10  ;;  %v1533_v54 = vpop.f32.mrb[85].mxu0  ;;  %v2173_v23 = vpop.f32.mrb[85].mxu1 }
 0x189   :  { %2736 = vst.msk [vmem:[%s5482_s3 + $0x80] sm:$0xff] %vm2719_vm4, %v2671_v34  ;;  %v2609_v55 = vadd.f32 %v5031_v31, %v2538_v35  ;;  %v2412_v28 = vmax.f32 %v4852_v4, %v1533_v54  ;;  %v2476_v29 = vmax.f32 %v4855_v5, %v2173_v23  ;;  %v5572_v23 = vld [vmem:[#allocation11_spill] sm:$0xff] }
 0x18a   :  { %v2674_v56 = vmax.f32 %v2610_v53, 0.0  ;;  %v2541_v44 = vmax.f32 %v2413_v22, %v2477_v11  ;;  %v5571_v11 = vld [vmem:[#allocation10_spill] sm:$0xff] }
 0x18b   :  { %v2673_v57 = vmax.f32 %v2609_v55, 0.0  ;;  %v2540_v16 = vmax.f32 %v2412_v28, %v2476_v29  ;;  %v3445_v62 = vpop.f32.mrb[86].mxu0  ;;  %v3637_v40 = vpop.f32.mrb[86].mxu1 }
 0x18c   :  { %2739 = vst.msk [vmem:[%s5482_s3 + $0x98] sm:$0xff] %vm2719_vm4, %v2674_v56  ;;  %v2612_v63 = vadd.f32 %v5031_v31, %v2541_v44  ;;  %v2415_v17 = vmax.f32 %v4858_v6, %v3445_v62  ;;  %v2479_v41 = vmax.f32 %v4860_v7, %v3637_v40  ;;  %v1543_v4 = vpop.f32.mrb[87].mxu0  ;;  %v2183_v58 = vpop.f32.mrb[87].mxu1  ;;  %v5573_v44 = vld [vmem:[#allocation12_spill] sm:$0xff] }
 0x18d   :  { %2738 = vst.msk [vmem:[%s5482_s3 + $0x90] sm:$0xff] %vm2719_vm4, %v2673_v57  ;;  %v2611_v5 = vadd.f32 %v5031_v31, %v2540_v16  ;;  %v2414_v18 = vmax.f32 %v4862_v12, %v1543_v4  ;;  %v2478_v21 = vmax.f32 %v4864_v13, %v2183_v58  ;;  %v5574_v16 = vld [vmem:[#allocation13_spill] sm:$0xff] }
 0x18e   :  { %v2676_v19 = vmax.f32 %v2612_v63, 0.0  ;;  %v2543_v59 = vmax.f32 %v2415_v17, %v2479_v41 }
 0x18f   :  { %v2675_v42 = vmax.f32 %v2611_v5, 0.0  ;;  %v2542_v30 = vmax.f32 %v2414_v18, %v2478_v21  ;;  %v3448_v6 = vpop.f32.mrb[88].mxu0  ;;  %v3640_v43 = vpop.f32.mrb[88].mxu1  ;;  %v5575_v18 = vld [vmem:[#allocation14_spill] sm:$0xff] }
 0x190   :  { %2741 = vst.msk [vmem:[%s5482_s3 + $0xa8] sm:$0xff] %vm2719_vm4, %v2676_v19  ;;  %v2614_v7 = vadd.f32 %v5031_v31, %v2543_v59  ;;  %v2417_v15 = vmax.f32 %v5563_v14, %v3448_v6  ;;  %v2481_v20 = vmax.f32 %v5564_v24, %v3640_v43  ;;  %v1553_v12 = vpop.f32.mrb[89].mxu0  ;;  %v2193_v25 = vpop.f32.mrb[89].mxu1  ;;  %v5576_v19 = vld [vmem:[#allocation15_spill] sm:$0xff]  ;;  %v5577_v43 = vld [vmem:[#allocation16_spill] sm:$0xff]  ;;  %v5578_v14 = vld [vmem:[#allocation17_spill] sm:$0xff] }
 0x191   :  { %2740 = vst.msk [vmem:[%s5482_s3 + $0xa0] sm:$0xff] %vm2719_vm4, %v2675_v42  ;;  %v2613_v13 = vadd.f32 %v5031_v31, %v2542_v30  ;;  %v2416_v45 = vmax.f32 %v5565_v0, %v1553_v12  ;;  %v2480_v1 = vmax.f32 %v5566_v26, %v2193_v25  ;;  %v5579_v26 = vld [vmem:[#allocation18_spill] sm:$0xff] }
 0x192   :  { %v2678_v27 = vmax.f32 %v2614_v7, 0.0  ;;  %v2545_v46 = vmax.f32 %v2417_v15, %v2481_v20 }
 0x193   :  { %v2677_v47 = vmax.f32 %v2613_v13, 0.0  ;;  %v2544_v2 = vmax.f32 %v2416_v45, %v2480_v1  ;;  %v3451_v48 = vpop.f32.mrb[90].mxu0  ;;  %v3643_v3 = vpop.f32.mrb[90].mxu1 }
 0x194   :  { %2743 = vst.msk [vmem:[%s5482_s3 + $0xb8] sm:$0xff] %vm2719_vm4, %v2678_v27  ;;  %v2616_v32 = vadd.f32 %v5031_v31, %v2545_v46  ;;  %v2419_v49 = vmax.f32 %v5567_v36, %v3451_v48  ;;  %v2483_v33 = vmax.f32 %v5568_v37, %v3643_v3  ;;  %v1563_v60 = vpop.f32.mrb[91].mxu0  ;;  %v2203_v38 = vpop.f32.mrb[91].mxu1  ;;  %v5580_v27 = vld [vmem:[#allocation19_spill] sm:$0xff]  ;;  %v5581_v3 = vld [vmem:[#allocation20_spill] sm:$0xff]  ;;  %v5582_v36 = vld [vmem:[#allocation21_spill] sm:$0xff] }
 0x195   :  { %2742 = vst.msk [vmem:[%s5482_s3 + $0xb0] sm:$0xff] %vm2719_vm4, %v2677_v47  ;;  %v2615_v50 = vadd.f32 %v5031_v31, %v2544_v2  ;;  %v2418_v61 = vmax.f32 %v5569_v39, %v1563_v60  ;;  %v2482_v51 = vmax.f32 %v5570_v8, %v2203_v38  ;;  %v5583_v8 = vld [vmem:[#allocation22_spill] sm:$0xff] }
 0x196   :  { %v2680_v9 = vmax.f32 %v2616_v32, 0.0  ;;  %v2547_v34 = vmax.f32 %v2419_v49, %v2483_v33 }
 0x197   :  { %v2679_v35 = vmax.f32 %v2615_v50, 0.0  ;;  %v2546_v52 = vmax.f32 %v2418_v61, %v2482_v51  ;;  %v3454_v10 = vpop.f32.mrb[92].mxu0  ;;  %v3646_v53 = vpop.f32.mrb[92].mxu1 }
 0x198   :  { %2745 = vst.msk [vmem:[%s5482_s3 + $0xc8] sm:$0xff] %vm2719_vm4, %v2680_v9  ;;  %v2618_v22 = vadd.f32 %v5031_v31, %v2547_v34  ;;  %v2421_v54 = vmax.f32 %v5571_v11, %v3454_v10  ;;  %v2485_v55 = vmax.f32 %v5572_v23, %v3646_v53  ;;  %v1573_v28 = vpop.f32.mrb[93].mxu0  ;;  %v2213_v29 = vpop.f32.mrb[93].mxu1  ;;  %v5584_v9 = vld [vmem:[#allocation23_spill] sm:$0xff]  ;;  %v5585_v53 = vld [vmem:[#allocation24_spill] sm:$0xff]  ;;  %v5586_v11 = vld [vmem:[#allocation25_spill] sm:$0xff] }
 0x199   :  { %2744 = vst.msk [vmem:[%s5482_s3 + $0xc0] sm:$0xff] %vm2719_vm4, %v2679_v35  ;;  %v2617_v56 = vadd.f32 %v5031_v31, %v2546_v52  ;;  %v2420_v57 = vmax.f32 %v5573_v44, %v1573_v28  ;;  %v2484_v62 = vmax.f32 %v5574_v16, %v2213_v29  ;;  %v5587_v16 = vld [vmem:[#allocation26_spill] sm:$0xff] }
 0x19a   :  { %v2682_v40 = vmax.f32 %v2618_v22, 0.0  ;;  %v2549_v63 = vmax.f32 %v2421_v54, %v2485_v55 }
 0x19b   :  { %v2681_v17 = vmax.f32 %v2617_v56, 0.0  ;;  %v2548_v41 = vmax.f32 %v2420_v57, %v2484_v62  ;;  %v3457_v4 = vpop.f32.mrb[94].mxu0  ;;  %v3649_v58 = vpop.f32.mrb[94].mxu1 }
 0x19c   :  { %2747 = vst.msk [vmem:[%s5482_s3 + $0xd8] sm:$0xff] %vm2719_vm4, %v2682_v40  ;;  %v2620_v5 = vadd.f32 %v5031_v31, %v2549_v63  ;;  %v2423_v21 = vmax.f32 %v5575_v18, %v3457_v4  ;;  %v2487_v59 = vmax.f32 %v5576_v19, %v3649_v58  ;;  %v1583_v42 = vpop.f32.mrb[95].mxu0  ;;  %v2223_v30 = vpop.f32.mrb[95].mxu1  ;;  %v5588_v40 = vld [vmem:[#allocation27_spill] sm:$0xff]  ;;  %v5589_v58 = vld [vmem:[#allocation28_spill] sm:$0xff]  ;;  %v5590_v18 = vld [vmem:[#allocation29_spill] sm:$0xff] }
 0x19d   :  { %2746 = vst.msk [vmem:[%s5482_s3 + $0xd0] sm:$0xff] %vm2719_vm4, %v2681_v17  ;;  %v2619_v6 = vadd.f32 %v5031_v31, %v2548_v41  ;;  %v2422_v7 = vmax.f32 %v5577_v43, %v1583_v42  ;;  %v2486_v15 = vmax.f32 %v5578_v14, %v2223_v30  ;;  %v5591_v14 = vld [vmem:[#allocation30_spill] sm:$0xff] }
 0x19e   :  { %v2684_v24 = vmax.f32 %v2620_v5, 0.0  ;;  %v2551_v20 = vmax.f32 %v2423_v21, %v2487_v59 }
 0x19f   :  { %v2683_v12 = vmax.f32 %v2619_v6, 0.0  ;;  %v2550_v25 = vmax.f32 %v2422_v7, %v2486_v15  ;;  %v3460_v13 = vpop.f32.mrb[96].mxu0  ;;  %v3652_v0 = vpop.f32.mrb[96].mxu1 }
 0x1a0   :  { %2749 = vst.msk [vmem:[%s5482_s3 + $0xe8] sm:$0xff] %vm2719_vm4, %v2684_v24  ;;  %v2622_v45 = vadd.f32 %v5031_v31, %v2551_v20  ;;  %v2425_v1 = vmax.f32 %v5579_v26, %v3460_v13  ;;  %v2489_v46 = vmax.f32 %v5580_v27, %v3652_v0  ;;  %v1593_v47 = vpop.f32.mrb[97].mxu0  ;;  %v2233_v2 = vpop.f32.mrb[97].mxu1  ;;  %v5592_v24 = vld [vmem:[#allocation31_spill] sm:$0xff]  ;;  %v5593_v0 = vld [vmem:[#allocation32_spill] sm:$0xff]  ;;  %v5594_v26 = vld [vmem:[#allocation33_spill] sm:$0xff] }
 0x1a1   :  { %2748 = vst.msk [vmem:[%s5482_s3 + $0xe0] sm:$0xff] %vm2719_vm4, %v2683_v12  ;;  %v2621_v48 = vadd.f32 %v5031_v31, %v2550_v25  ;;  %v2424_v32 = vmax.f32 %v5581_v3, %v1593_v47  ;;  %v2488_v49 = vmax.f32 %v5582_v36, %v2233_v2  ;;  %v5595_v36 = vld [vmem:[#allocation34_spill] sm:$0xff] }
 0x1a2   :  { %v2686_v37 = vmax.f32 %v2622_v45, 0.0  ;;  %v2553_v33 = vmax.f32 %v2425_v1, %v2489_v46 }
 0x1a3   :  { %v2685_v60 = vmax.f32 %v2621_v48, 0.0  ;;  %v2552_v38 = vmax.f32 %v2424_v32, %v2488_v49  ;;  %v3463_v50 = vpop.f32.mrb[98].mxu0  ;;  %v3655_v39 = vpop.f32.mrb[98].mxu1 }
 0x1a4   :  { %2751 = vst.msk [vmem:[%s5482_s3 + $0xf8] sm:$0xff] %vm2719_vm4, %v2686_v37  ;;  %v2624_v61 = vadd.f32 %v5031_v31, %v2553_v33  ;;  %v2427_v51 = vmax.f32 %v5583_v8, %v3463_v50  ;;  %v2491_v34 = vmax.f32 %v5584_v9, %v3655_v39  ;;  %v1603_v35 = vpop.f32.mrb[99].mxu0  ;;  %v2243_v52 = vpop.f32.mrb[99].mxu1  ;;  %v5596_v37 = vld [vmem:[#allocation35_spill] sm:$0xff]  ;;  %v5597_v39 = vld [vmem:[#allocation36_spill] sm:$0xff]  ;;  %v5598_v8 = vld [vmem:[#allocation37_spill] sm:$0xff] }
 0x1a5   :  { %2750 = vst.msk [vmem:[%s5482_s3 + $0xf0] sm:$0xff] %vm2719_vm4, %v2685_v60  ;;  %v2623_v10 = vadd.f32 %v5031_v31, %v2552_v38  ;;  %v2426_v22 = vmax.f32 %v5585_v53, %v1603_v35  ;;  %v2490_v54 = vmax.f32 %v5586_v11, %v2243_v52  ;;  %v5599_v11 = vld [vmem:[#allocation38_spill] sm:$0xff] }
 0x1a6   :  { %v2688_v23 = vmax.f32 %v2624_v61, 0.0  ;;  %v2555_v55 = vmax.f32 %v2427_v51, %v2491_v34 }
 0x1a7   :  { %v2687_v28 = vmax.f32 %v2623_v10, 0.0  ;;  %v2554_v29 = vmax.f32 %v2426_v22, %v2490_v54  ;;  %v3466_v56 = vpop.f32.mrb[100].mxu0  ;;  %v3658_v44 = vpop.f32.mrb[100].mxu1 }
 0x1a8   :  { %2753 = vst.msk [vmem:[%s5482_s3 + $0x108] sm:$0xff] %vm2719_vm4, %v2688_v23  ;;  %v2626_v57 = vadd.f32 %v5031_v31, %v2555_v55  ;;  %v2429_v62 = vmax.f32 %v5587_v16, %v3466_v56  ;;  %v2493_v63 = vmax.f32 %v5588_v40, %v3658_v44  ;;  %v1613_v17 = vpop.f32.mrb[101].mxu0  ;;  %v2253_v41 = vpop.f32.mrb[101].mxu1  ;;  %v5600_v23 = vld [vmem:[#allocation39_spill] sm:$0xff]  ;;  %v5601_v44 = vld [vmem:[#allocation40_spill] sm:$0xff]  ;;  %v5602_v16 = vld [vmem:[#allocation41_spill] sm:$0xff] }
 0x1a9   :  { %2752 = vst.msk [vmem:[%s5482_s3 + $0x100] sm:$0xff] %vm2719_vm4, %v2687_v28  ;;  %v2625_v4 = vadd.f32 %v5031_v31, %v2554_v29  ;;  %v2428_v5 = vmax.f32 %v5589_v58, %v1613_v17  ;;  %v2492_v21 = vmax.f32 %v5590_v18, %v2253_v41  ;;  %v5603_v18 = vld [vmem:[#allocation42_spill] sm:$0xff] }
 0x1aa   :  { %v2690_v19 = vmax.f32 %v2626_v57, 0.0  ;;  %v2557_v59 = vmax.f32 %v2429_v62, %v2493_v63 }
 0x1ab   :  { %v2689_v42 = vmax.f32 %v2625_v4, 0.0  ;;  %v2556_v30 = vmax.f32 %v2428_v5, %v2492_v21  ;;  %v3469_v6 = vpop.f32.mrb[102].mxu0  ;;  %v3661_v43 = vpop.f32.mrb[102].mxu1 }
 0x1ac   :  { %2755 = vst.msk [vmem:[%s5482_s3 + $0x118] sm:$0xff] %vm2719_vm4, %v2690_v19  ;;  %v2628_v7 = vadd.f32 %v5031_v31, %v2557_v59  ;;  %v2431_v15 = vmax.f32 %v5591_v14, %v3469_v6  ;;  %v2495_v20 = vmax.f32 %v5592_v24, %v3661_v43  ;;  %v1623_v12 = vpop.f32.mrb[103].mxu0  ;;  %v2263_v25 = vpop.f32.mrb[103].mxu1  ;;  %v5604_v19 = vld [vmem:[#allocation43_spill] sm:$0xff]  ;;  %v5605_v43 = vld [vmem:[#allocation44_spill] sm:$0xff]  ;;  %v5606_v14 = vld [vmem:[#allocation45_spill] sm:$0xff] }
 0x1ad   :  { %2754 = vst.msk [vmem:[%s5482_s3 + $0x110] sm:$0xff] %vm2719_vm4, %v2689_v42  ;;  %v2627_v13 = vadd.f32 %v5031_v31, %v2556_v30  ;;  %v2430_v45 = vmax.f32 %v5593_v0, %v1623_v12  ;;  %v2494_v1 = vmax.f32 %v5594_v26, %v2263_v25  ;;  %v5607_v26 = vld [vmem:[#allocation46_spill] sm:$0xff] }
 0x1ae   :  { %v2692_v27 = vmax.f32 %v2628_v7, 0.0  ;;  %v2559_v46 = vmax.f32 %v2431_v15, %v2495_v20 }
 0x1af   :  { %v2691_v47 = vmax.f32 %v2627_v13, 0.0  ;;  %v2558_v2 = vmax.f32 %v2430_v45, %v2494_v1  ;;  %v3472_v48 = vpop.f32.mrb[104].mxu0  ;;  %v3664_v3 = vpop.f32.mrb[104].mxu1 }
 0x1b0   :  { %2757 = vst.msk [vmem:[%s5482_s3 + $0x128] sm:$0xff] %vm2719_vm4, %v2692_v27  ;;  %v2630_v32 = vadd.f32 %v5031_v31, %v2559_v46  ;;  %v2433_v49 = vmax.f32 %v5595_v36, %v3472_v48  ;;  %v2497_v33 = vmax.f32 %v5596_v37, %v3664_v3  ;;  %v1633_v60 = vpop.f32.mrb[105].mxu0  ;;  %v2273_v38 = vpop.f32.mrb[105].mxu1  ;;  %v5608_v27 = vld [vmem:[#allocation47_spill] sm:$0xff]  ;;  %v5609_v3 = vld [vmem:[#allocation48_spill] sm:$0xff]  ;;  %v5610_v36 = vld [vmem:[#allocation49_spill] sm:$0xff] }
 0x1b1   :  { %2756 = vst.msk [vmem:[%s5482_s3 + $0x120] sm:$0xff] %vm2719_vm4, %v2691_v47  ;;  %v2629_v50 = vadd.f32 %v5031_v31, %v2558_v2  ;;  %v2432_v61 = vmax.f32 %v5597_v39, %v1633_v60  ;;  %v2496_v51 = vmax.f32 %v5598_v8, %v2273_v38  ;;  %v5611_v8 = vld [vmem:[#allocation50_spill] sm:$0xff] }
 0x1b2   :  { %v2694_v9 = vmax.f32 %v2630_v32, 0.0  ;;  %v2561_v34 = vmax.f32 %v2433_v49, %v2497_v33 }
 0x1b3   :  { %v2693_v35 = vmax.f32 %v2629_v50, 0.0  ;;  %v2560_v52 = vmax.f32 %v2432_v61, %v2496_v51  ;;  %v3475_v10 = vpop.f32.mrb[106].mxu0  ;;  %v3667_v53 = vpop.f32.mrb[106].mxu1 }
 0x1b4   :  { %2759 = vst.msk [vmem:[%s5482_s3 + $0x138] sm:$0xff] %vm2719_vm4, %v2694_v9  ;;  %v2632_v22 = vadd.f32 %v5031_v31, %v2561_v34  ;;  %v2435_v54 = vmax.f32 %v5599_v11, %v3475_v10  ;;  %v2499_v55 = vmax.f32 %v5600_v23, %v3667_v53  ;;  %v1643_v28 = vpop.f32.mrb[107].mxu0  ;;  %v2283_v29 = vpop.f32.mrb[107].mxu1  ;;  %v5612_v9 = vld [vmem:[#allocation51_spill] sm:$0xff]  ;;  %v5613_v53 = vld [vmem:[#allocation52_spill] sm:$0xff]  ;;  %v5614_v11 = vld [vmem:[#allocation53_spill] sm:$0xff] }
 0x1b5   :  { %2758 = vst.msk [vmem:[%s5482_s3 + $0x130] sm:$0xff] %vm2719_vm4, %v2693_v35  ;;  %v2631_v56 = vadd.f32 %v5031_v31, %v2560_v52  ;;  %v2434_v57 = vmax.f32 %v5601_v44, %v1643_v28  ;;  %v2498_v62 = vmax.f32 %v5602_v16, %v2283_v29  ;;  %v5615_v16 = vld [vmem:[#allocation54_spill] sm:$0xff] }
 0x1b6   :  { %v2696_v40 = vmax.f32 %v2632_v22, 0.0  ;;  %v2563_v63 = vmax.f32 %v2435_v54, %v2499_v55 }
 0x1b7   :  { %v2695_v17 = vmax.f32 %v2631_v56, 0.0  ;;  %v2562_v41 = vmax.f32 %v2434_v57, %v2498_v62  ;;  %v3478_v4 = vpop.f32.mrb[108].mxu0  ;;  %v3670_v58 = vpop.f32.mrb[108].mxu1 }
 0x1b8   :  { %2761 = vst.msk [vmem:[%s5482_s3 + $0x148] sm:$0xff] %vm2719_vm4, %v2696_v40  ;;  %v2634_v5 = vadd.f32 %v5031_v31, %v2563_v63  ;;  %v2437_v21 = vmax.f32 %v5603_v18, %v3478_v4  ;;  %v2501_v59 = vmax.f32 %v5604_v19, %v3670_v58  ;;  %v1653_v42 = vpop.f32.mrb[109].mxu0  ;;  %v2293_v30 = vpop.f32.mrb[109].mxu1  ;;  %v5616_v40 = vld [vmem:[#allocation55_spill] sm:$0xff]  ;;  %v5617_v58 = vld [vmem:[#allocation56_spill] sm:$0xff]  ;;  %v5618_v18 = vld [vmem:[#allocation57_spill] sm:$0xff] }
 0x1b9   :  { %2760 = vst.msk [vmem:[%s5482_s3 + $0x140] sm:$0xff] %vm2719_vm4, %v2695_v17  ;;  %v2633_v6 = vadd.f32 %v5031_v31, %v2562_v41  ;;  %v2436_v7 = vmax.f32 %v5605_v43, %v1653_v42  ;;  %v2500_v15 = vmax.f32 %v5606_v14, %v2293_v30  ;;  %v5619_v14 = vld [vmem:[#allocation58_spill] sm:$0xff] }
 0x1ba   :  { %v2698_v24 = vmax.f32 %v2634_v5, 0.0  ;;  %v2565_v20 = vmax.f32 %v2437_v21, %v2501_v59 }
 0x1bb   :  { %v2697_v12 = vmax.f32 %v2633_v6, 0.0  ;;  %v2564_v25 = vmax.f32 %v2436_v7, %v2500_v15  ;;  %v3481_v13 = vpop.f32.mrb[110].mxu0  ;;  %v3673_v0 = vpop.f32.mrb[110].mxu1 }
 0x1bc   :  { %2763 = vst.msk [vmem:[%s5482_s3 + $0x158] sm:$0xff] %vm2719_vm4, %v2698_v24  ;;  %v2636_v45 = vadd.f32 %v5031_v31, %v2565_v20  ;;  %v2439_v1 = vmax.f32 %v5607_v26, %v3481_v13  ;;  %v2503_v46 = vmax.f32 %v5608_v27, %v3673_v0  ;;  %v1663_v47 = vpop.f32.mrb[111].mxu0  ;;  %v2303_v2 = vpop.f32.mrb[111].mxu1  ;;  %v5620_v24 = vld [vmem:[#allocation59_spill] sm:$0xff]  ;;  %v5621_v0 = vld [vmem:[#allocation60_spill] sm:$0xff]  ;;  %v5622_v26 = vld [vmem:[#allocation61_spill] sm:$0xff] }
 0x1bd   :  { %2762 = vst.msk [vmem:[%s5482_s3 + $0x150] sm:$0xff] %vm2719_vm4, %v2697_v12  ;;  %v2635_v48 = vadd.f32 %v5031_v31, %v2564_v25  ;;  %v2438_v32 = vmax.f32 %v5609_v3, %v1663_v47  ;;  %v2502_v49 = vmax.f32 %v5610_v36, %v2303_v2  ;;  %v5623_v36 = vld [vmem:[#allocation62_spill] sm:$0xff] }
 0x1be   :  { %v2700_v37 = vmax.f32 %v2636_v45, 0.0  ;;  %v2567_v33 = vmax.f32 %v2439_v1, %v2503_v46 }
 0x1bf   :  { %v2699_v60 = vmax.f32 %v2635_v48, 0.0  ;;  %v2566_v38 = vmax.f32 %v2438_v32, %v2502_v49  ;;  %v3484_v50 = vpop.f32.mrb[112].mxu0  ;;  %v3676_v39 = vpop.f32.mrb[112].mxu1 }
 0x1c0   :  { %2765 = vst.msk [vmem:[%s5482_s3 + $0x168] sm:$0xff] %vm2719_vm4, %v2700_v37  ;;  %v2638_v61 = vadd.f32 %v5031_v31, %v2567_v33  ;;  %v2441_v51 = vmax.f32 %v5611_v8, %v3484_v50  ;;  %v2505_v34 = vmax.f32 %v5612_v9, %v3676_v39  ;;  %v1673_v35 = vpop.f32.mrb[113].mxu0  ;;  %v2313_v52 = vpop.f32.mrb[113].mxu1  ;;  %v5624_v37 = vld [vmem:[#allocation63_spill] sm:$0xff]  ;;  %v5625_v39 = vld [vmem:[#allocation64_spill] sm:$0xff]  ;;  %v5626_v8 = vld [vmem:[#allocation65_spill] sm:$0xff] }
 0x1c1   :  { %2764 = vst.msk [vmem:[%s5482_s3 + $0x160] sm:$0xff] %vm2719_vm4, %v2699_v60  ;;  %v2637_v10 = vadd.f32 %v5031_v31, %v2566_v38  ;;  %v2440_v22 = vmax.f32 %v5613_v53, %v1673_v35  ;;  %v2504_v54 = vmax.f32 %v5614_v11, %v2313_v52  ;;  %v5627_v11 = vld [vmem:[#allocation66_spill] sm:$0xff] }
 0x1c2   :  { %v2702_v23 = vmax.f32 %v2638_v61, 0.0  ;;  %v2569_v55 = vmax.f32 %v2441_v51, %v2505_v34 }
 0x1c3   :  { %v2701_v28 = vmax.f32 %v2637_v10, 0.0  ;;  %v2568_v29 = vmax.f32 %v2440_v22, %v2504_v54  ;;  %v3487_v56 = vpop.f32.mrb[114].mxu0  ;;  %v3679_v44 = vpop.f32.mrb[114].mxu1 }
 0x1c4   :  { %2767 = vst.msk [vmem:[%s5482_s3 + $0x178] sm:$0xff] %vm2719_vm4, %v2702_v23  ;;  %v2640_v57 = vadd.f32 %v5031_v31, %v2569_v55  ;;  %v2443_v62 = vmax.f32 %v5615_v16, %v3487_v56  ;;  %v2507_v63 = vmax.f32 %v5616_v40, %v3679_v44  ;;  %v1683_v17 = vpop.f32.mrb[115].mxu0  ;;  %v2323_v41 = vpop.f32.mrb[115].mxu1  ;;  %v5628_v23 = vld [vmem:[#allocation67_spill] sm:$0xff]  ;;  %v5629_v44 = vld [vmem:[#allocation68_spill] sm:$0xff]  ;;  %v5630_v16 = vld [vmem:[#allocation69_spill] sm:$0xff] }
 0x1c5   :  { %2766 = vst.msk [vmem:[%s5482_s3 + $0x170] sm:$0xff] %vm2719_vm4, %v2701_v28  ;;  %v2639_v4 = vadd.f32 %v5031_v31, %v2568_v29  ;;  %v2442_v5 = vmax.f32 %v5617_v58, %v1683_v17  ;;  %v2506_v21 = vmax.f32 %v5618_v18, %v2323_v41  ;;  %v5631_v18 = vld [vmem:[#allocation70_spill] sm:$0xff] }
 0x1c6   :  { %v2704_v19 = vmax.f32 %v2640_v57, 0.0  ;;  %v2571_v59 = vmax.f32 %v2443_v62, %v2507_v63 }
 0x1c7   :  { %v2703_v42 = vmax.f32 %v2639_v4, 0.0  ;;  %v2570_v30 = vmax.f32 %v2442_v5, %v2506_v21  ;;  %v3490_v6 = vpop.f32.mrb[116].mxu0  ;;  %v3682_v43 = vpop.f32.mrb[116].mxu1 }
 0x1c8   :  { %2769 = vst.msk [vmem:[%s5482_s3 + $0x188] sm:$0xff] %vm2719_vm4, %v2704_v19  ;;  %v2642_v7 = vadd.f32 %v5031_v31, %v2571_v59  ;;  %v2445_v15 = vmax.f32 %v5619_v14, %v3490_v6  ;;  %v2509_v20 = vmax.f32 %v5620_v24, %v3682_v43  ;;  %v1693_v12 = vpop.f32.mrb[117].mxu0  ;;  %v2333_v25 = vpop.f32.mrb[117].mxu1  ;;  %v5632_v19 = vld [vmem:[#allocation71_spill] sm:$0xff]  ;;  %v5633_v43 = vld [vmem:[#allocation72_spill] sm:$0xff]  ;;  %v5634_v14 = vld [vmem:[#allocation73_spill] sm:$0xff] }
 0x1c9   :  { %2768 = vst.msk [vmem:[%s5482_s3 + $0x180] sm:$0xff] %vm2719_vm4, %v2703_v42  ;;  %v2641_v13 = vadd.f32 %v5031_v31, %v2570_v30  ;;  %v2444_v45 = vmax.f32 %v5621_v0, %v1693_v12  ;;  %v2508_v1 = vmax.f32 %v5622_v26, %v2333_v25  ;;  %v5635_v26 = vld [vmem:[#allocation74_spill] sm:$0xff] }
 0x1ca   :  { %v2706_v27 = vmax.f32 %v2642_v7, 0.0  ;;  %v2573_v46 = vmax.f32 %v2445_v15, %v2509_v20 }
 0x1cb   :  { %v2705_v47 = vmax.f32 %v2641_v13, 0.0  ;;  %v2572_v2 = vmax.f32 %v2444_v45, %v2508_v1  ;;  %v3493_v48 = vpop.f32.mrb[118].mxu0  ;;  %v3685_v3 = vpop.f32.mrb[118].mxu1 }
 0x1cc   :  { %2771 = vst.msk [vmem:[%s5482_s3 + $0x198] sm:$0xff] %vm2719_vm4, %v2706_v27  ;;  %v2644_v32 = vadd.f32 %v5031_v31, %v2573_v46  ;;  %v2447_v49 = vmax.f32 %v5623_v36, %v3493_v48  ;;  %v2511_v33 = vmax.f32 %v5624_v37, %v3685_v3  ;;  %v1703_v60 = vpop.f32.mrb[119].mxu0  ;;  %v2343_v38 = vpop.f32.mrb[119].mxu1  ;;  %v5636_v27 = vld [vmem:[#allocation75_spill] sm:$0xff]  ;;  %v5637_v3 = vld [vmem:[#allocation76_spill] sm:$0xff]  ;;  %v5638_v36 = vld [vmem:[#allocation77_spill] sm:$0xff] }
 0x1cd   :  { %2770 = vst.msk [vmem:[%s5482_s3 + $0x190] sm:$0xff] %vm2719_vm4, %v2705_v47  ;;  %v2643_v50 = vadd.f32 %v5031_v31, %v2572_v2  ;;  %v2446_v61 = vmax.f32 %v5625_v39, %v1703_v60  ;;  %v2510_v51 = vmax.f32 %v5626_v8, %v2343_v38  ;;  %v5639_v8 = vld [vmem:[#allocation78_spill] sm:$0xff] }
 0x1ce   :  { %v2708_v9 = vmax.f32 %v2644_v32, 0.0  ;;  %v2575_v34 = vmax.f32 %v2447_v49, %v2511_v33 }
 0x1cf   :  { %v2707_v35 = vmax.f32 %v2643_v50, 0.0  ;;  %v2574_v52 = vmax.f32 %v2446_v61, %v2510_v51  ;;  %v3496_v10 = vpop.f32.mrb[120].mxu0  ;;  %v3688_v53 = vpop.f32.mrb[120].mxu1 }
 0x1d0   :  { %2773 = vst.msk [vmem:[%s5482_s3 + $0x1a8] sm:$0xff] %vm2719_vm4, %v2708_v9  ;;  %v2646_v22 = vadd.f32 %v5031_v31, %v2575_v34  ;;  %v2449_v54 = vmax.f32 %v5627_v11, %v3496_v10  ;;  %v2513_v55 = vmax.f32 %v5628_v23, %v3688_v53  ;;  %v1713_v28 = vpop.f32.mrb[121].mxu0  ;;  %v2353_v29 = vpop.f32.mrb[121].mxu1  ;;  %v5640_v9 = vld [vmem:[#allocation79_spill] sm:$0xff]  ;;  %v5641_v53 = vld [vmem:[#allocation80_spill] sm:$0xff]  ;;  %v5642_v11 = vld [vmem:[#allocation81_spill] sm:$0xff] }
 0x1d1   :  { %2772 = vst.msk [vmem:[%s5482_s3 + $0x1a0] sm:$0xff] %vm2719_vm4, %v2707_v35  ;;  %v2645_v56 = vadd.f32 %v5031_v31, %v2574_v52  ;;  %v2448_v57 = vmax.f32 %v5629_v44, %v1713_v28  ;;  %v2512_v62 = vmax.f32 %v5630_v16, %v2353_v29 }
 0x1d2   :  { %v2710_v40 = vmax.f32 %v2646_v22, 0.0  ;;  %v2577_v63 = vmax.f32 %v2449_v54, %v2513_v55 }
 0x1d3   :  { %v2709_v17 = vmax.f32 %v2645_v56, 0.0  ;;  %v2576_v41 = vmax.f32 %v2448_v57, %v2512_v62  ;;  %v3499_v4 = vpop.f32.mrb[122].mxu0  ;;  %v3691_v58 = vpop.f32.mrb[122].mxu1 }
 0x1d4   :  { %2775 = vst.msk [vmem:[%s5482_s3 + $0x1b8] sm:$0xff] %vm2719_vm4, %v2710_v40  ;;  %v2648_v5 = vadd.f32 %v5031_v31, %v2577_v63  ;;  %v2451_v21 = vmax.f32 %v5631_v18, %v3499_v4  ;;  %v2515_v59 = vmax.f32 %v5632_v19, %v3691_v58  ;;  %v1723_v42 = vpop.f32.mrb[123].mxu0  ;;  %v2363_v30 = vpop.f32.mrb[123].mxu1 }
 0x1d5   :  { %2774 = vst.msk [vmem:[%s5482_s3 + $0x1b0] sm:$0xff] %vm2719_vm4, %v2709_v17  ;;  %v2647_v6 = vadd.f32 %v5031_v31, %v2576_v41  ;;  %v2450_v7 = vmax.f32 %v5633_v43, %v1723_v42  ;;  %v2514_v15 = vmax.f32 %v5634_v14, %v2363_v30 }
 0x1d6   :  { %v2712_v24 = vmax.f32 %v2648_v5, 0.0  ;;  %v2579_v20 = vmax.f32 %v2451_v21, %v2515_v59 }
 0x1d7   :  { %v2711_v12 = vmax.f32 %v2647_v6, 0.0  ;;  %v2578_v25 = vmax.f32 %v2450_v7, %v2514_v15  ;;  %v3502_v13 = vpop.f32.mrb[124].mxu0  ;;  %v3694_v0 = vpop.f32.mrb[124].mxu1 }
 0x1d8   :  { %2777 = vst.msk [vmem:[%s5482_s3 + $0x1c8] sm:$0xff] %vm2719_vm4, %v2712_v24  ;;  %v2650_v45 = vadd.f32 %v5031_v31, %v2579_v20  ;;  %v2453_v1 = vmax.f32 %v5635_v26, %v3502_v13  ;;  %v2517_v46 = vmax.f32 %v5636_v27, %v3694_v0  ;;  %v1733_v47 = vpop.f32.mrb[125].mxu0  ;;  %v2373_v2 = vpop.f32.mrb[125].mxu1 }
 0x1d9   :  { %2776 = vst.msk [vmem:[%s5482_s3 + $0x1c0] sm:$0xff] %vm2719_vm4, %v2711_v12  ;;  %v2649_v48 = vadd.f32 %v5031_v31, %v2578_v25  ;;  %v2452_v32 = vmax.f32 %v5637_v3, %v1733_v47  ;;  %v2516_v49 = vmax.f32 %v5638_v36, %v2373_v2 }
 0x1da   :  { %v2714_v37 = vmax.f32 %v2650_v45, 0.0  ;;  %v2581_v33 = vmax.f32 %v2453_v1, %v2517_v46 }
 0x1db   :  { %v2713_v60 = vmax.f32 %v2649_v48, 0.0  ;;  %v2580_v38 = vmax.f32 %v2452_v32, %v2516_v49  ;;  %v3505_v50 = vpop.f32.mrb[126].mxu0  ;;  %v3697_v39 = vpop.f32.mrb[126].mxu1 }
 0x1dc   :  { %2779 = vst.msk [vmem:[%s5482_s3 + $0x1d8] sm:$0xff] %vm2719_vm4, %v2714_v37  ;;  %v2652_v61 = vadd.f32 %v5031_v31, %v2581_v33  ;;  %v2455_v51 = vmax.f32 %v5639_v8, %v3505_v50  ;;  %v2519_v34 = vmax.f32 %v5640_v9, %v3697_v39  ;;  %v1743_v35 = vpop.f32.mrb[127].mxu0  ;;  %v2383_v52 = vpop.f32.mrb[127].mxu1 }
 0x1dd   :  { %2778 = vst.msk [vmem:[%s5482_s3 + $0x1d0] sm:$0xff] %vm2719_vm4, %v2713_v60  ;;  %v2651_v10 = vadd.f32 %v5031_v31, %v2580_v38  ;;  %v2454_v22 = vmax.f32 %v5641_v53, %v1743_v35  ;;  %v2518_v54 = vmax.f32 %v5642_v11, %v2383_v52 }
 0x1de   :  { %v2716_v23 = vmax.f32 %v2652_v61, 0.0  ;;  %v2583_v55 = vmax.f32 %v2455_v51, %v2519_v34 }
 0x1df   :  { %v2715_v28 = vmax.f32 %v2651_v10, 0.0  ;;  %v2582_v29 = vmax.f32 %v2454_v22, %v2518_v54 }
 0x1e0   :  { %2781 = vst.msk [vmem:[%s5482_s3 + $0x1e8] sm:$0xff] %vm2719_vm4, %v2716_v23  ;;  %v2654_v56 = vadd.f32 %v5031_v31, %v2583_v55 }
 0x1e1   :  { %2780 = vst.msk [vmem:[%s5482_s3 + $0x1e0] sm:$0xff] %vm2719_vm4, %v2715_v28  ;;  %v2653_v44 = vadd.f32 %v5031_v31, %v2582_v29 }
 0x1e2   :  { %v2718_v57 = vmax.f32 %v2654_v56, 0.0 }
 0x1e3   :  { %v2717_v16 = vmax.f32 %v2653_v44, 0.0 }
 0x1e4   :  { %2783 = vst.msk [vmem:[%s5482_s3 + $0x1f8] sm:$0xff] %vm2719_vm4, %v2718_v57 }
 0x1e5   :  { %2782 = vst.msk [vmem:[%s5482_s3 + $0x1f0] sm:$0xff] %vm2719_vm4, %v2717_v16 }

// kernel: simple_cnn_forward.4
= control target key start
LH: loop header
LB: loop body
LE: loop exit
PB: predicated region body
PF: predicated region fallthrough
CT: control target
= control target key end

     0   :  { %v957_v0 = vmov 0.0|0.0   ;;  %vm160_vm0 = vcmask 130048   ;;  %vm825_vm1 = vcmask 261120   ;;  %s1679_s1 = inlined_call_operand.vmem [shape: f32[144,32], index: 1, kind: input, shape index: {}]   ;;  %s1680_s0 = inlined_call_operand.vmem [shape: f32[512,144], index: 0, kind: input, shape index: {}]   ;;  %s1681_s2 = inlined_call_operand.vmem [shape: f32[1,32], index: 2, kind: input, shape index: {}]   ;;  %s1682_s3 = inlined_call_operand.vmem [shape: f32[128,32], index: 3, kind: output, shape index: {}]  }
   0x1   :  { %911 = vmatprep.subr.bf16.mxu0 %v957_v0  ;;  %938 = vmatprep.subr.bf16.mxu1 %v957_v0  ;;  %v142_v1 = vld [vmem:[%s1679_s1] sm:$0xff]  ;;  %v143_v2 = vld [vmem:[%s1679_s1 + $0x8] sm:$0xff]  ;;  %v144_v3 = vld [vmem:[%s1679_s1 + $0x10] sm:$0xff] }
   0x2   :  { %v912_v4 = vpack.c.bf16 %v143_v2, %v142_v1  ;;  %v145_v5 = vld [vmem:[%s1679_s1 + $0x18] sm:$0xff]  ;;  %v146_v7 = vld [vmem:[%s1679_s1 + $0x20] sm:$0xff]  ;;  %v147_v8 = vld [vmem:[%s1679_s1 + $0x28] sm:$0xff] }
   0x3   :  { %v915_v6 = vpack.c.bf16 %v145_v5, %v144_v3  ;;  %v15_v9 = vld [vmem:[%s1680_s0 + $0x8] sm:$0xff]  ;;  %v918_v11 = vpack.c.bf16 %v147_v8, %v146_v7  ;;  %v148_v12 = vld [vmem:[%s1679_s1 + $0x30] sm:$0xff]  ;;  %v149_v13 = vld [vmem:[%s1679_s1 + $0x38] sm:$0xff] }
   0x4   :  { %913 = vmatpush1.bf16.msra.mxu0 %v912_v4  ;;  %947 = vmatpush1.bf16.msra.mxu1 %v912_v4  ;;  %v79_v10 = vld [vmem:[%s1680_s0 + $0x208] sm:$0xff]  ;;  %v921_v14 = vpack.c.bf16 %v149_v13, %v148_v12  ;;  %v150_v15 = vld [vmem:[%s1679_s1 + $0x40] sm:$0xff]  ;;  %v152_v18 = vld [vmem:[%s1679_s1 + $0x50] sm:$0xff] }
   0x5   :  { %914 = vmatprep.subr.bf16.mxu0 %v957_v0  ;;  %939 = vmatprep.subr.bf16.mxu1 %v957_v0  ;;  %v151_v16 = vld [vmem:[%s1679_s1 + $0x48] sm:$0xff]  ;;  %v153_v19 = vld [vmem:[%s1679_s1 + $0x58] sm:$0xff]  ;;  %v154_v21 = vld [vmem:[%s1679_s1 + $0x60] sm:$0xff] }
   0x6   :  { %846 = vmatprep.mubr.msk.f32.mxu0 %vm160_vm0, %v15_v9  ;;  %878 = vmatprep.mubr.msk.f32.mxu1 %vm160_vm0, %v79_v10  ;;  %v924_v17 = vpack.c.bf16 %v151_v16, %v150_v15  ;;  %v927_v20 = vpack.c.bf16 %v153_v19, %v152_v18  ;;  %v155_v22 = vld [vmem:[%s1679_s1 + $0x68] sm:$0xff]  ;;  %v156_v24 = vld [vmem:[%s1679_s1 + $0x70] sm:$0xff]  ;;  %v157_v25 = vld [vmem:[%s1679_s1 + $0x78] sm:$0xff] }
   0x7   :  { %v930_v23 = vpack.c.bf16 %v155_v22, %v154_v21  ;;  %v933_v26 = vpack.c.bf16 %v157_v25, %v156_v24  ;;  %v158_v27 = vld [vmem:[%s1679_s1 + $0x80] sm:$0xff]  ;;  %v159_v28 = vld [vmem:[%s1679_s1 + $0x88] sm:$0xff]  ;;  %v17_v32 = vld [vmem:[%s1680_s0 + $0x18] sm:$0xff] }
   0x8   :  { %916 = vmatpush1.bf16.msra.mxu0 %v915_v6  ;;  %948 = vmatpush1.bf16.msra.mxu1 %v915_v6  ;;  %v936_v29 = vpack.c.bf16 %v159_v28, %v158_v27  ;;  %v14_v30 = vld [vmem:[%s1680_s0] sm:$0xff]  ;;  %v81_v33 = vld [vmem:[%s1680_s0 + $0x218] sm:$0xff]  ;;  %v16_v34 = vld [vmem:[%s1680_s0 + $0x10] sm:$0xff] }
   0x9   :  { %917 = vmatprep.subr.bf16.mxu0 %v957_v0  ;;  %940 = vmatprep.subr.bf16.mxu1 %v957_v0  ;;  %v78_v31 = vld [vmem:[%s1680_s0 + $0x200] sm:$0xff]  ;;  %v80_v35 = vld [vmem:[%s1680_s0 + $0x210] sm:$0xff]  ;;  %v19_v36 = vld [vmem:[%s1680_s0 + $0x28] sm:$0xff] }
   0xa   :  { %v83_v37 = vld [vmem:[%s1680_s0 + $0x228] sm:$0xff]  ;;  %v18_v38 = vld [vmem:[%s1680_s0 + $0x20] sm:$0xff]  ;;  %v21_v40 = vld [vmem:[%s1680_s0 + $0x38] sm:$0xff] }
   0xb   :  { %v82_v39 = vld [vmem:[%s1680_s0 + $0x220] sm:$0xff]  ;;  %v85_v41 = vld [vmem:[%s1680_s0 + $0x238] sm:$0xff]  ;;  %v20_v42 = vld [vmem:[%s1680_s0 + $0x30] sm:$0xff] }
   0xc   :  { %919 = vmatpush1.bf16.msra.mxu0 %v918_v11  ;;  %949 = vmatpush1.bf16.msra.mxu1 %v918_v11  ;;  %v84_v43 = vld [vmem:[%s1680_s0 + $0x230] sm:$0xff]  ;;  %v23_v44 = vld [vmem:[%s1680_s0 + $0x48] sm:$0xff]  ;;  %v22_v46 = vld [vmem:[%s1680_s0 + $0x40] sm:$0xff] }
   0xd   :  { %920 = vmatprep.subr.bf16.mxu0 %v957_v0  ;;  %941 = vmatprep.subr.bf16.mxu1 %v957_v0  ;;  %v87_v45 = vld [vmem:[%s1680_s0 + $0x248] sm:$0xff]  ;;  %v86_v47 = vld [vmem:[%s1680_s0 + $0x240] sm:$0xff]  ;;  %v25_v48 = vld [vmem:[%s1680_s0 + $0x58] sm:$0xff] }
   0xe   :  { %v89_v49 = vld [vmem:[%s1680_s0 + $0x258] sm:$0xff]  ;;  %v24_v50 = vld [vmem:[%s1680_s0 + $0x50] sm:$0xff]  ;;  %v27_v52 = vld [vmem:[%s1680_s0 + $0x68] sm:$0xff] }
   0xf   :  { %v88_v51 = vld [vmem:[%s1680_s0 + $0x250] sm:$0xff]  ;;  %v91_v53 = vld [vmem:[%s1680_s0 + $0x268] sm:$0xff]  ;;  %v26_v54 = vld [vmem:[%s1680_s0 + $0x60] sm:$0xff] }
  0x10   :  { %922 = vmatpush1.bf16.msra.mxu0 %v921_v14  ;;  %950 = vmatpush1.bf16.msra.mxu1 %v921_v14  ;;  %v90_v55 = vld [vmem:[%s1680_s0 + $0x260] sm:$0xff]  ;;  %v29_v56 = vld [vmem:[%s1680_s0 + $0x78] sm:$0xff]  ;;  %v28_v58 = vld [vmem:[%s1680_s0 + $0x70] sm:$0xff] }
  0x11   :  { %923 = vmatprep.subr.bf16.mxu0 %v957_v0  ;;  %942 = vmatprep.subr.bf16.mxu1 %v957_v0  ;;  %v93_v57 = vld [vmem:[%s1680_s0 + $0x278] sm:$0xff]  ;;  %v92_v59 = vld [vmem:[%s1680_s0 + $0x270] sm:$0xff]  ;;  %v31_v60 = vld [vmem:[%s1680_s0 + $0x88] sm:$0xff] }
  0x12   :  { %v95_v61 = vld [vmem:[%s1680_s0 + $0x288] sm:$0xff]  ;;  %v30_v62 = vld [vmem:[%s1680_s0 + $0x80] sm:$0xff]  ;;  %v97_v1 = vld [vmem:[%s1680_s0 + $0x298] sm:$0xff] }
  0x13   :  { %v94_v63 = vld [vmem:[%s1680_s0 + $0x280] sm:$0xff]  ;;  %v32_v2 = vld [vmem:[%s1680_s0 + $0x90] sm:$0xff]  ;;  %v35_v4 = vld [vmem:[%s1680_s0 + $0xa8] sm:$0xff] }
  0x14   :  { %925 = vmatpush1.bf16.msra.mxu0 %v924_v17  ;;  %951 = vmatpush1.bf16.msra.mxu1 %v924_v17  ;;  %v96_v3 = vld [vmem:[%s1680_s0 + $0x290] sm:$0xff]  ;;  %v99_v5 = vld [vmem:[%s1680_s0 + $0x2a8] sm:$0xff]  ;;  %v34_v6 = vld [vmem:[%s1680_s0 + $0xa0] sm:$0xff] }
  0x15   :  { %926 = vmatprep.subr.bf16.mxu0 %v957_v0  ;;  %943 = vmatprep.subr.bf16.mxu1 %v957_v0  ;;  %v98_v7 = vld [vmem:[%s1680_s0 + $0x2a0] sm:$0xff]  ;;  %v37_v8 = vld [vmem:[%s1680_s0 + $0xb8] sm:$0xff]  ;;  %v36_v10 = vld [vmem:[%s1680_s0 + $0xb0] sm:$0xff] }
  0x16   :  { %v101_v9 = vld [vmem:[%s1680_s0 + $0x2b8] sm:$0xff]  ;;  %v100_v11 = vld [vmem:[%s1680_s0 + $0x2b0] sm:$0xff]  ;;  %v39_v12 = vld [vmem:[%s1680_s0 + $0xc8] sm:$0xff] }
  0x17   :  { %v103_v13 = vld [vmem:[%s1680_s0 + $0x2c8] sm:$0xff]  ;;  %v38_v14 = vld [vmem:[%s1680_s0 + $0xc0] sm:$0xff]  ;;  %v41_v16 = vld [vmem:[%s1680_s0 + $0xd8] sm:$0xff] }
  0x18   :  { %928 = vmatpush1.bf16.msra.mxu0 %v927_v20  ;;  %952 = vmatpush1.bf16.msra.mxu1 %v927_v20  ;;  %v102_v15 = vld [vmem:[%s1680_s0 + $0x2c0] sm:$0xff]  ;;  %v105_v17 = vld [vmem:[%s1680_s0 + $0x2d8] sm:$0xff]  ;;  %v40_v18 = vld [vmem:[%s1680_s0 + $0xd0] sm:$0xff] }
  0x19   :  { %929 = vmatprep.subr.bf16.mxu0 %v957_v0  ;;  %944 = vmatprep.subr.bf16.mxu1 %v957_v0  ;;  %v104_v19 = vld [vmem:[%s1680_s0 + $0x2d0] sm:$0xff]  ;;  %v43_v20 = vld [vmem:[%s1680_s0 + $0xe8] sm:$0xff]  ;;  %v42_v22 = vld [vmem:[%s1680_s0 + $0xe0] sm:$0xff] }
  0x1a   :  { %v107_v21 = vld [vmem:[%s1680_s0 + $0x2e8] sm:$0xff]  ;;  %v45_v24 = vld [vmem:[%s1680_s0 + $0xf8] sm:$0xff]  ;;  %v108_v27 = vld [vmem:[%s1680_s0 + $0x2f0] sm:$0xff] }
  0x1b   :  { %v109_v25 = vld [vmem:[%s1680_s0 + $0x2f8] sm:$0xff]  ;;  %v47_v28 = vld [vmem:[%s1680_s0 + $0x108] sm:$0xff] }
  0x1c   :  { %931 = vmatpush1.bf16.msra.mxu0 %v930_v23  ;;  %953 = vmatpush1.bf16.msra.mxu1 %v930_v23  ;;  %v106_v23 = vld [vmem:[%s1680_s0 + $0x2e0] sm:$0xff] }
  0x1d   :  { %932 = vmatprep.subr.bf16.mxu0 %v957_v0  ;;  %945 = vmatprep.subr.bf16.mxu1 %v957_v0 }
  0x20   :  { %934 = vmatpush1.bf16.msra.mxu0 %v933_v26  ;;  %954 = vmatpush1.bf16.msra.mxu1 %v933_v26  ;;  %v44_v26 = vld [vmem:[%s1680_s0 + $0xf0] sm:$0xff] }
  0x21   :  { %935 = vmatprep.subr.bf16.mxu0 %v957_v0  ;;  %946 = vmatprep.subr.bf16.mxu1 %v957_v0  ;;  %v33_v0 = vld [vmem:[%s1680_s0 + $0x98] sm:$0xff] }
  0x24   :  { %937 = vmatpush1.bf16.msra.mxu0 %v936_v29  ;;  %955 = vmatpush1.bf16.msra.mxu1 %v936_v29  ;;  %v111_v29 = vld [vmem:[%s1680_s0 + $0x308] sm:$0xff] }
  0x27   :  { %418 = vmatmul.mubr.f32.vlgmr.msra.gmra.mrb[0].mxu0 %v14_v30  ;;  %578 = vmatmul.mubr.f32.vlgmr.msra.gmra.mrb[0].mxu1 %v78_v31  ;;  %v46_v30 = vld [vmem:[%s1680_s0 + $0x100] sm:$0xff] }
  0x28   :  { %847 = vmatprep.mubr.msk.f32.mxu0 %vm160_vm0, %v17_v32  ;;  %879 = vmatprep.mubr.msk.f32.mxu1 %vm160_vm0, %v81_v33  ;;  %v110_v31 = vld [vmem:[%s1680_s0 + $0x300] sm:$0xff]  ;;  %v49_v32 = vld [vmem:[%s1680_s0 + $0x118] sm:$0xff] }
  0x29   :  { %v113_v33 = vld [vmem:[%s1680_s0 + $0x318] sm:$0xff] }
  0x2b   :  { %423 = vmatmul.mubr.f32.gmra.mrb[2].mxu0 %v16_v34  ;;  %583 = vmatmul.mubr.f32.gmra.mrb[2].mxu1 %v80_v35  ;;  %v48_v34 = vld [vmem:[%s1680_s0 + $0x110] sm:$0xff] }
  0x2c   :  { %848 = vmatprep.mubr.msk.f32.mxu0 %vm160_vm0, %v19_v36  ;;  %880 = vmatprep.mubr.msk.f32.mxu1 %vm160_vm0, %v83_v37  ;;  %v112_v35 = vld [vmem:[%s1680_s0 + $0x310] sm:$0xff]  ;;  %v51_v36 = vld [vmem:[%s1680_s0 + $0x128] sm:$0xff] }
  0x2d   :  { %v115_v37 = vld [vmem:[%s1680_s0 + $0x328] sm:$0xff] }
  0x2f   :  { %428 = vmatmul.mubr.f32.gmra.mrb[4].mxu0 %v18_v38  ;;  %588 = vmatmul.mubr.f32.gmra.mrb[4].mxu1 %v82_v39  ;;  %v50_v38 = vld [vmem:[%s1680_s0 + $0x120] sm:$0xff] }
  0x30   :  { %849 = vmatprep.mubr.msk.f32.mxu0 %vm160_vm0, %v21_v40  ;;  %881 = vmatprep.mubr.msk.f32.mxu1 %vm160_vm0, %v85_v41  ;;  %v114_v39 = vld [vmem:[%s1680_s0 + $0x320] sm:$0xff]  ;;  %v53_v40 = vld [vmem:[%s1680_s0 + $0x138] sm:$0xff] }
  0x31   :  { %v117_v41 = vld [vmem:[%s1680_s0 + $0x338] sm:$0xff] }
  0x33   :  { %433 = vmatmul.mubr.f32.gmra.mrb[6].mxu0 %v20_v42  ;;  %593 = vmatmul.mubr.f32.gmra.mrb[6].mxu1 %v84_v43  ;;  %v52_v42 = vld [vmem:[%s1680_s0 + $0x130] sm:$0xff] }
  0x34   :  { %850 = vmatprep.mubr.msk.f32.mxu0 %vm160_vm0, %v23_v44  ;;  %882 = vmatprep.mubr.msk.f32.mxu1 %vm160_vm0, %v87_v45  ;;  %v116_v43 = vld [vmem:[%s1680_s0 + $0x330] sm:$0xff]  ;;  %v55_v44 = vld [vmem:[%s1680_s0 + $0x148] sm:$0xff] }
  0x35   :  { %v119_v45 = vld [vmem:[%s1680_s0 + $0x348] sm:$0xff] }
  0x37   :  { %438 = vmatmul.mubr.f32.gmra.mrb[8].mxu0 %v22_v46  ;;  %598 = vmatmul.mubr.f32.gmra.mrb[8].mxu1 %v86_v47  ;;  %v54_v46 = vld [vmem:[%s1680_s0 + $0x140] sm:$0xff] }
  0x38   :  { %851 = vmatprep.mubr.msk.f32.mxu0 %vm160_vm0, %v25_v48  ;;  %883 = vmatprep.mubr.msk.f32.mxu1 %vm160_vm0, %v89_v49  ;;  %v118_v47 = vld [vmem:[%s1680_s0 + $0x340] sm:$0xff]  ;;  %v57_v48 = vld [vmem:[%s1680_s0 + $0x158] sm:$0xff] }
  0x39   :  { %v121_v49 = vld [vmem:[%s1680_s0 + $0x358] sm:$0xff] }
  0x3b   :  { %443 = vmatmul.mubr.f32.gmra.mrb[10].mxu0 %v24_v50  ;;  %603 = vmatmul.mubr.f32.gmra.mrb[10].mxu1 %v88_v51  ;;  %v56_v50 = vld [vmem:[%s1680_s0 + $0x150] sm:$0xff] }
  0x3c   :  { %852 = vmatprep.mubr.msk.f32.mxu0 %vm160_vm0, %v27_v52  ;;  %884 = vmatprep.mubr.msk.f32.mxu1 %vm160_vm0, %v91_v53  ;;  %v120_v51 = vld [vmem:[%s1680_s0 + $0x350] sm:$0xff]  ;;  %v59_v52 = vld [vmem:[%s1680_s0 + $0x168] sm:$0xff] }
  0x3d   :  { %v123_v53 = vld [vmem:[%s1680_s0 + $0x368] sm:$0xff] }
  0x3f   :  { %448 = vmatmul.mubr.f32.gmra.mrb[12].mxu0 %v26_v54  ;;  %608 = vmatmul.mubr.f32.gmra.mrb[12].mxu1 %v90_v55  ;;  %v58_v54 = vld [vmem:[%s1680_s0 + $0x160] sm:$0xff] }
  0x40   :  { %853 = vmatprep.mubr.msk.f32.mxu0 %vm160_vm0, %v29_v56  ;;  %885 = vmatprep.mubr.msk.f32.mxu1 %vm160_vm0, %v93_v57  ;;  %v122_v55 = vld [vmem:[%s1680_s0 + $0x360] sm:$0xff]  ;;  %v61_v56 = vld [vmem:[%s1680_s0 + $0x178] sm:$0xff] }
  0x41   :  { %v125_v57 = vld [vmem:[%s1680_s0 + $0x378] sm:$0xff] }
  0x43   :  { %453 = vmatmul.mubr.f32.gmra.mrb[14].mxu0 %v28_v58  ;;  %613 = vmatmul.mubr.f32.gmra.mrb[14].mxu1 %v92_v59  ;;  %v60_v58 = vld [vmem:[%s1680_s0 + $0x170] sm:$0xff] }
  0x44   :  { %854 = vmatprep.mubr.msk.f32.mxu0 %vm160_vm0, %v31_v60  ;;  %886 = vmatprep.mubr.msk.f32.mxu1 %vm160_vm0, %v95_v61  ;;  %v124_v59 = vld [vmem:[%s1680_s0 + $0x370] sm:$0xff]  ;;  %v63_v60 = vld [vmem:[%s1680_s0 + $0x188] sm:$0xff] }
  0x45   :  { %v127_v61 = vld [vmem:[%s1680_s0 + $0x388] sm:$0xff] }
  0x47   :  { %458 = vmatmul.mubr.f32.gmra.mrb[16].mxu0 %v30_v62  ;;  %618 = vmatmul.mubr.f32.gmra.mrb[16].mxu1 %v94_v63  ;;  %v62_v62 = vld [vmem:[%s1680_s0 + $0x180] sm:$0xff] }
  0x48   :  { %855 = vmatprep.mubr.msk.f32.mxu0 %vm160_vm0, %v33_v0  ;;  %887 = vmatprep.mubr.msk.f32.mxu1 %vm160_vm0, %v97_v1  ;;  %v126_v63 = vld [vmem:[%s1680_s0 + $0x380] sm:$0xff]  ;;  %v65_v0 = vld [vmem:[%s1680_s0 + $0x198] sm:$0xff] }
  0x49   :  { %v129_v1 = vld [vmem:[%s1680_s0 + $0x398] sm:$0xff] }
  0x4b   :  { %463 = vmatmul.mubr.f32.gmra.mrb[18].mxu0 %v32_v2  ;;  %623 = vmatmul.mubr.f32.gmra.mrb[18].mxu1 %v96_v3  ;;  %v64_v2 = vld [vmem:[%s1680_s0 + $0x190] sm:$0xff] }
  0x4c   :  { %856 = vmatprep.mubr.msk.f32.mxu0 %vm160_vm0, %v35_v4  ;;  %888 = vmatprep.mubr.msk.f32.mxu1 %vm160_vm0, %v99_v5  ;;  %v128_v3 = vld [vmem:[%s1680_s0 + $0x390] sm:$0xff]  ;;  %v67_v4 = vld [vmem:[%s1680_s0 + $0x1a8] sm:$0xff] }
  0x4d   :  { %v131_v5 = vld [vmem:[%s1680_s0 + $0x3a8] sm:$0xff] }
  0x4f   :  { %468 = vmatmul.mubr.f32.gmra.mrb[20].mxu0 %v34_v6  ;;  %628 = vmatmul.mubr.f32.gmra.mrb[20].mxu1 %v98_v7  ;;  %v66_v6 = vld [vmem:[%s1680_s0 + $0x1a0] sm:$0xff] }
  0x50   :  { %857 = vmatprep.mubr.msk.f32.mxu0 %vm160_vm0, %v37_v8  ;;  %889 = vmatprep.mubr.msk.f32.mxu1 %vm160_vm0, %v101_v9  ;;  %v130_v7 = vld [vmem:[%s1680_s0 + $0x3a0] sm:$0xff]  ;;  %v69_v8 = vld [vmem:[%s1680_s0 + $0x1b8] sm:$0xff] }
  0x51   :  { %v133_v9 = vld [vmem:[%s1680_s0 + $0x3b8] sm:$0xff] }
  0x53   :  { %473 = vmatmul.mubr.f32.gmra.mrb[22].mxu0 %v36_v10  ;;  %633 = vmatmul.mubr.f32.gmra.mrb[22].mxu1 %v100_v11  ;;  %v68_v10 = vld [vmem:[%s1680_s0 + $0x1b0] sm:$0xff] }
  0x54   :  { %858 = vmatprep.mubr.msk.f32.mxu0 %vm160_vm0, %v39_v12  ;;  %890 = vmatprep.mubr.msk.f32.mxu1 %vm160_vm0, %v103_v13  ;;  %v132_v11 = vld [vmem:[%s1680_s0 + $0x3b0] sm:$0xff]  ;;  %v71_v12 = vld [vmem:[%s1680_s0 + $0x1c8] sm:$0xff] }
  0x55   :  { %v135_v13 = vld [vmem:[%s1680_s0 + $0x3c8] sm:$0xff] }
  0x57   :  { %478 = vmatmul.mubr.f32.gmra.mrb[24].mxu0 %v38_v14  ;;  %638 = vmatmul.mubr.f32.gmra.mrb[24].mxu1 %v102_v15  ;;  %v70_v14 = vld [vmem:[%s1680_s0 + $0x1c0] sm:$0xff] }
  0x58   :  { %859 = vmatprep.mubr.msk.f32.mxu0 %vm160_vm0, %v41_v16  ;;  %891 = vmatprep.mubr.msk.f32.mxu1 %vm160_vm0, %v105_v17  ;;  %v134_v15 = vld [vmem:[%s1680_s0 + $0x3c0] sm:$0xff]  ;;  %v73_v16 = vld [vmem:[%s1680_s0 + $0x1d8] sm:$0xff] }
  0x59   :  { %v137_v17 = vld [vmem:[%s1680_s0 + $0x3d8] sm:$0xff] }
  0x5b   :  { %483 = vmatmul.mubr.f32.gmra.mrb[26].mxu0 %v40_v18  ;;  %643 = vmatmul.mubr.f32.gmra.mrb[26].mxu1 %v104_v19  ;;  %v72_v18 = vld [vmem:[%s1680_s0 + $0x1d0] sm:$0xff] }
  0x5c   :  { %860 = vmatprep.mubr.msk.f32.mxu0 %vm160_vm0, %v43_v20  ;;  %892 = vmatprep.mubr.msk.f32.mxu1 %vm160_vm0, %v107_v21  ;;  %v136_v19 = vld [vmem:[%s1680_s0 + $0x3d0] sm:$0xff]  ;;  %v75_v20 = vld [vmem:[%s1680_s0 + $0x1e8] sm:$0xff] }
  0x5d   :  { %v139_v21 = vld [vmem:[%s1680_s0 + $0x3e8] sm:$0xff] }
  0x5f   :  { %488 = vmatmul.mubr.f32.gmra.mrb[28].mxu0 %v42_v22  ;;  %648 = vmatmul.mubr.f32.gmra.mrb[28].mxu1 %v106_v23  ;;  %v74_v22 = vld [vmem:[%s1680_s0 + $0x1e0] sm:$0xff] }
  0x60   :  { %861 = vmatprep.mubr.msk.f32.mxu0 %vm160_vm0, %v45_v24  ;;  %893 = vmatprep.mubr.msk.f32.mxu1 %vm160_vm0, %v109_v25  ;;  %v138_v23 = vld [vmem:[%s1680_s0 + $0x3e0] sm:$0xff]  ;;  %v77_v24 = vld [vmem:[%s1680_s0 + $0x1f8] sm:$0xff] }
  0x61   :  { %v141_v25 = vld [vmem:[%s1680_s0 + $0x3f8] sm:$0xff] }
  0x63   :  { %493 = vmatmul.mubr.f32.gmra.mrb[30].mxu0 %v44_v26  ;;  %653 = vmatmul.mubr.f32.gmra.mrb[30].mxu1 %v108_v27  ;;  %v76_v26 = vld [vmem:[%s1680_s0 + $0x1f0] sm:$0xff] }
  0x64   :  { %862 = vmatprep.mubr.msk.f32.mxu0 %vm160_vm0, %v47_v28  ;;  %894 = vmatprep.mubr.msk.f32.mxu1 %vm160_vm0, %v111_v29  ;;  %v140_v27 = vld [vmem:[%s1680_s0 + $0x3f0] sm:$0xff] }
  0x67   :  { %498 = vmatmul.mubr.f32.gmra.mrb[32].mxu0 %v46_v30  ;;  %658 = vmatmul.mubr.f32.gmra.mrb[32].mxu1 %v110_v31 }
  0x68   :  { %863 = vmatprep.mubr.msk.f32.mxu0 %vm160_vm0, %v49_v32  ;;  %895 = vmatprep.mubr.msk.f32.mxu1 %vm160_vm0, %v113_v33 }
  0x6b   :  { %503 = vmatmul.mubr.f32.gmra.mrb[34].mxu0 %v48_v34  ;;  %663 = vmatmul.mubr.f32.gmra.mrb[34].mxu1 %v112_v35 }
  0x6c   :  { %864 = vmatprep.mubr.msk.f32.mxu0 %vm160_vm0, %v51_v36  ;;  %896 = vmatprep.mubr.msk.f32.mxu1 %vm160_vm0, %v115_v37 }
  0x6f   :  { %508 = vmatmul.mubr.f32.gmra.mrb[36].mxu0 %v50_v38  ;;  %668 = vmatmul.mubr.f32.gmra.mrb[36].mxu1 %v114_v39 }
  0x70   :  { %865 = vmatprep.mubr.msk.f32.mxu0 %vm160_vm0, %v53_v40  ;;  %897 = vmatprep.mubr.msk.f32.mxu1 %vm160_vm0, %v117_v41 }
  0x73   :  { %513 = vmatmul.mubr.f32.gmra.mrb[38].mxu0 %v52_v42  ;;  %673 = vmatmul.mubr.f32.gmra.mrb[38].mxu1 %v116_v43 }
  0x74   :  { %866 = vmatprep.mubr.msk.f32.mxu0 %vm160_vm0, %v55_v44  ;;  %898 = vmatprep.mubr.msk.f32.mxu1 %vm160_vm0, %v119_v45 }
  0x77   :  { %518 = vmatmul.mubr.f32.gmra.mrb[40].mxu0 %v54_v46  ;;  %678 = vmatmul.mubr.f32.gmra.mrb[40].mxu1 %v118_v47 }
  0x78   :  { %867 = vmatprep.mubr.msk.f32.mxu0 %vm160_vm0, %v57_v48  ;;  %899 = vmatprep.mubr.msk.f32.mxu1 %vm160_vm0, %v121_v49 }
  0x7b   :  { %523 = vmatmul.mubr.f32.gmra.mrb[42].mxu0 %v56_v50  ;;  %683 = vmatmul.mubr.f32.gmra.mrb[42].mxu1 %v120_v51 }
  0x7c   :  { %868 = vmatprep.mubr.msk.f32.mxu0 %vm160_vm0, %v59_v52  ;;  %900 = vmatprep.mubr.msk.f32.mxu1 %vm160_vm0, %v123_v53 }
  0x7f   :  { %528 = vmatmul.mubr.f32.gmra.mrb[44].mxu0 %v58_v54  ;;  %688 = vmatmul.mubr.f32.gmra.mrb[44].mxu1 %v122_v55 }
  0x80   :  { %869 = vmatprep.mubr.msk.f32.mxu0 %vm160_vm0, %v61_v56  ;;  %901 = vmatprep.mubr.msk.f32.mxu1 %vm160_vm0, %v125_v57 }
  0x83   :  { %533 = vmatmul.mubr.f32.gmra.mrb[46].mxu0 %v60_v58  ;;  %693 = vmatmul.mubr.f32.gmra.mrb[46].mxu1 %v124_v59 }
  0x84   :  { %870 = vmatprep.mubr.msk.f32.mxu0 %vm160_vm0, %v63_v60  ;;  %902 = vmatprep.mubr.msk.f32.mxu1 %vm160_vm0, %v127_v61 }
  0x87   :  { %538 = vmatmul.mubr.f32.gmra.mrb[48].mxu0 %v62_v62  ;;  %698 = vmatmul.mubr.f32.gmra.mrb[48].mxu1 %v126_v63 }
  0x88   :  { %871 = vmatprep.mubr.msk.f32.mxu0 %vm160_vm0, %v65_v0  ;;  %903 = vmatprep.mubr.msk.f32.mxu1 %vm160_vm0, %v129_v1 }
  0x8b   :  { %543 = vmatmul.mubr.f32.gmra.mrb[50].mxu0 %v64_v2  ;;  %703 = vmatmul.mubr.f32.gmra.mrb[50].mxu1 %v128_v3 }
  0x8c   :  { %872 = vmatprep.mubr.msk.f32.mxu0 %vm160_vm0, %v67_v4  ;;  %904 = vmatprep.mubr.msk.f32.mxu1 %vm160_vm0, %v131_v5 }
  0x8f   :  { %548 = vmatmul.mubr.f32.gmra.mrb[52].mxu0 %v66_v6  ;;  %708 = vmatmul.mubr.f32.gmra.mrb[52].mxu1 %v130_v7 }
  0x90   :  { %873 = vmatprep.mubr.msk.f32.mxu0 %vm160_vm0, %v69_v8  ;;  %905 = vmatprep.mubr.msk.f32.mxu1 %vm160_vm0, %v133_v9 }
  0x93   :  { %553 = vmatmul.mubr.f32.gmra.mrb[54].mxu0 %v68_v10  ;;  %713 = vmatmul.mubr.f32.gmra.mrb[54].mxu1 %v132_v11 }
  0x94   :  { %874 = vmatprep.mubr.msk.f32.mxu0 %vm160_vm0, %v71_v12  ;;  %906 = vmatprep.mubr.msk.f32.mxu1 %vm160_vm0, %v135_v13 }
  0x97   :  { %558 = vmatmul.mubr.f32.gmra.mrb[56].mxu0 %v70_v14  ;;  %718 = vmatmul.mubr.f32.gmra.mrb[56].mxu1 %v134_v15 }
  0x98   :  { %875 = vmatprep.mubr.msk.f32.mxu0 %vm160_vm0, %v73_v16  ;;  %907 = vmatprep.mubr.msk.f32.mxu1 %vm160_vm0, %v137_v17 }
  0x9b   :  { %563 = vmatmul.mubr.f32.gmra.mrb[58].mxu0 %v72_v18  ;;  %723 = vmatmul.mubr.f32.gmra.mrb[58].mxu1 %v136_v19 }
  0x9c   :  { %876 = vmatprep.mubr.msk.f32.mxu0 %vm160_vm0, %v75_v20  ;;  %908 = vmatprep.mubr.msk.f32.mxu1 %vm160_vm0, %v139_v21 }
  0x9f   :  { %568 = vmatmul.mubr.f32.gmra.mrb[60].mxu0 %v74_v22  ;;  %728 = vmatmul.mubr.f32.gmra.mrb[60].mxu1 %v138_v23 }
  0xa0   :  { %877 = vmatprep.mubr.msk.f32.mxu0 %vm160_vm0, %v77_v24  ;;  %909 = vmatprep.mubr.msk.f32.mxu1 %vm160_vm0, %v141_v25 }
  0xa3   :  { %573 = vmatmul.mubr.f32.gmra.mrb[62].mxu0 %v76_v26  ;;  %733 = vmatmul.mubr.f32.gmra.mrb[62].mxu1 %v140_v27 }
  0xfa   :  { %v1498_v28 = vpop.f32.mrb[0].mxu0  ;;  %v1500_v29 = vpop.f32.mrb[0].mxu1 }
  0xfb   :  { %v421_v30 = vpop.f32.mrb[1].mxu0  ;;  %v581_v31 = vpop.f32.mrb[1].mxu1 }
  0xfe   :  { %v1502_v32 = vpop.f32.mrb[2].mxu0  ;;  %v1504_v33 = vpop.f32.mrb[2].mxu1 }
  0xff   :  { %v426_v34 = vpop.f32.mrb[3].mxu0  ;;  %v586_v35 = vpop.f32.mrb[3].mxu1 }
 0x102   :  { %v1506_v36 = vpop.f32.mrb[4].mxu0  ;;  %v1508_v37 = vpop.f32.mrb[4].mxu1 }
 0x103   :  { %v431_v38 = vpop.f32.mrb[5].mxu0  ;;  %v591_v39 = vpop.f32.mrb[5].mxu1 }
 0x106   :  { %v1510_v40 = vpop.f32.mrb[6].mxu0  ;;  %v1512_v41 = vpop.f32.mrb[6].mxu1 }
 0x107   :  { %v436_v42 = vpop.f32.mrb[7].mxu0  ;;  %v596_v43 = vpop.f32.mrb[7].mxu1 }
 0x108   :  { %v1567_v42 = vld [vmem:[%s1681_s2] ss:$0 sm:$0xff] }
 0x10a   :  { %v1514_v44 = vpop.f32.mrb[8].mxu0  ;;  %v1516_v45 = vpop.f32.mrb[8].mxu1 }
 0x10b   :  { %v441_v46 = vpop.f32.mrb[9].mxu0  ;;  %v601_v47 = vpop.f32.mrb[9].mxu1 }
 0x10e   :  { %v1518_v48 = vpop.f32.mrb[10].mxu0  ;;  %v1520_v49 = vpop.f32.mrb[10].mxu1 }
 0x10f   :  { %v446_v50 = vpop.f32.mrb[11].mxu0  ;;  %v606_v51 = vpop.f32.mrb[11].mxu1 }
 0x112   :  { %v1522_v52 = vpop.f32.mrb[12].mxu0  ;;  %v1524_v53 = vpop.f32.mrb[12].mxu1 }
 0x113   :  { %v451_v54 = vpop.f32.mrb[13].mxu0  ;;  %v611_v55 = vpop.f32.mrb[13].mxu1 }
 0x116   :  { %v1526_v56 = vpop.f32.mrb[14].mxu0  ;;  %v1528_v57 = vpop.f32.mrb[14].mxu1 }
 0x117   :  { %v456_v58 = vpop.f32.mrb[15].mxu0  ;;  %v616_v59 = vpop.f32.mrb[15].mxu1 }
 0x11a   :  { %v1530_v60 = vpop.f32.mrb[16].mxu0  ;;  %v1532_v61 = vpop.f32.mrb[16].mxu1 }
 0x11b   :  { %v461_v62 = vpop.f32.mrb[17].mxu0  ;;  %v621_v63 = vpop.f32.mrb[17].mxu1 }
 0x11e   :  { %v1534_v0 = vpop.f32.mrb[18].mxu0  ;;  %v1536_v1 = vpop.f32.mrb[18].mxu1 }
 0x11f   :  { %v466_v2 = vpop.f32.mrb[19].mxu0  ;;  %v626_v3 = vpop.f32.mrb[19].mxu1 }
 0x122   :  { %v1538_v4 = vpop.f32.mrb[20].mxu0  ;;  %v1540_v5 = vpop.f32.mrb[20].mxu1 }
 0x123   :  { %v471_v6 = vpop.f32.mrb[21].mxu0  ;;  %v631_v7 = vpop.f32.mrb[21].mxu1 }
 0x126   :  { %v1542_v8 = vpop.f32.mrb[22].mxu0  ;;  %v1544_v9 = vpop.f32.mrb[22].mxu1 }
 0x127   :  { %v476_v10 = vpop.f32.mrb[23].mxu0  ;;  %v636_v11 = vpop.f32.mrb[23].mxu1 }
 0x12a   :  { %v1546_v12 = vpop.f32.mrb[24].mxu0  ;;  %v1548_v13 = vpop.f32.mrb[24].mxu1 }
 0x12b   :  { %v481_v14 = vpop.f32.mrb[25].mxu0  ;;  %v641_v15 = vpop.f32.mrb[25].mxu1 }
 0x12e   :  { %v1550_v16 = vpop.f32.mrb[26].mxu0  ;;  %v1552_v17 = vpop.f32.mrb[26].mxu1 }
 0x12f   :  { %v486_v18 = vpop.f32.mrb[27].mxu0  ;;  %v646_v19 = vpop.f32.mrb[27].mxu1 }
 0x132   :  { %v1554_v20 = vpop.f32.mrb[28].mxu0  ;;  %v1556_v21 = vpop.f32.mrb[28].mxu1 }
 0x133   :  { %v491_v22 = vpop.f32.mrb[29].mxu0  ;;  %v651_v23 = vpop.f32.mrb[29].mxu1 }
 0x136   :  { %v1558_v24 = vpop.f32.mrb[30].mxu0  ;;  %v1560_v25 = vpop.f32.mrb[30].mxu1 }
 0x137   :  { %v496_v26 = vpop.f32.mrb[31].mxu0  ;;  %v656_v27 = vpop.f32.mrb[31].mxu1 }
 0x13a   :  { %v499_v30 = vpop.f32.mrb[32].mxu0  ;;  %v659_v31 = vpop.f32.mrb[32].mxu1 }
 0x13b   :  { %v738_v34 = vmax.f32 %v1498_v28, %v499_v30  ;;  %v754_v35 = vmax.f32 %v1500_v29, %v659_v31  ;;  %v501_v38 = vpop.f32.mrb[33].mxu0  ;;  %v661_v39 = vpop.f32.mrb[33].mxu1 }
 0x13d   :  { %v770_v43 = vmax.f32 %v738_v34, %v754_v35 }
 0x13e   :  { %v504_v46 = vpop.f32.mrb[34].mxu0  ;;  %v664_v47 = vpop.f32.mrb[34].mxu1 }
 0x13f   :  { %v793_v50 = vadd.f32 %v1567_v42, %v770_v43  ;;  %v739_v51 = vmax.f32 %v1502_v32, %v504_v46  ;;  %v755_v54 = vmax.f32 %v1504_v33, %v664_v47  ;;  %v506_v55 = vpop.f32.mrb[35].mxu0  ;;  %v666_v28 = vpop.f32.mrb[35].mxu1 }
 0x141   :  { %v809_v29 = vmax.f32 %v793_v50, 0.0  ;;  %v771_v58 = vmax.f32 %v739_v51, %v755_v54 }
 0x142   :  { %v509_v59 = vpop.f32.mrb[36].mxu0  ;;  %v669_v62 = vpop.f32.mrb[36].mxu1 }
 0x143   :  { %826 = vst.msk [vmem:[%s1682_s3] sm:$0xff] %vm825_vm1, %v809_v29  ;;  %v794_v63 = vadd.f32 %v1567_v42, %v771_v58  ;;  %v740_v2 = vmax.f32 %v1506_v36, %v509_v59  ;;  %v756_v32 = vmax.f32 %v1508_v37, %v669_v62  ;;  %v511_v3 = vpop.f32.mrb[37].mxu0  ;;  %v671_v33 = vpop.f32.mrb[37].mxu1 }
 0x145   :  { %v810_v6 = vmax.f32 %v794_v63, 0.0  ;;  %v772_v7 = vmax.f32 %v740_v2, %v756_v32 }
 0x146   :  { %v514_v10 = vpop.f32.mrb[38].mxu0  ;;  %v674_v11 = vpop.f32.mrb[38].mxu1 }
 0x147   :  { %827 = vst.msk [vmem:[%s1682_s3 + $0x8] sm:$0xff] %vm825_vm1, %v810_v6  ;;  %v795_v14 = vadd.f32 %v1567_v42, %v772_v7  ;;  %v741_v15 = vmax.f32 %v1510_v40, %v514_v10  ;;  %v757_v18 = vmax.f32 %v1512_v41, %v674_v11  ;;  %v516_v36 = vpop.f32.mrb[39].mxu0  ;;  %v676_v19 = vpop.f32.mrb[39].mxu1 }
 0x149   :  { %v811_v37 = vmax.f32 %v795_v14, 0.0  ;;  %v773_v22 = vmax.f32 %v741_v15, %v757_v18 }
 0x14a   :  { %v519_v23 = vpop.f32.mrb[40].mxu0  ;;  %v679_v26 = vpop.f32.mrb[40].mxu1 }
 0x14b   :  { %828 = vst.msk [vmem:[%s1682_s3 + $0x10] sm:$0xff] %vm825_vm1, %v811_v37  ;;  %v796_v27 = vadd.f32 %v1567_v42, %v773_v22  ;;  %v742_v30 = vmax.f32 %v1514_v44, %v519_v23  ;;  %v758_v31 = vmax.f32 %v1516_v45, %v679_v26  ;;  %v521_v40 = vpop.f32.mrb[41].mxu0  ;;  %v681_v34 = vpop.f32.mrb[41].mxu1 }
 0x14d   :  { %v812_v41 = vmax.f32 %v796_v27, 0.0  ;;  %v774_v35 = vmax.f32 %v742_v30, %v758_v31 }
 0x14e   :  { %v524_v38 = vpop.f32.mrb[42].mxu0  ;;  %v684_v39 = vpop.f32.mrb[42].mxu1 }
 0x14f   :  { %829 = vst.msk [vmem:[%s1682_s3 + $0x18] sm:$0xff] %vm825_vm1, %v812_v41  ;;  %v797_v43 = vadd.f32 %v1567_v42, %v774_v35  ;;  %v743_v46 = vmax.f32 %v1518_v48, %v524_v38  ;;  %v759_v47 = vmax.f32 %v1520_v49, %v684_v39  ;;  %v526_v44 = vpop.f32.mrb[43].mxu0  ;;  %v686_v50 = vpop.f32.mrb[43].mxu1 }
 0x151   :  { %v813_v45 = vmax.f32 %v797_v43, 0.0  ;;  %v775_v51 = vmax.f32 %v743_v46, %v759_v47 }
 0x152   :  { %v529_v54 = vpop.f32.mrb[44].mxu0  ;;  %v689_v55 = vpop.f32.mrb[44].mxu1 }
 0x153   :  { %830 = vst.msk [vmem:[%s1682_s3 + $0x20] sm:$0xff] %vm825_vm1, %v813_v45  ;;  %v798_v28 = vadd.f32 %v1567_v42, %v775_v51  ;;  %v744_v29 = vmax.f32 %v1522_v52, %v529_v54  ;;  %v760_v58 = vmax.f32 %v1524_v53, %v689_v55  ;;  %v531_v48 = vpop.f32.mrb[45].mxu0  ;;  %v691_v59 = vpop.f32.mrb[45].mxu1 }
 0x155   :  { %v814_v49 = vmax.f32 %v798_v28, 0.0  ;;  %v776_v62 = vmax.f32 %v744_v29, %v760_v58 }
 0x156   :  { %v534_v63 = vpop.f32.mrb[46].mxu0  ;;  %v694_v2 = vpop.f32.mrb[46].mxu1 }
 0x157   :  { %831 = vst.msk [vmem:[%s1682_s3 + $0x28] sm:$0xff] %vm825_vm1, %v814_v49  ;;  %v799_v32 = vadd.f32 %v1567_v42, %v776_v62  ;;  %v745_v3 = vmax.f32 %v1526_v56, %v534_v63  ;;  %v761_v33 = vmax.f32 %v1528_v57, %v694_v2  ;;  %v536_v52 = vpop.f32.mrb[47].mxu0  ;;  %v696_v6 = vpop.f32.mrb[47].mxu1 }
 0x159   :  { %v815_v53 = vmax.f32 %v799_v32, 0.0  ;;  %v777_v7 = vmax.f32 %v745_v3, %v761_v33 }
 0x15a   :  { %v539_v10 = vpop.f32.mrb[48].mxu0  ;;  %v699_v11 = vpop.f32.mrb[48].mxu1 }
 0x15b   :  { %832 = vst.msk [vmem:[%s1682_s3 + $0x30] sm:$0xff] %vm825_vm1, %v815_v53  ;;  %v800_v14 = vadd.f32 %v1567_v42, %v777_v7  ;;  %v746_v15 = vmax.f32 %v1530_v60, %v539_v10  ;;  %v762_v18 = vmax.f32 %v1532_v61, %v699_v11  ;;  %v541_v56 = vpop.f32.mrb[49].mxu0  ;;  %v701_v36 = vpop.f32.mrb[49].mxu1 }
 0x15d   :  { %v816_v57 = vmax.f32 %v800_v14, 0.0  ;;  %v778_v19 = vmax.f32 %v746_v15, %v762_v18 }
 0x15e   :  { %v544_v37 = vpop.f32.mrb[50].mxu0  ;;  %v704_v22 = vpop.f32.mrb[50].mxu1 }
 0x15f   :  { %833 = vst.msk [vmem:[%s1682_s3 + $0x38] sm:$0xff] %vm825_vm1, %v816_v57  ;;  %v801_v23 = vadd.f32 %v1567_v42, %v778_v19  ;;  %v747_v26 = vmax.f32 %v1534_v0, %v544_v37  ;;  %v763_v27 = vmax.f32 %v1536_v1, %v704_v22  ;;  %v546_v60 = vpop.f32.mrb[51].mxu0  ;;  %v706_v30 = vpop.f32.mrb[51].mxu1 }
 0x161   :  { %v817_v61 = vmax.f32 %v801_v23, 0.0  ;;  %v779_v31 = vmax.f32 %v747_v26, %v763_v27 }
 0x162   :  { %v549_v40 = vpop.f32.mrb[52].mxu0  ;;  %v709_v34 = vpop.f32.mrb[52].mxu1 }
 0x163   :  { %834 = vst.msk [vmem:[%s1682_s3 + $0x40] sm:$0xff] %vm825_vm1, %v817_v61  ;;  %v802_v41 = vadd.f32 %v1567_v42, %v779_v31  ;;  %v748_v35 = vmax.f32 %v1538_v4, %v549_v40  ;;  %v764_v38 = vmax.f32 %v1540_v5, %v709_v34  ;;  %v551_v0 = vpop.f32.mrb[53].mxu0  ;;  %v711_v39 = vpop.f32.mrb[53].mxu1 }
 0x165   :  { %v818_v1 = vmax.f32 %v802_v41, 0.0  ;;  %v780_v43 = vmax.f32 %v748_v35, %v764_v38 }
 0x166   :  { %v554_v46 = vpop.f32.mrb[54].mxu0  ;;  %v714_v47 = vpop.f32.mrb[54].mxu1 }
 0x167   :  { %835 = vst.msk [vmem:[%s1682_s3 + $0x48] sm:$0xff] %vm825_vm1, %v818_v1  ;;  %v803_v44 = vadd.f32 %v1567_v42, %v780_v43  ;;  %v749_v50 = vmax.f32 %v1542_v8, %v554_v46  ;;  %v765_v45 = vmax.f32 %v1544_v9, %v714_v47  ;;  %v556_v4 = vpop.f32.mrb[55].mxu0  ;;  %v716_v51 = vpop.f32.mrb[55].mxu1 }
 0x169   :  { %v819_v5 = vmax.f32 %v803_v44, 0.0  ;;  %v781_v54 = vmax.f32 %v749_v50, %v765_v45 }
 0x16a   :  { %v559_v55 = vpop.f32.mrb[56].mxu0  ;;  %v719_v28 = vpop.f32.mrb[56].mxu1 }
 0x16b   :  { %836 = vst.msk [vmem:[%s1682_s3 + $0x50] sm:$0xff] %vm825_vm1, %v819_v5  ;;  %v804_v29 = vadd.f32 %v1567_v42, %v781_v54  ;;  %v750_v58 = vmax.f32 %v1546_v12, %v559_v55  ;;  %v766_v48 = vmax.f32 %v1548_v13, %v719_v28  ;;  %v561_v8 = vpop.f32.mrb[57].mxu0  ;;  %v721_v59 = vpop.f32.mrb[57].mxu1 }
 0x16d   :  { %v820_v9 = vmax.f32 %v804_v29, 0.0  ;;  %v782_v49 = vmax.f32 %v750_v58, %v766_v48 }
 0x16e   :  { %v564_v62 = vpop.f32.mrb[58].mxu0  ;;  %v724_v63 = vpop.f32.mrb[58].mxu1 }
 0x16f   :  { %837 = vst.msk [vmem:[%s1682_s3 + $0x58] sm:$0xff] %vm825_vm1, %v820_v9  ;;  %v805_v2 = vadd.f32 %v1567_v42, %v782_v49  ;;  %v751_v32 = vmax.f32 %v1550_v16, %v564_v62  ;;  %v767_v3 = vmax.f32 %v1552_v17, %v724_v63  ;;  %v566_v12 = vpop.f32.mrb[59].mxu0  ;;  %v726_v33 = vpop.f32.mrb[59].mxu1 }
 0x171   :  { %v821_v13 = vmax.f32 %v805_v2, 0.0  ;;  %v783_v52 = vmax.f32 %v751_v32, %v767_v3 }
 0x172   :  { %v569_v6 = vpop.f32.mrb[60].mxu0  ;;  %v729_v53 = vpop.f32.mrb[60].mxu1 }
 0x173   :  { %838 = vst.msk [vmem:[%s1682_s3 + $0x60] sm:$0xff] %vm825_vm1, %v821_v13  ;;  %v806_v7 = vadd.f32 %v1567_v42, %v783_v52  ;;  %v752_v10 = vmax.f32 %v1554_v20, %v569_v6  ;;  %v768_v11 = vmax.f32 %v1556_v21, %v729_v53  ;;  %v571_v16 = vpop.f32.mrb[61].mxu0  ;;  %v731_v14 = vpop.f32.mrb[61].mxu1 }
 0x175   :  { %v822_v17 = vmax.f32 %v806_v7, 0.0  ;;  %v784_v15 = vmax.f32 %v752_v10, %v768_v11 }
 0x176   :  { %v574_v18 = vpop.f32.mrb[62].mxu0  ;;  %v734_v56 = vpop.f32.mrb[62].mxu1 }
 0x177   :  { %839 = vst.msk [vmem:[%s1682_s3 + $0x68] sm:$0xff] %vm825_vm1, %v822_v17  ;;  %v807_v36 = vadd.f32 %v1567_v42, %v784_v15  ;;  %v753_v57 = vmax.f32 %v1558_v24, %v574_v18  ;;  %v769_v19 = vmax.f32 %v1560_v25, %v734_v56  ;;  %v576_v20 = vpop.f32.mrb[63].mxu0  ;;  %v736_v37 = vpop.f32.mrb[63].mxu1 }
 0x179   :  { %v823_v21 = vmax.f32 %v807_v36, 0.0  ;;  %v785_v22 = vmax.f32 %v753_v57, %v769_v19 }
 0x17b   :  { %840 = vst.msk [vmem:[%s1682_s3 + $0x70] sm:$0xff] %vm825_vm1, %v823_v21  ;;  %v808_v23 = vadd.f32 %v1567_v42, %v785_v22 }
 0x17d   :  { %v824_v26 = vmax.f32 %v808_v23, 0.0 }
 0x17f   :  { %841 = vst.msk [vmem:[%s1682_s3 + $0x78] sm:$0xff] %vm825_vm1, %v824_v26 }

// kernel: simple_cnn_forward.5
= control target key start
LH: loop header
LB: loop body
LE: loop exit
PB: predicated region body
PF: predicated region fallthrough
CT: control target
= control target key end

     0   :  { %v1693_v47 = vmov 1983009808   ;;  %v296_v49 = vlaneseq  ;;  %s2614_s0 = inlined_call_operand.vmem [shape: f32[2,2048], index: 0, kind: input, shape index: {}]   ;;  %s2615_s1 = inlined_call_operand.vmem [shape: f32[2048,128], index: 1, kind: input, shape index: {}]   ;;  %s2616_s2 = inlined_call_operand.vmem [shape: f32[1,128], index: 2, kind: input, shape index: {}]   ;;  %s2617_s3 = inlined_call_operand.vmem [shape: f32[128,10], index: 3, kind: input, shape index: {}]   ;;  %s2618_s4 = inlined_call_operand.vmem [shape: f32[1,10], index: 4, kind: input, shape index: {}]   ;;  %s2619_s5 = inlined_call_operand.hbm [shape: f32[2,10], index: 5, kind: output, shape index: {}]  }
   0x1   :  { %v41_v0 = vld [vmem:[%s2615_s1 + $0x80] sm:$0xff]  ;;  %v42_v1 = vld [vmem:[%s2615_s1 + $0x88] sm:$0xff]  ;;  %v43_v11 = vld [vmem:[%s2615_s1 + $0x90] sm:$0xff]  ;;  %v294_v48 = vunpack.c.l.s4 %v1693_v47 }
   0x2   :  { %v25_v2 = vld [vmem:[%s2615_s1] sm:$0xff]  ;;  %v1380_v3 = vpack.c.bf16 %v42_v1, %v41_v0  ;;  %v26_v4 = vld [vmem:[%s2615_s1 + $0x8] sm:$0xff]  ;;  %v44_v13 = vld [vmem:[%s2615_s1 + $0x98] sm:$0xff]  ;;  %v297_v0 = vshrl.u32 %v296_v49, 7 }
   0x3   :  { %v73_v5 = vld [vmem:[%s2615_s1 + $0x180] sm:$0xff]  ;;  %v74_v6 = vld [vmem:[%s2615_s1 + $0x188] sm:$0xff]  ;;  %v1382_v7 = vpack.c.bf16 %v26_v4, %v25_v2  ;;  %v27_v14 = vld [vmem:[%s2615_s1 + $0x10] sm:$0xff]  ;;  %v1384_v16 = vpack.c.bf16 %v44_v13, %v43_v11  ;;  %v295_v63 = vunpack.c.0.s8 %v294_v48 }
   0x4   :  { %v1412_v8 = vpack.c.bf16 %v74_v6, %v73_v5  ;;  %v57_v9 = vld [vmem:[%s2615_s1 + $0x100] sm:$0xff]  ;;  %v58_v10 = vld [vmem:[%s2615_s1 + $0x108] sm:$0xff]  ;;  %1381 = vmatprep.subr.bf16.mxu0 %v1380_v3  ;;  %v28_v15 = vld [vmem:[%s2615_s1 + $0x18] sm:$0xff] }
   0x5   :  { %v1414_v12 = vpack.c.bf16 %v58_v10, %v57_v9  ;;  %1383 = vmatpush3.bf16.msra.mxu0 %v1382_v7  ;;  %v1386_v17 = vpack.c.bf16 %v28_v15, %v27_v14  ;;  %v75_v18 = vld [vmem:[%s2615_s1 + $0x190] sm:$0xff]  ;;  %v76_v19 = vld [vmem:[%s2615_s1 + $0x198] sm:$0xff]  ;;  %v45_v23 = vld [vmem:[%s2615_s1 + $0xa0] sm:$0xff]  ;;  %v1878_v13 = vsub.s32 %v295_v63, %v297_v0 }
   0x6   :  { %1413 = vmatprep.subr.bf16.mxu1 %v1412_v8  ;;  %v59_v20 = vld [vmem:[%s2615_s1 + $0x110] sm:$0xff]  ;;  %v1416_v21 = vpack.c.bf16 %v76_v19, %v75_v18  ;;  %v60_v22 = vld [vmem:[%s2615_s1 + $0x118] sm:$0xff]  ;;  %v46_v24 = vld [vmem:[%s2615_s1 + $0xa8] sm:$0xff]  ;;  %1385 = vmatprep.subr.bf16.mxu0 %v1384_v16 }
   0x7   :  { %1415 = vmatpush3.bf16.msra.mxu1 %v1414_v12  ;;  %v1418_v25 = vpack.c.bf16 %v60_v22, %v59_v20  ;;  %v1388_v26 = vpack.c.bf16 %v46_v24, %v45_v23  ;;  %v29_v27 = vld [vmem:[%s2615_s1 + $0x20] sm:$0xff]  ;;  %v30_v28 = vld [vmem:[%s2615_s1 + $0x28] sm:$0xff]  ;;  %v47_v35 = vld [vmem:[%s2615_s1 + $0xb0] sm:$0xff] }
   0x8   :  { %v77_v29 = vld [vmem:[%s2615_s1 + $0x1a0] sm:$0xff]  ;;  %1417 = vmatprep.subr.bf16.mxu1 %v1416_v21  ;;  %v78_v30 = vld [vmem:[%s2615_s1 + $0x1a8] sm:$0xff]  ;;  %v1390_v33 = vpack.c.bf16 %v30_v28, %v29_v27  ;;  %v48_v36 = vld [vmem:[%s2615_s1 + $0xb8] sm:$0xff] }
   0x9   :  { %v61_v31 = vld [vmem:[%s2615_s1 + $0x120] sm:$0xff]  ;;  %v62_v32 = vld [vmem:[%s2615_s1 + $0x128] sm:$0xff]  ;;  %1387 = vmatpush3.bf16.msra.mxu0 %v1386_v17  ;;  %v1420_v34 = vpack.c.bf16 %v78_v30, %v77_v29  ;;  %v31_v37 = vld [vmem:[%s2615_s1 + $0x30] sm:$0xff]  ;;  %v1392_v39 = vpack.c.bf16 %v48_v36, %v47_v35 }
   0xa   :  { %1389 = vmatprep.subr.bf16.mxu0 %v1388_v26  ;;  %v1422_v38 = vpack.c.bf16 %v62_v32, %v61_v31  ;;  %v32_v40 = vld [vmem:[%s2615_s1 + $0x38] sm:$0xff]  ;;  %v79_v41 = vld [vmem:[%s2615_s1 + $0x1b0] sm:$0xff]  ;;  %v49_v46 = vld [vmem:[%s2615_s1 + $0xc0] sm:$0xff] }
   0xb   :  { %1419 = vmatpush3.bf16.msra.mxu1 %v1418_v25  ;;  %v80_v42 = vld [vmem:[%s2615_s1 + $0x1b8] sm:$0xff]  ;;  %v63_v44 = vld [vmem:[%s2615_s1 + $0x130] sm:$0xff]  ;;  %v50_v50 = vld [vmem:[%s2615_s1 + $0xc8] sm:$0xff]  ;;  %v1394_v51 = vpack.c.bf16 %v32_v40, %v31_v37 }
   0xc   :  { %1421 = vmatprep.subr.bf16.mxu1 %v1420_v34  ;;  %v1424_v43 = vpack.c.bf16 %v80_v42, %v79_v41  ;;  %v64_v45 = vld [vmem:[%s2615_s1 + $0x138] sm:$0xff]  ;;  %v81_v52 = vld [vmem:[%s2615_s1 + $0x1c0] sm:$0xff]  ;;  %v82_v53 = vld [vmem:[%s2615_s1 + $0x1c8] sm:$0xff]  ;;  %v1396_v55 = vpack.c.bf16 %v50_v50, %v49_v46 }
   0xd   :  { %1391 = vmatpush3.bf16.msra.mxu0 %v1390_v33  ;;  %v1426_v54 = vpack.c.bf16 %v64_v45, %v63_v44  ;;  %v33_v56 = vld [vmem:[%s2615_s1 + $0x40] sm:$0xff]  ;;  %v34_v57 = vld [vmem:[%s2615_s1 + $0x48] sm:$0xff]  ;;  %v1428_v59 = vpack.c.bf16 %v82_v53, %v81_v52  ;;  %v51_v61 = vld [vmem:[%s2615_s1 + $0xd0] sm:$0xff] }
   0xe   :  { %1393 = vmatprep.subr.bf16.mxu0 %v1392_v39  ;;  %v65_v58 = vld [vmem:[%s2615_s1 + $0x140] sm:$0xff]  ;;  %v66_v60 = vld [vmem:[%s2615_s1 + $0x148] sm:$0xff]  ;;  %v52_v62 = vld [vmem:[%s2615_s1 + $0xd8] sm:$0xff]  ;;  %v1398_v3 = vpack.c.bf16 %v34_v57, %v33_v56 }
   0xf   :  { %1423 = vmatpush3.bf16.msra.mxu1 %v1422_v38  ;;  %v83_v1 = vld [vmem:[%s2615_s1 + $0x1d0] sm:$0xff]  ;;  %v84_v2 = vld [vmem:[%s2615_s1 + $0x1d8] sm:$0xff]  ;;  %v1430_v4 = vpack.c.bf16 %v66_v60, %v65_v58  ;;  %v1400_v5 = vpack.c.bf16 %v52_v62, %v51_v61  ;;  %v53_v11 = vld [vmem:[%s2615_s1 + $0xe0] sm:$0xff] }
  0x10   :  { %1425 = vmatprep.subr.bf16.mxu1 %v1424_v43  ;;  %v35_v6 = vld [vmem:[%s2615_s1 + $0x50] sm:$0xff]  ;;  %v36_v7 = vld [vmem:[%s2615_s1 + $0x58] sm:$0xff]  ;;  %v1432_v9 = vpack.c.bf16 %v84_v2, %v83_v1  ;;  %v54_v12 = vld [vmem:[%s2615_s1 + $0xe8] sm:$0xff] }
  0x11   :  { %1395 = vmatpush3.bf16.msra.mxu0 %v1394_v51  ;;  %v67_v8 = vld [vmem:[%s2615_s1 + $0x150] sm:$0xff]  ;;  %v68_v10 = vld [vmem:[%s2615_s1 + $0x158] sm:$0xff]  ;;  %v85_v14 = vld [vmem:[%s2615_s1 + $0x1e0] sm:$0xff]  ;;  %v1402_v16 = vpack.c.bf16 %v36_v7, %v35_v6  ;;  %v1404_v19 = vpack.c.bf16 %v54_v12, %v53_v11 }
  0x12   :  { %1397 = vmatprep.subr.bf16.mxu0 %v1396_v55  ;;  %v86_v15 = vld [vmem:[%s2615_s1 + $0x1e8] sm:$0xff]  ;;  %v37_v17 = vld [vmem:[%s2615_s1 + $0x60] sm:$0xff]  ;;  %v1434_v18 = vpack.c.bf16 %v68_v10, %v67_v8  ;;  %v55_v25 = vld [vmem:[%s2615_s1 + $0xf0] sm:$0xff] }
  0x13   :  { %1427 = vmatpush3.bf16.msra.mxu1 %v1426_v54  ;;  %v38_v20 = vld [vmem:[%s2615_s1 + $0x68] sm:$0xff]  ;;  %v69_v21 = vld [vmem:[%s2615_s1 + $0x160] sm:$0xff]  ;;  %v1436_v23 = vpack.c.bf16 %v86_v15, %v85_v14  ;;  %v56_v26 = vld [vmem:[%s2615_s1 + $0xf8] sm:$0xff] }
  0x14   :  { %1429 = vmatprep.subr.bf16.mxu1 %v1428_v59  ;;  %v21_v22 = vld [vmem:[%s2614_s0] sm:$0xff]  ;;  %v70_v24 = vld [vmem:[%s2615_s1 + $0x168] sm:$0xff]  ;;  %v87_v29 = vld [vmem:[%s2615_s1 + $0x1f0] sm:$0xff]  ;;  %v1406_v31 = vpack.c.bf16 %v38_v20, %v37_v17  ;;  %v1408_v35 = vpack.c.bf16 %v56_v26, %v55_v25 }
  0x15   :  { %1399 = vmatpush3.bf16.msra.mxu0 %v1398_v3  ;;  %v299_v27 = vrot.slane %v21_v22, %v1878_v13  ;;  %v292_v28 = vcombine.high %v21_v22, %v21_v22  ;;  %v88_v30 = vld [vmem:[%s2615_s1 + $0x1f8] sm:$0xff]  ;;  %v1438_v34 = vpack.c.bf16 %v70_v24, %v69_v21  ;;  %v39_v36 = vld [vmem:[%s2615_s1 + $0x70] sm:$0xff]  ;;  %v105_v41 = vld [vmem:[%s2615_s1 + $0x280] sm:$0xff] }
  0x16   :  { %1401 = vmatprep.subr.bf16.mxu0 %v1400_v5  ;;  %v40_v37 = vld [vmem:[%s2615_s1 + $0x78] sm:$0xff]  ;;  %v71_v38 = vld [vmem:[%s2615_s1 + $0x170] sm:$0xff]  ;;  %v1440_v39 = vpack.c.bf16 %v88_v30, %v87_v29  ;;  %v106_v42 = vld [vmem:[%s2615_s1 + $0x288] sm:$0xff] }
  0x17   :  { %1431 = vmatpush3.bf16.msra.mxu1 %v1430_v4  ;;  %v307_v32 = vcombine.high %v299_v27, %v299_v27  ;;  %v306_v33 = vrot.slane %v292_v28, %v1878_v13  ;;  %v72_v40 = vld [vmem:[%s2615_s1 + $0x178] sm:$0xff]  ;;  %v137_v44 = vld [vmem:[%s2615_s1 + $0x380] sm:$0xff]  ;;  %v138_v45 = vld [vmem:[%s2615_s1 + $0x388] sm:$0xff]  ;;  %v1410_v46 = vpack.c.bf16 %v40_v37, %v39_v36  ;;  %v1444_v48 = vpack.c.bf16 %v106_v42, %v105_v41 }
  0x18   :  { %1433 = vmatprep.subr.bf16.mxu1 %v1432_v9  ;;  %v1442_v47 = vpack.c.bf16 %v72_v40, %v71_v38  ;;  %v89_v49 = vld [vmem:[%s2615_s1 + $0x200] sm:$0xff]  ;;  %v90_v50 = vld [vmem:[%s2615_s1 + $0x208] sm:$0xff]  ;;  %v1476_v52 = vpack.c.bf16 %v138_v45, %v137_v44  ;;  %v107_v54 = vld [vmem:[%s2615_s1 + $0x290] sm:$0xff] }
  0x19   :  { %1403 = vmatpush3.bf16.msra.mxu0 %v1402_v16  ;;  %440 = vmatprep.mubr.f32.mxu0 %v307_v32  ;;  %v308_v43 = vcombine.high %v306_v33, %v306_v33  ;;  %v121_v51 = vld [vmem:[%s2615_s1 + $0x300] sm:$0xff]  ;;  %v122_v53 = vld [vmem:[%s2615_s1 + $0x308] sm:$0xff]  ;;  %v108_v55 = vld [vmem:[%s2615_s1 + $0x298] sm:$0xff]  ;;  %v1446_v58 = vpack.c.bf16 %v90_v50, %v89_v49 }
  0x1a   :  { %1405 = vmatprep.subr.bf16.mxu0 %v1404_v19  ;;  %v139_v56 = vld [vmem:[%s2615_s1 + $0x390] sm:$0xff]  ;;  %v140_v57 = vld [vmem:[%s2615_s1 + $0x398] sm:$0xff]  ;;  %v1478_v59 = vpack.c.bf16 %v122_v53, %v121_v51  ;;  %v1448_v60 = vpack.c.bf16 %v108_v55, %v107_v54  ;;  %v109_v2 = vld [vmem:[%s2615_s1 + $0x2a0] sm:$0xff] }
  0x1b   :  { %1435 = vmatpush3.bf16.msra.mxu1 %v1434_v18  ;;  %510 = vmatprep.mubr.f32.mxu1 %v308_v43  ;;  %v91_v61 = vld [vmem:[%s2615_s1 + $0x210] sm:$0xff]  ;;  %v92_v62 = vld [vmem:[%s2615_s1 + $0x218] sm:$0xff]  ;;  %v1480_v0 = vpack.c.bf16 %v140_v57, %v139_v56  ;;  %v110_v3 = vld [vmem:[%s2615_s1 + $0x2a8] sm:$0xff] }
  0x1c   :  { %1437 = vmatprep.subr.bf16.mxu1 %v1436_v23  ;;  %v123_v63 = vld [vmem:[%s2615_s1 + $0x310] sm:$0xff]  ;;  %v124_v1 = vld [vmem:[%s2615_s1 + $0x318] sm:$0xff]  ;;  %v141_v4 = vld [vmem:[%s2615_s1 + $0x3a0] sm:$0xff]  ;;  %v1450_v6 = vpack.c.bf16 %v92_v62, %v91_v61  ;;  %v1452_v8 = vpack.c.bf16 %v110_v3, %v109_v2 }
  0x1d   :  { %1407 = vmatpush3.bf16.msra.mxu0 %v1406_v31  ;;  %v142_v5 = vld [vmem:[%s2615_s1 + $0x3a8] sm:$0xff]  ;;  %v1482_v7 = vpack.c.bf16 %v124_v1, %v123_v63  ;;  %v93_v9 = vld [vmem:[%s2615_s1 + $0x220] sm:$0xff]  ;;  %v111_v15 = vld [vmem:[%s2615_s1 + $0x2b0] sm:$0xff] }
  0x1e   :  { %1409 = vmatprep.subr.bf16.mxu0 %v1408_v35  ;;  %v94_v10 = vld [vmem:[%s2615_s1 + $0x228] sm:$0xff]  ;;  %v125_v11 = vld [vmem:[%s2615_s1 + $0x320] sm:$0xff]  ;;  %v1484_v12 = vpack.c.bf16 %v142_v5, %v141_v4  ;;  %v112_v16 = vld [vmem:[%s2615_s1 + $0x2b8] sm:$0xff] }
  0x1f   :  { %1439 = vmatpush3.bf16.msra.mxu1 %v1438_v34  ;;  %v126_v14 = vld [vmem:[%s2615_s1 + $0x328] sm:$0xff]  ;;  %v143_v17 = vld [vmem:[%s2615_s1 + $0x3b0] sm:$0xff]  ;;  %v144_v18 = vld [vmem:[%s2615_s1 + $0x3b8] sm:$0xff]  ;;  %v1454_v19 = vpack.c.bf16 %v94_v10, %v93_v9  ;;  %v1456_v21 = vpack.c.bf16 %v112_v16, %v111_v15 }
  0x20   :  { %1441 = vmatprep.subr.bf16.mxu1 %v1440_v39  ;;  %v1486_v20 = vpack.c.bf16 %v126_v14, %v125_v11  ;;  %v95_v22 = vld [vmem:[%s2615_s1 + $0x230] sm:$0xff]  ;;  %v96_v23 = vld [vmem:[%s2615_s1 + $0x238] sm:$0xff]  ;;  %v1488_v25 = vpack.c.bf16 %v144_v18, %v143_v17  ;;  %v114_v28 = vld [vmem:[%s2615_s1 + $0x2c8] sm:$0xff] }
  0x21   :  { %1411 = vmatpush3.bf16.msra.mxu0 %v1410_v46  ;;  %v127_v24 = vld [vmem:[%s2615_s1 + $0x330] sm:$0xff]  ;;  %v128_v26 = vld [vmem:[%s2615_s1 + $0x338] sm:$0xff]  ;;  %v145_v29 = vld [vmem:[%s2615_s1 + $0x3c0] sm:$0xff]  ;;  %v1458_v32 = vpack.c.bf16 %v96_v23, %v95_v22 }
  0x22   :  { %1445 = vmatprep.subr.bf16.mxu0 %v1444_v48  ;;  %v146_v30 = vld [vmem:[%s2615_s1 + $0x3c8] sm:$0xff]  ;;  %v1490_v35 = vpack.c.bf16 %v128_v26, %v127_v24  ;;  %v97_v37 = vld [vmem:[%s2615_s1 + $0x240] sm:$0xff]  ;;  %v115_v42 = vld [vmem:[%s2615_s1 + $0x2d0] sm:$0xff] }
  0x23   :  { %1443 = vmatpush3.bf16.msra.mxu1 %v1442_v47  ;;  %v22_v31 = vld [vmem:[%s2614_s0 + $0x8] sm:$0xff]  ;;  %v129_v39 = vld [vmem:[%s2615_s1 + $0x340] sm:$0xff]  ;;  %v1492_v40 = vpack.c.bf16 %v146_v30, %v145_v29  ;;  %v116_v43 = vld [vmem:[%s2615_s1 + $0x2d8] sm:$0xff] }
  0x24   :  { %1477 = vmatprep.subr.bf16.mxu1 %v1476_v52  ;;  %441 = vmatmul.mubr.f32.vlgmr.msra.gmra.mrb[0].mxu0 %v299_v27  ;;  %v113_v27 = vld [vmem:[%s2615_s1 + $0x2c0] sm:$0xff]  ;;  %v309_v34 = vcombine.high %v22_v31, %v22_v31  ;;  %v98_v38 = vld [vmem:[%s2615_s1 + $0x248] sm:$0xff]  ;;  %v147_v46 = vld [vmem:[%s2615_s1 + $0x3d0] sm:$0xff]  ;;  %v1464_v51 = vpack.c.bf16 %v116_v43, %v115_v42 }
  0x25   :  { %1447 = vmatpush3.bf16.msra.mxu0 %v1446_v58  ;;  %v1460_v36 = vpack.c.bf16 %v114_v28, %v113_v27  ;;  %v130_v41 = vld [vmem:[%s2615_s1 + $0x348] sm:$0xff]  ;;  %v148_v47 = vld [vmem:[%s2615_s1 + $0x3d8] sm:$0xff]  ;;  %v1462_v48 = vpack.c.bf16 %v98_v38, %v97_v37  ;;  %v99_v52 = vld [vmem:[%s2615_s1 + $0x250] sm:$0xff] }
  0x26   :  { %511 = vmatmul.mubr.f32.vlgmr.msra.gmra.mrb[0].mxu1 %v306_v33  ;;  %1449 = vmatprep.subr.bf16.mxu0 %v1448_v60  ;;  %v2039_v33 = vrot.slane %v22_v31, %v1878_v13  ;;  %v2062_v45 = vrot.slane %v309_v34, %v1878_v13  ;;  %v1494_v50 = vpack.c.bf16 %v130_v41, %v129_v39  ;;  %v100_v53 = vld [vmem:[%s2615_s1 + $0x258] sm:$0xff]  ;;  %v131_v54 = vld [vmem:[%s2615_s1 + $0x350] sm:$0xff]  ;;  %v117_v57 = vld [vmem:[%s2615_s1 + $0x2e0] sm:$0xff] }
  0x27   :  { %1479 = vmatpush3.bf16.msra.mxu1 %v1478_v59  ;;  %v1496_v55 = vpack.c.bf16 %v148_v47, %v147_v46  ;;  %v132_v56 = vld [vmem:[%s2615_s1 + $0x358] sm:$0xff]  ;;  %v118_v58 = vld [vmem:[%s2615_s1 + $0x2e8] sm:$0xff]  ;;  %v149_v59 = vld [vmem:[%s2615_s1 + $0x3e0] sm:$0xff]  ;;  %v1466_v61 = vpack.c.bf16 %v100_v53, %v99_v52 }
  0x28   :  { %1481 = vmatprep.subr.bf16.mxu1 %v1480_v0  ;;  %v324_v44 = vcombine.high %v2039_v33, %v2039_v33  ;;  %v325_v49 = vcombine.high %v2062_v45, %v2062_v45  ;;  %v150_v60 = vld [vmem:[%s2615_s1 + $0x3e8] sm:$0xff]  ;;  %v1498_v62 = vpack.c.bf16 %v132_v56, %v131_v54  ;;  %v1468_v63 = vpack.c.bf16 %v118_v58, %v117_v57  ;;  %v101_v0 = vld [vmem:[%s2615_s1 + $0x260] sm:$0xff]  ;;  %v119_v5 = vld [vmem:[%s2615_s1 + $0x2f0] sm:$0xff] }
  0x29   :  { %1451 = vmatpush3.bf16.msra.mxu0 %v1450_v6  ;;  %v102_v1 = vld [vmem:[%s2615_s1 + $0x268] sm:$0xff]  ;;  %v133_v2 = vld [vmem:[%s2615_s1 + $0x360] sm:$0xff]  ;;  %v1500_v3 = vpack.c.bf16 %v150_v60, %v149_v59  ;;  %v120_v6 = vld [vmem:[%s2615_s1 + $0x2f8] sm:$0xff] }
  0x2a   :  { %1453 = vmatprep.subr.bf16.mxu0 %v1452_v8  ;;  %580 = vmatprep.mubr.f32.mxu0 %v324_v44  ;;  %v134_v4 = vld [vmem:[%s2615_s1 + $0x368] sm:$0xff]  ;;  %v152_v8 = vld [vmem:[%s2615_s1 + $0x3f8] sm:$0xff]  ;;  %v1470_v9 = vpack.c.bf16 %v102_v1, %v101_v0  ;;  %v1472_v11 = vpack.c.bf16 %v120_v6, %v119_v5  ;;  %v135_v15 = vld [vmem:[%s2615_s1 + $0x370] sm:$0xff] }
  0x2b   :  { %1483 = vmatpush3.bf16.msra.mxu1 %v1482_v7  ;;  %650 = vmatprep.mubr.f32.mxu1 %v325_v49  ;;  %v151_v7 = vld [vmem:[%s2615_s1 + $0x3f0] sm:$0xff]  ;;  %v1502_v10 = vpack.c.bf16 %v134_v4, %v133_v2  ;;  %v104_v14 = vld [vmem:[%s2615_s1 + $0x278] sm:$0xff]  ;;  %v169_v18 = vld [vmem:[%s2615_s1 + $0x480] sm:$0xff] }
  0x2c   :  { %1485 = vmatprep.subr.bf16.mxu1 %v1484_v12  ;;  %v103_v12 = vld [vmem:[%s2615_s1 + $0x270] sm:$0xff]  ;;  %v1504_v16 = vpack.c.bf16 %v152_v8, %v151_v7  ;;  %v136_v17 = vld [vmem:[%s2615_s1 + $0x378] sm:$0xff]  ;;  %v153_v23 = vld [vmem:[%s2615_s1 + $0x400] sm:$0xff] }
  0x2d   :  { %1455 = vmatpush3.bf16.msra.mxu0 %v1454_v19  ;;  %v170_v19 = vld [vmem:[%s2615_s1 + $0x488] sm:$0xff]  ;;  %v1474_v22 = vpack.c.bf16 %v104_v14, %v103_v12  ;;  %v1506_v24 = vpack.c.bf16 %v136_v17, %v135_v15  ;;  %v185_v27 = vld [vmem:[%s2615_s1 + $0x500] sm:$0xff]  ;;  %v171_v30 = vld [vmem:[%s2615_s1 + $0x490] sm:$0xff] }
  0x2e   :  { %1457 = vmatprep.subr.bf16.mxu0 %v1456_v21  ;;  %v202_v21 = vld [vmem:[%s2615_s1 + $0x588] sm:$0xff]  ;;  %v172_v31 = vld [vmem:[%s2615_s1 + $0x498] sm:$0xff]  ;;  %v23_v37 = vld [vmem:[%s2614_s0 + $0x10] sm:$0xff] }
  0x2f   :  { %1487 = vmatpush3.bf16.msra.mxu1 %v1486_v20  ;;  %v201_v20 = vld [vmem:[%s2615_s1 + $0x580] sm:$0xff]  ;;  %v154_v26 = vld [vmem:[%s2615_s1 + $0x408] sm:$0xff]  ;;  %v204_v34 = vld [vmem:[%s2615_s1 + $0x598] sm:$0xff]  ;;  %v1512_v38 = vpack.c.bf16 %v172_v31, %v171_v30  ;;  %v2181_v42 = vrot.slane %v23_v37, %v1878_v13  ;;  %v326_v43 = vcombine.high %v23_v37, %v23_v37 }
  0x30   :  { %1489 = vmatprep.subr.bf16.mxu1 %v1488_v25  ;;  %v1508_v25 = vpack.c.bf16 %v170_v19, %v169_v18  ;;  %v186_v28 = vld [vmem:[%s2615_s1 + $0x508] sm:$0xff]  ;;  %v1540_v29 = vpack.c.bf16 %v202_v21, %v201_v20  ;;  %v155_v39 = vld [vmem:[%s2615_s1 + $0x410] sm:$0xff]  ;;  %v188_v46 = vld [vmem:[%s2615_s1 + $0x518] sm:$0xff] }
  0x31   :  { %1459 = vmatpush3.bf16.msra.mxu0 %v1458_v32  ;;  %v203_v32 = vld [vmem:[%s2615_s1 + $0x590] sm:$0xff]  ;;  %v173_v47 = vld [vmem:[%s2615_s1 + $0x4a0] sm:$0xff]  ;;  %v2202_v52 = vrot.slane %v326_v43, %v1878_v13  ;;  %v158_v56 = vld [vmem:[%s2615_s1 + $0x428] sm:$0xff] }
  0x32   :  { %1461 = vmatprep.subr.bf16.mxu0 %v1460_v36  ;;  %v1542_v36 = vpack.c.bf16 %v186_v28, %v185_v27  ;;  %v187_v41 = vld [vmem:[%s2615_s1 + $0x510] sm:$0xff]  ;;  %v1544_v44 = vpack.c.bf16 %v204_v34, %v203_v32  ;;  %v205_v49 = vld [vmem:[%s2615_s1 + $0x5a0] sm:$0xff]  ;;  %v190_v59 = vld [vmem:[%s2615_s1 + $0x528] sm:$0xff] }
  0x33   :  { %1491 = vmatpush3.bf16.msra.mxu1 %v1490_v35  ;;  %v1510_v35 = vpack.c.bf16 %v154_v26, %v153_v23  ;;  %v189_v57 = vld [vmem:[%s2615_s1 + $0x520] sm:$0xff]  ;;  %v175_v60 = vld [vmem:[%s2615_s1 + $0x4b0] sm:$0xff]  ;;  %v160_v4 = vld [vmem:[%s2615_s1 + $0x438] sm:$0xff] }
  0x34   :  { %1493 = vmatprep.subr.bf16.mxu1 %v1492_v40  ;;  %v156_v40 = vld [vmem:[%s2615_s1 + $0x418] sm:$0xff]  ;;  %v1550_v1 = vpack.c.bf16 %v190_v59, %v189_v57  ;;  %v191_v5 = vld [vmem:[%s2615_s1 + $0x530] sm:$0xff]  ;;  %v177_v8 = vld [vmem:[%s2615_s1 + $0x4c0] sm:$0xff] }
  0x35   :  { %1463 = vmatpush3.bf16.msra.mxu0 %v1462_v48  ;;  %v174_v48 = vld [vmem:[%s2615_s1 + $0x4a8] sm:$0xff]  ;;  %v1514_v53 = vpack.c.bf16 %v156_v40, %v155_v39  ;;  %v192_v7 = vld [vmem:[%s2615_s1 + $0x538] sm:$0xff]  ;;  %v193_v18 = vld [vmem:[%s2615_s1 + $0x540] sm:$0xff] }
  0x36   :  { %1465 = vmatprep.subr.bf16.mxu0 %v1464_v51  ;;  %v341_v51 = vcombine.high %v2181_v42, %v2181_v42  ;;  %v1516_v54 = vpack.c.bf16 %v174_v48, %v173_v47  ;;  %v1554_v14 = vpack.c.bf16 %v192_v7, %v191_v5  ;;  %v162_v17 = vld [vmem:[%s2615_s1 + $0x448] sm:$0xff]  ;;  %v179_v21 = vld [vmem:[%s2615_s1 + $0x4d0] sm:$0xff]  ;;  %v196_v32 = vld [vmem:[%s2615_s1 + $0x558] sm:$0xff] }
  0x37   :  { %1495 = vmatpush3.bf16.msra.mxu1 %v1494_v50  ;;  %v206_v50 = vld [vmem:[%s2615_s1 + $0x5a8] sm:$0xff]  ;;  %v211_v23 = vld [vmem:[%s2615_s1 + $0x5d0] sm:$0xff]  ;;  %v181_v34 = vld [vmem:[%s2615_s1 + $0x4e0] sm:$0xff] }
  0x38   :  { %1497 = vmatprep.subr.bf16.mxu1 %v1496_v55  ;;  %v157_v55 = vld [vmem:[%s2615_s1 + $0x420] sm:$0xff]  ;;  %v1548_v58 = vpack.c.bf16 %v206_v50, %v205_v49  ;;  %v194_v20 = vld [vmem:[%s2615_s1 + $0x548] sm:$0xff]  ;;  %v163_v28 = vld [vmem:[%s2615_s1 + $0x450] sm:$0xff] }
  0x39   :  { %1467 = vmatpush3.bf16.msra.mxu0 %v1466_v61  ;;  %v176_v61 = vld [vmem:[%s2615_s1 + $0x4b8] sm:$0xff]  ;;  %v1518_v0 = vpack.c.bf16 %v158_v56, %v157_v55  ;;  %v1558_v26 = vpack.c.bf16 %v194_v20, %v193_v18  ;;  %v195_v30 = vld [vmem:[%s2615_s1 + $0x550] sm:$0xff]  ;;  %v214_v37 = vld [vmem:[%s2615_s1 + $0x5e8] sm:$0xff] }
  0x3a   :  { %1469 = vmatprep.subr.bf16.mxu0 %v1468_v63  ;;  %v208_v63 = vld [vmem:[%s2615_s1 + $0x5b8] sm:$0xff]  ;;  %v1520_v2 = vpack.c.bf16 %v176_v61, %v175_v60  ;;  %v165_v39 = vld [vmem:[%s2615_s1 + $0x460] sm:$0xff]  ;;  %v1562_v40 = vpack.c.bf16 %v196_v32, %v195_v30  ;;  %v166_v43 = vld [vmem:[%s2615_s1 + $0x468] sm:$0xff] }
  0x3b   :  { %1499 = vmatpush3.bf16.msra.mxu1 %v1498_v62  ;;  %v207_v62 = vld [vmem:[%s2615_s1 + $0x5b0] sm:$0xff]  ;;  %v184_v49 = vld [vmem:[%s2615_s1 + $0x4f8] sm:$0xff] }
  0x3c   :  { %1501 = vmatprep.subr.bf16.mxu1 %v1500_v3  ;;  %v159_v3 = vld [vmem:[%s2615_s1 + $0x430] sm:$0xff]  ;;  %v1552_v6 = vpack.c.bf16 %v208_v63, %v207_v62 }
  0x3d   :  { %1471 = vmatpush3.bf16.msra.mxu0 %v1470_v9  ;;  %v178_v9 = vld [vmem:[%s2615_s1 + $0x4c8] sm:$0xff]  ;;  %v1522_v12 = vpack.c.bf16 %v160_v4, %v159_v3  ;;  %v183_v48 = vld [vmem:[%s2615_s1 + $0x4f0] sm:$0xff] }
  0x3e   :  { %1473 = vmatprep.subr.bf16.mxu0 %v1472_v11  ;;  %v210_v11 = vld [vmem:[%s2615_s1 + $0x5c8] sm:$0xff]  ;;  %v1524_v15 = vpack.c.bf16 %v178_v9, %v177_v8 }
  0x3f   :  { %1503 = vmatpush3.bf16.msra.mxu1 %v1502_v10  ;;  %v209_v10 = vld [vmem:[%s2615_s1 + $0x5c0] sm:$0xff] }
  0x40   :  { %1505 = vmatprep.subr.bf16.mxu1 %v1504_v16  ;;  %v161_v16 = vld [vmem:[%s2615_s1 + $0x440] sm:$0xff]  ;;  %v1556_v19 = vpack.c.bf16 %v210_v11, %v209_v10 }
  0x41   :  { %1475 = vmatpush3.bf16.msra.mxu0 %v1474_v22  ;;  %v180_v22 = vld [vmem:[%s2615_s1 + $0x4d8] sm:$0xff] }
  0x42   :  { %1509 = vmatprep.subr.bf16.mxu0 %v1508_v25  ;;  %v1526_v25 = vpack.c.bf16 %v162_v17, %v161_v16  ;;  %v1528_v27 = vpack.c.bf16 %v180_v22, %v179_v21 }
  0x43   :  { %1507 = vmatpush3.bf16.msra.mxu1 %v1506_v24  ;;  %v212_v24 = vld [vmem:[%s2615_s1 + $0x5d8] sm:$0xff] }
  0x44   :  { %1541 = vmatprep.subr.bf16.mxu1 %v1540_v29  ;;  %581 = vmatmul.mubr.f32.vlgmr.msra.gmra.mrb[2].mxu0 %v2039_v33  ;;  %v1546_v33 = vpack.c.bf16 %v188_v46, %v187_v41  ;;  %v164_v29 = vld [vmem:[%s2615_s1 + $0x458] sm:$0xff]  ;;  %v1560_v31 = vpack.c.bf16 %v212_v24, %v211_v23  ;;  %v198_v46 = vld [vmem:[%s2615_s1 + $0x568] sm:$0xff] }
  0x45   :  { %1511 = vmatpush3.bf16.msra.mxu0 %v1510_v35  ;;  %720 = vmatprep.mubr.f32.mxu0 %v341_v51  ;;  %v182_v35 = vld [vmem:[%s2615_s1 + $0x4e8] sm:$0xff] }
  0x46   :  { %651 = vmatmul.mubr.f32.vlgmr.msra.gmra.mrb[2].mxu1 %v2062_v45  ;;  %1513 = vmatprep.subr.bf16.mxu0 %v1512_v38  ;;  %v342_v45 = vcombine.high %v2202_v52, %v2202_v52  ;;  %v1530_v38 = vpack.c.bf16 %v164_v29, %v163_v28  ;;  %v1532_v41 = vpack.c.bf16 %v182_v35, %v181_v34 }
  0x47   :  { %1543 = vmatpush3.bf16.msra.mxu1 %v1542_v36  ;;  %v213_v36 = vld [vmem:[%s2615_s1 + $0x5e0] sm:$0xff] }
  0x48   :  { %1545 = vmatprep.subr.bf16.mxu1 %v1544_v44  ;;  %790 = vmatprep.mubr.f32.mxu1 %v342_v45  ;;  %v197_v44 = vld [vmem:[%s2615_s1 + $0x560] sm:$0xff]  ;;  %v1564_v47 = vpack.c.bf16 %v214_v37, %v213_v36 }
  0x49   :  { %1515 = vmatpush3.bf16.msra.mxu0 %v1514_v53 }
  0x4a   :  { %1517 = vmatprep.subr.bf16.mxu0 %v1516_v54 }
  0x4b   :  { %1547 = vmatpush3.bf16.msra.mxu1 %v1546_v33 }
  0x4c   :  { %1549 = vmatprep.subr.bf16.mxu1 %v1548_v58 }
  0x4d   :  { %1519 = vmatpush3.bf16.msra.mxu0 %v1518_v0 }
  0x4e   :  { %1521 = vmatprep.subr.bf16.mxu0 %v1520_v2 }
  0x4f   :  { %1551 = vmatpush3.bf16.msra.mxu1 %v1550_v1 }
  0x50   :  { %1553 = vmatprep.subr.bf16.mxu1 %v1552_v6 }
  0x51   :  { %1523 = vmatpush3.bf16.msra.mxu0 %v1522_v12 }
  0x52   :  { %1525 = vmatprep.subr.bf16.mxu0 %v1524_v15 }
  0x53   :  { %1555 = vmatpush3.bf16.msra.mxu1 %v1554_v14 }
  0x54   :  { %1557 = vmatprep.subr.bf16.mxu1 %v1556_v19 }
  0x55   :  { %1527 = vmatpush3.bf16.msra.mxu0 %v1526_v25 }
  0x56   :  { %1529 = vmatprep.subr.bf16.mxu0 %v1528_v27 }
  0x57   :  { %1559 = vmatpush3.bf16.msra.mxu1 %v1558_v26 }
  0x58   :  { %1561 = vmatprep.subr.bf16.mxu1 %v1560_v31 }
  0x59   :  { %10 = vsyncpa [#allocation3], 0  ;;  %v215_v50 = vld [vmem:[%s2615_s1 + $0x5f0] sm:$0xff]  ;;  %v216_v51 = vld [vmem:[%s2615_s1 + $0x5f8] sm:$0xff]  ;;  %1531 = vmatpush3.bf16.msra.mxu0 %v1530_v38  ;;  %v1534_v53 = vpack.c.bf16 %v166_v43, %v165_v39  ;;  %v1566_v54 = vpack.c.bf16 %v198_v46, %v197_v44  ;;  %v1536_v55 = vpack.c.bf16 %v184_v49, %v183_v48  ;;  %vm1695_vm0 = vmmov 0   ;;  %s1697_s13 = smov [#allocation2]  }
  0x5a   :  { %v24_v33 = vld [vmem:[%s2614_s0 + $0x18] sm:$0xff]  ;;  %1533 = vmatprep.subr.bf16.mxu0 %v1532_v41  ;;  %v167_v56 = vld [vmem:[%s2615_s1 + $0x470] sm:$0xff]  ;;  %v1568_v58 = vpack.c.bf16 %v216_v51, %v215_v50  ;;  %v233_v60 = vld [vmem:[%s2615_s1 + $0x680] sm:$0xff]  ;;  %s1038_s14 = sshll.u32 %s1697_s13, 4  ;;  %vm1030_vm1 = vcmask 74752   ;;  %s1039_s14 = int_to_ptr.vmem [resolvable:$true] %s1038_s14 }
  0x5b   :  { %1563 = vmatpush3.bf16.msra.mxu1 %v1562_v40  ;;  %v168_v57 = vld [vmem:[%s2615_s1 + $0x478] sm:$0xff]  ;;  %v199_v45 = vld [vmem:[%s2615_s1 + $0x570] sm:$0xff]  ;;  %v234_v61 = vld [vmem:[%s2615_s1 + $0x688] sm:$0xff]  ;;  %v343_v0 = vcombine.high %v24_v33, %v24_v33  ;;  %v2373_v11 = vrot.slane %v24_v33, %v1878_v13  ;;  %s1669_s15 = scalar_lea.vmem %s1039_s14, 32  ;;  %p1674_p1 = scmp.lt.s32.totalorder %s1039_s14, %s1039_s14 }
  0x5c   :  { %1565 = vmatprep.subr.bf16.mxu1 %v1564_v47  ;;  %v200_v59 = vld [vmem:[%s2615_s1 + $0x578] sm:$0xff]  ;;  %v265_v62 = vld [vmem:[%s2615_s1 + $0x780] sm:$0xff]  ;;  %v266_v63 = vld [vmem:[%s2615_s1 + $0x788] sm:$0xff]  ;;  %v1538_v1 = vpack.c.bf16 %v168_v57, %v167_v56  ;;  %v1572_v3 = vpack.c.bf16 %v234_v61, %v233_v60  ;;  %p1670_p0 = scmp.ne.s32.totalorder %s1039_s14, %s1669_s15  ;;  %p1675_p2 = scmp.lt.s32.totalorder %s1669_s15, %s1669_s15 }
  0x5d   :  { %1535 = vmatpush3.bf16.msra.mxu0 %v1534_v53  ;;  %v1570_v2 = vpack.c.bf16 %v200_v59, %v199_v45  ;;  %v217_v4 = vld [vmem:[%s2615_s1 + $0x600] sm:$0xff]  ;;  %v218_v5 = vld [vmem:[%s2615_s1 + $0x608] sm:$0xff]  ;;  %v1604_v7 = vpack.c.bf16 %v266_v63, %v265_v62  ;;  %v235_v9 = vld [vmem:[%s2615_s1 + $0x690] sm:$0xff]  ;;  %v2382_v15 = vrot.slane %v343_v0, %v1878_v13  ;;  %v358_v25 = vcombine.high %v2373_v11, %v2373_v11 }
  0x5e   :  { %1537 = vmatprep.subr.bf16.mxu0 %v1536_v55  ;;  %v249_v6 = vld [vmem:[%s2615_s1 + $0x700] sm:$0xff]  ;;  %v250_v8 = vld [vmem:[%s2615_s1 + $0x708] sm:$0xff]  ;;  %v236_v10 = vld [vmem:[%s2615_s1 + $0x698] sm:$0xff]  ;;  %v1574_v16 = vpack.c.bf16 %v218_v5, %v217_v4  ;;  %p1676_p3 = por %p1675_p2, %p1674_p1 }
  0x5f   :  { %1567 = vmatpush3.bf16.msra.mxu1 %v1566_v54  ;;  %v267_v12 = vld [vmem:[%s2615_s1 + $0x790] sm:$0xff]  ;;  %v268_v14 = vld [vmem:[%s2615_s1 + $0x798] sm:$0xff]  ;;  %v1606_v17 = vpack.c.bf16 %v250_v8, %v249_v6  ;;  %v1576_v18 = vpack.c.bf16 %v236_v10, %v235_v9  ;;  %v237_v23 = vld [vmem:[%s2615_s1 + $0x6a0] sm:$0xff]  ;;  %v359_v28 = vcombine.high %v2382_v15, %v2382_v15 }
  0x60   :  { %1569 = vmatprep.subr.bf16.mxu1 %v1568_v58  ;;  %v219_v19 = vld [vmem:[%s2615_s1 + $0x610] sm:$0xff]  ;;  %v220_v20 = vld [vmem:[%s2615_s1 + $0x618] sm:$0xff]  ;;  %v1608_v13 = vpack.c.bf16 %v268_v14, %v267_v12  ;;  %v238_v24 = vld [vmem:[%s2615_s1 + $0x6a8] sm:$0xff]  ;;  %p1677_p4 = pnand %p1676_p3, %p1670_p0 }
  0x61   :  { %1539 = vmatpush3.bf16.msra.mxu0 %v1538_v1  ;;  %v251_v21 = vld [vmem:[%s2615_s1 + $0x710] sm:$0xff]  ;;  %v252_v22 = vld [vmem:[%s2615_s1 + $0x718] sm:$0xff]  ;;  %v269_v26 = vld [vmem:[%s2615_s1 + $0x7a0] sm:$0xff]  ;;  %v1578_v29 = vpack.c.bf16 %v220_v20, %v219_v19  ;;  %v1580_v31 = vpack.c.bf16 %v238_v24, %v237_v23 }
  0x62   :  { %1573 = vmatprep.subr.bf16.mxu0 %v1572_v3  ;;  %v270_v27 = vld [vmem:[%s2615_s1 + $0x7a8] sm:$0xff]  ;;  %v1610_v30 = vpack.c.bf16 %v252_v22, %v251_v21  ;;  %v253_v34 = vld [vmem:[%s2615_s1 + $0x720] sm:$0xff]  ;;  %v239_v36 = vld [vmem:[%s2615_s1 + $0x6b0] sm:$0xff] }
  0x63   :  { %1571 = vmatpush3.bf16.msra.mxu1 %v1570_v2  ;;  %v222_v32 = vld [vmem:[%s2615_s1 + $0x628] sm:$0xff]  ;;  %v1612_v35 = vpack.c.bf16 %v270_v27, %v269_v26  ;;  %v240_v37 = vld [vmem:[%s2615_s1 + $0x6b8] sm:$0xff]  ;;  %v271_v38 = vld [vmem:[%s2615_s1 + $0x7b0] sm:$0xff] }
  0x64   :  { %1605 = vmatprep.subr.bf16.mxu1 %v1604_v7  ;;  %721 = vmatmul.mubr.f32.vlgmr.msra.gmra.mrb[4].mxu0 %v2181_v42  ;;  %v221_v42 = vld [vmem:[%s2615_s1 + $0x620] sm:$0xff]  ;;  %v272_v39 = vld [vmem:[%s2615_s1 + $0x7b8] sm:$0xff]  ;;  %v1584_v43 = vpack.c.bf16 %v240_v37, %v239_v36  ;;  %v223_v44 = vld [vmem:[%s2615_s1 + $0x630] sm:$0xff] }
  0x65   :  { %1575 = vmatpush3.bf16.msra.mxu0 %v1574_v16  ;;  %860 = vmatprep.mubr.f32.mxu0 %v358_v25  ;;  %v1582_v40 = vpack.c.bf16 %v222_v32, %v221_v42  ;;  %v224_v46 = vld [vmem:[%s2615_s1 + $0x638] sm:$0xff]  ;;  %v255_v47 = vld [vmem:[%s2615_s1 + $0x730] sm:$0xff]  ;;  %v1616_v48 = vpack.c.bf16 %v272_v39, %v271_v38  ;;  %v241_v50 = vld [vmem:[%s2615_s1 + $0x6c0] sm:$0xff]  ;;  %v1694_v39 = vmov 0.0|0.0  }
  0x66   :  { %791 = vmatmul.mubr.f32.vlgmr.msra.gmra.mrb[4].mxu1 %v2202_v52  ;;  %1577 = vmatprep.subr.bf16.mxu0 %v1576_v18  ;;  %v254_v52 = vld [vmem:[%s2615_s1 + $0x728] sm:$0xff]  ;;  %v256_v49 = vld [vmem:[%s2615_s1 + $0x738] sm:$0xff]  ;;  %v273_v53 = vld [vmem:[%s2615_s1 + $0x7c0] sm:$0xff]  ;;  %v1586_v54 = vpack.c.bf16 %v224_v46, %v223_v44 }
  0x67   :  { %1607 = vmatpush3.bf16.msra.mxu1 %v1606_v17  ;;  %930 = vmatprep.mubr.f32.mxu1 %v359_v28  ;;  %v1614_v41 = vpack.c.bf16 %v254_v52, %v253_v34  ;;  %v242_v51 = vld [vmem:[%s2615_s1 + $0x6c8] sm:$0xff]  ;;  %v1618_v55 = vpack.c.bf16 %v256_v49, %v255_v47  ;;  %v225_v57 = vld [vmem:[%s2615_s1 + $0x640] sm:$0xff]  ;;  %v243_v61 = vld [vmem:[%s2615_s1 + $0x6d0] sm:$0xff] }
  0x68   :  { %1609 = vmatprep.subr.bf16.mxu1 %v1608_v13  ;;  %v274_v33 = vld [vmem:[%s2615_s1 + $0x7c8] sm:$0xff]  ;;  %v1588_v56 = vpack.c.bf16 %v242_v51, %v241_v50  ;;  %v257_v58 = vld [vmem:[%s2615_s1 + $0x740] sm:$0xff]  ;;  %v244_v62 = vld [vmem:[%s2615_s1 + $0x6d8] sm:$0xff] }
  0x69   :  { %1579 = vmatpush3.bf16.msra.mxu0 %v1578_v29  ;;  %v226_v45 = vld [vmem:[%s2615_s1 + $0x648] sm:$0xff]  ;;  %v1620_v59 = vpack.c.bf16 %v274_v33, %v273_v53  ;;  %v275_v63 = vld [vmem:[%s2615_s1 + $0x7d0] sm:$0xff]  ;;  %v276_v0 = vld [vmem:[%s2615_s1 + $0x7d8] sm:$0xff]  ;;  %v1592_v3 = vpack.c.bf16 %v244_v62, %v243_v61 }
  0x6a   :  { %1581 = vmatprep.subr.bf16.mxu0 %v1580_v31  ;;  %v258_v60 = vld [vmem:[%s2615_s1 + $0x748] sm:$0xff]  ;;  %v1590_v1 = vpack.c.bf16 %v226_v45, %v225_v57  ;;  %v227_v4 = vld [vmem:[%s2615_s1 + $0x650] sm:$0xff]  ;;  %v228_v5 = vld [vmem:[%s2615_s1 + $0x658] sm:$0xff]  ;;  %v1624_v7 = vpack.c.bf16 %v276_v0, %v275_v63 }
  0x6b   :  { %1611 = vmatpush3.bf16.msra.mxu1 %v1610_v30  ;;  %v1622_v2 = vpack.c.bf16 %v258_v60, %v257_v58  ;;  %v259_v6 = vld [vmem:[%s2615_s1 + $0x750] sm:$0xff]  ;;  %v260_v8 = vld [vmem:[%s2615_s1 + $0x758] sm:$0xff]  ;;  %v245_v9 = vld [vmem:[%s2615_s1 + $0x6e0] sm:$0xff]  ;;  %v1594_v16 = vpack.c.bf16 %v228_v5, %v227_v4  ;;  %v1696_v60 = vmov 0.0  }
  0x6c   :  { %1613 = vmatprep.subr.bf16.mxu1 %v1612_v35  ;;  %v246_v10 = vld [vmem:[%s2615_s1 + $0x6e8] sm:$0xff]  ;;  %v277_v12 = vld [vmem:[%s2615_s1 + $0x7e0] sm:$0xff]  ;;  %v1626_v17 = vpack.c.bf16 %v260_v8, %v259_v6  ;;  %v247_v23 = vld [vmem:[%s2615_s1 + $0x6f0] sm:$0xff] }
  0x6d   :  { %1583 = vmatpush3.bf16.msra.mxu0 %v1582_v40  ;;  %v278_v14 = vld [vmem:[%s2615_s1 + $0x7e8] sm:$0xff]  ;;  %v1596_v18 = vpack.c.bf16 %v246_v10, %v245_v9  ;;  %v229_v19 = vld [vmem:[%s2615_s1 + $0x660] sm:$0xff]  ;;  %v248_v24 = vld [vmem:[%s2615_s1 + $0x6f8] sm:$0xff] }
  0x6e   :  { %1585 = vmatprep.subr.bf16.mxu0 %v1584_v43  ;;  %v230_v20 = vld [vmem:[%s2615_s1 + $0x668] sm:$0xff]  ;;  %v261_v21 = vld [vmem:[%s2615_s1 + $0x760] sm:$0xff]  ;;  %v1628_v13 = vpack.c.bf16 %v278_v14, %v277_v12  ;;  %v279_v25 = vld [vmem:[%s2615_s1 + $0x7f0] sm:$0xff]  ;;  %v1600_v29 = vpack.c.bf16 %v248_v24, %v247_v23 }
  0x6f   :  { %1615 = vmatpush3.bf16.msra.mxu1 %v1614_v41  ;;  %v262_v22 = vld [vmem:[%s2615_s1 + $0x768] sm:$0xff]  ;;  %v280_v26 = vld [vmem:[%s2615_s1 + $0x7f8] sm:$0xff]  ;;  %v1598_v27 = vpack.c.bf16 %v230_v20, %v229_v19  ;;  %v231_v30 = vld [vmem:[%s2615_s1 + $0x670] sm:$0xff] }
  0x70   :  { %1617 = vmatprep.subr.bf16.mxu1 %v1616_v48  ;;  %v1630_v28 = vpack.c.bf16 %v262_v22, %v261_v21  ;;  %v232_v31 = vld [vmem:[%s2615_s1 + $0x678] sm:$0xff]  ;;  %v1632_v42 = vpack.c.bf16 %v280_v26, %v279_v25  ;;  %v263_v32 = vld [vmem:[%s2615_s1 + $0x770] sm:$0xff]  ;;  %v937_v36 = vld [vmem:[%s2617_s3] sm:$0xff] }
  0x71   :  { %1587 = vmatpush3.bf16.msra.mxu0 %v1586_v54  ;;  %v264_v34 = vld [vmem:[%s2615_s1 + $0x778] sm:$0xff]  ;;  %v1602_v35 = vpack.c.bf16 %v232_v31, %v231_v30  ;;  %v938_v37 = vld [vmem:[%s2617_s3 + $0x8] sm:$0xff]  ;;  %v939_v38 = vld [vmem:[%s2617_s3 + $0x10] sm:$0xff] }
  0x72   :  { %1589 = vmatprep.subr.bf16.mxu0 %v1588_v56  ;;  %v1634_v52 = vpack.c.bf16 %v264_v34, %v263_v32  ;;  %v1637_v40 = vpack.c.bf16 %v938_v37, %v937_v36  ;;  %v941_v41 = vld [vmem:[%s2617_s3 + $0x20] sm:$0xff]  ;;  %v942_v43 = vld [vmem:[%s2617_s3 + $0x28] sm:$0xff]  ;;  %v943_v46 = vld [vmem:[%s2617_s3 + $0x30] sm:$0xff] }
  0x73   :  { %1619 = vmatpush3.bf16.msra.mxu1 %v1618_v55  ;;  %v1643_v44 = vpack.c.bf16 %v942_v43, %v941_v41  ;;  %v944_v47 = vld [vmem:[%s2617_s3 + $0x38] sm:$0xff]  ;;  %v945_v49 = vld [vmem:[%s2617_s3 + $0x40] sm:$0xff]  ;;  %v946_v50 = vld [vmem:[%s2617_s3 + $0x48] sm:$0xff] }
  0x74   :  { %1621 = vmatprep.subr.bf16.mxu1 %v1620_v59  ;;  %v1646_v48 = vpack.c.bf16 %v944_v47, %v943_v46  ;;  %v1649_v51 = vpack.c.bf16 %v946_v50, %v945_v49  ;;  %v947_v53 = vld [vmem:[%s2617_s3 + $0x50] sm:$0xff]  ;;  %v948_v33 = vld [vmem:[%s2617_s3 + $0x58] sm:$0xff]  ;;  %v949_v55 = vld [vmem:[%s2617_s3 + $0x60] sm:$0xff] }
  0x75   :  { %1591 = vmatpush3.bf16.msra.mxu0 %v1590_v1  ;;  %v1652_v54 = vpack.c.bf16 %v948_v33, %v947_v53  ;;  %v950_v56 = vld [vmem:[%s2617_s3 + $0x68] sm:$0xff]  ;;  %v951_v45 = vld [vmem:[%s2617_s3 + $0x70] sm:$0xff]  ;;  %v952_v58 = vld [vmem:[%s2617_s3 + $0x78] sm:$0xff] }
  0x76   :  { %1593 = vmatprep.subr.bf16.mxu0 %v1592_v3  ;;  %v1655_v57 = vpack.c.bf16 %v950_v56, %v949_v55  ;;  %v1658_v59 = vpack.c.bf16 %v952_v58, %v951_v45  ;;  %v1046_v62 = vld [vmem:[%s2616_s2] ss:$0 sm:$0xff] }
  0x77   :  { %1623 = vmatpush3.bf16.msra.mxu1 %v1622_v2  ;;  %v1047_v32 = vld [vmem:[%s2618_s4] ss:$0 sm:$0xff] }
  0x78   :  { %1625 = vmatprep.subr.bf16.mxu1 %v1624_v7 }
  0x79   :  { %1595 = vmatpush3.bf16.msra.mxu0 %v1594_v16 }
  0x7a   :  { %1597 = vmatprep.subr.bf16.mxu0 %v1596_v18 }
  0x7b   :  { %1627 = vmatpush3.bf16.msra.mxu1 %v1626_v17 }
  0x7c   :  { %1629 = vmatprep.subr.bf16.mxu1 %v1628_v13 }
  0x7d   :  { %1599 = vmatpush3.bf16.msra.mxu0 %v1598_v27 }
  0x7e   :  { %1601 = vmatprep.subr.bf16.mxu0 %v1600_v29 }
  0x7f   :  { %1631 = vmatpush3.bf16.msra.mxu1 %v1630_v28 }
  0x80   :  { %1633 = vmatprep.subr.bf16.mxu1 %v1632_v42 }
  0x81   :  { %1603 = vmatpush3.bf16.msra.mxu0 %v1602_v35 }
  0x82   :  { %1636 = vmatprep.subr.bf16.mxu0 %v1694_v39 }
  0x83   :  { %1635 = vmatpush3.bf16.msra.mxu1 %v1634_v52 }
  0x84   :  { %861 = vmatmul.mubr.f32.vlgmr.msra.gmra.mrb[6].mxu0 %v2373_v11  ;;  %v940_v11 = vld [vmem:[%s2617_s3 + $0x18] sm:$0xff] }
  0x85   :  { %1638 = vmatpush3.bf16.msra.mxu0 %v1637_v40  ;;  %1377 = vmatprep.mubr.msk.f32.mxu0 %vm1695_vm0, %v1696_v60 }
  0x86   :  { %931 = vmatmul.mubr.f32.vlgmr.msra.gmra.mrb[6].mxu1 %v2382_v15  ;;  %v1640_v15 = vpack.c.bf16 %v940_v11, %v939_v38  ;;  %1639 = vmatprep.subr.bf16.mxu0 %v1694_v39 }
  0x89   :  { %1641 = vmatpush3.bf16.msra.mxu0 %v1640_v15 }
  0x8a   :  { %1642 = vmatprep.subr.bf16.mxu0 %v1694_v39 }
  0x8d   :  { %1644 = vmatpush3.bf16.msra.mxu0 %v1643_v44 }
  0x8e   :  { %1645 = vmatprep.subr.bf16.mxu0 %v1694_v39 }
  0x91   :  { %1647 = vmatpush3.bf16.msra.mxu0 %v1646_v48 }
  0x92   :  { %1648 = vmatprep.subr.bf16.mxu0 %v1694_v39 }
  0x95   :  { %1650 = vmatpush3.bf16.msra.mxu0 %v1649_v51 }
  0x96   :  { %1651 = vmatprep.subr.bf16.mxu0 %v1694_v39 }
  0x99   :  { %1653 = vmatpush3.bf16.msra.mxu0 %v1652_v54 }
  0x9a   :  { %1654 = vmatprep.subr.bf16.mxu0 %v1694_v39 }
  0x9d   :  { %1656 = vmatpush3.bf16.msra.mxu0 %v1655_v57 }
  0x9e   :  { %1657 = vmatprep.subr.bf16.mxu0 %v1694_v39 }
  0xa1   :  { %1659 = vmatpush3.bf16.msra.mxu0 %v1658_v59 }
  0xf7   :  { %v1080_v61 = vpop.f32.mrb[0].mxu0 }
  0xf8   :  { %v1081_v63 = vpop.f32.mrb[1].mxu0 }
  0xf9   :  { %v1115_v0 = vpop.f32.mrb[0].mxu1  ;;  %v1082_v1 = vadd.f32 %v1081_v63, %v1080_v61 }
  0xfa   :  { %v1116_v2 = vpop.f32.mrb[1].mxu1 }
  0xfb   :  { %v1117_v3 = vadd.f32 %v1116_v2, %v1115_v0  ;;  %v443_v4 = vadd.f32 %v1082_v1, %v1046_v62 }
  0xfd   :  { %v513_v5 = vadd.f32 %v1117_v3, %v443_v4 }
 0x117   :  { %v1150_v6 = vpop.f32.mrb[2].mxu0 }
 0x118   :  { %v1151_v7 = vpop.f32.mrb[3].mxu0 }
 0x119   :  { %v1185_v8 = vpop.f32.mrb[2].mxu1  ;;  %v1152_v9 = vadd.f32 %v1151_v7, %v1150_v6 }
 0x11a   :  { %v1186_v10 = vpop.f32.mrb[3].mxu1 }
 0x11b   :  { %v1187_v12 = vadd.f32 %v1186_v10, %v1185_v8  ;;  %v583_v14 = vadd.f32 %v1152_v9, %v513_v5 }
 0x11d   :  { %v653_v16 = vadd.f32 %v1187_v12, %v583_v14 }
 0x137   :  { %v1220_v17 = vpop.f32.mrb[4].mxu0 }
 0x138   :  { %v1221_v18 = vpop.f32.mrb[5].mxu0 }
 0x139   :  { %v1255_v19 = vpop.f32.mrb[4].mxu1  ;;  %v1222_v20 = vadd.f32 %v1221_v18, %v1220_v17 }
 0x13a   :  { %v1256_v21 = vpop.f32.mrb[5].mxu1 }
 0x13b   :  { %v1257_v13 = vadd.f32 %v1256_v21, %v1255_v19  ;;  %v723_v22 = vadd.f32 %v1222_v20, %v653_v16 }
 0x13d   :  { %v793_v23 = vadd.f32 %v1257_v13, %v723_v22 }
 0x157   :  { %v1290_v24 = vpop.f32.mrb[6].mxu0 }
 0x158   :  { %v1291_v25 = vpop.f32.mrb[7].mxu0 }
 0x159   :  { %v1325_v26 = vpop.f32.mrb[6].mxu1  ;;  %v1292_v27 = vadd.f32 %v1291_v25, %v1290_v24 }
 0x15a   :  { %v1326_v28 = vpop.f32.mrb[7].mxu1 }
 0x15b   :  { %v1327_v29 = vadd.f32 %v1326_v28, %v1325_v26  ;;  %v863_v30 = vadd.f32 %v1292_v27, %v793_v23 }
 0x15d   :  { %v933_v31 = vadd.f32 %v1327_v29, %v863_v30 }
 0x15f   :  { %v936_v42 = vmax.f32 %v933_v31, 0.0 }
 0x161   :  { %1378 = vmatmul.mubr.f32.vlgmr.msra.gmra.mrb[8].mxu0 %v936_v42 }
 0x234   :  { %v1026_v34 = vpop.f32.mrb[8].mxu0 }
 0x235   :  { %v1027_v35 = vadd.f32 %v1047_v32, %v1026_v34  ;;  %v1379_v52 = vpop.f32.mrb[9].mxu0 }
 0x237   :  { %1031 = vst.msk [vmem:[#allocation2] sm:$0x3] %vm1030_vm1, %v1027_v35 }
 0x238   :  { %1680 = shalt.err (!%p1677_p4)
}
 0x239   :  { %s1681_s18 = scalar_lea.hbm %s2619_s5, 32 }
 0x23a   :  { %p1682_p5 = scmp.ne.s32.totalorder %s2619_s5, %s1681_s18  ;;  %p1685_p6 = scmp.lt.u32.totalorder %s1681_s18, %s2619_s5 }
 0x23c   :  { %p1687_p7 = pnand %p1685_p6, %p1682_p5 }
 0x23e   :  { %1690 = shalt.err (!%p1687_p7)
}
 0x23f   :  { %1041 = dma.vmem_to_hbm [thread:$0]  %s1039_s14, 32, %s2619_s5, [#allocation3]  }
 0x240   :  { %1691 = dma.done.wait [#allocation3], 32  }
 0x241   :  { %1692 = vsyncadd [#allocation3], 4294967264 }
 0x242   :  { %1045 = vsyncpa [#allocation3], 1 }

</bundles_post_ra>
